<compile_context>
chip_gen: v7x
topology: tpu7x:2x2x1
jax: 0.10.0
libtpu: 0.0.40
codegen_flags: <defaults>
</compile_context>

<pallas_src>
import numpy as np

import jax
import jax.numpy as jnp
from jax.experimental import pallas as pl
from jax.experimental.pallas import tpu as pltpu


# ----------------------------------------------------------------------------
# Packed-weight slab layout (rows x 384 cols, float32).
# ----------------------------------------------------------------------------
_R_G1 = 0          # (256, 336) conv1 banded weights, K = kr*32+w, N = r4*84+j*3+c
_R_G2 = 256        # (384, 320) conv2 banded weights, K = m*128+p*64+j2*3+ci
_R_FC1 = 640       # (640, 120) fc1 regrouped, K = h*128 + wsp*16 + co
_R_CS1 = 1280      # (81, 64)   pool1 column selector
_R_CS2 = 1368      # (144, 128) pool2 column selector
_R_FC2 = 1512      # (120, 84)
_R_FC3 = 1632      # (84, 10)
_R_CB1 = 1720      # (1, 336) conv1 bias tiled
_R_CB2 = 1721      # (1, 320) conv2 bias tiled
_R_FB1 = 1722      # (1, 120)
_R_FB2 = 1723      # (1, 84)
_R_FB3 = 1724      # (1, 10)
_R_TOT = 1728
_SLAB_COLS = 384


# ----------------------------------------------------------------------------
# Fused kernel: one grid step = TB images (N1 = TB*8 M-rows).
# ----------------------------------------------------------------------------
def _lenet_kernel(x_ref, w_ref, out_ref):
    f32 = jnp.float32
    xq = x_ref[...]                               # (N1, 128): 4 image rows/lane block
    n1 = xq.shape[0]

    def shift_cat(src, nshift):
        # out[n, m*C:(m+1)*C] = src[n+m]; rows past the end read zeros (they
        # only ever feed the per-image garbage rows that the wrapper drops).
        pad = jnp.zeros((8, src.shape[1]), f32)
        ext = jnp.concatenate([src, pad], axis=0)
        return jnp.concatenate([ext[m:m + n1, :] for m in range(nshift)],
                               axis=-1)

    # conv1 + bias + ReLU: single K=256 matmul; output cols = r4*84 + j*3 + c
    # (4 consecutive conv rows of one image per M-row).
    lhs1 = shift_cat(xq, 2)                                              # (N1, 256)
    y1 = jnp.dot(lhs1, w_ref[_R_G1:_R_G1 + 256, 0:336],
                 preferred_element_type=f32) + w_ref[_R_CB1:_R_CB1 + 1, 0:336]
    y1 = jnp.maximum(y1, 0.0)                                            # (N1, 336)

    # 2x2/2 max-pool #1: row pairs are lane blocks; cols via slice + selector.
    cs1 = w_ref[_R_CS1:_R_CS1 + 81, 0:64]
    ra = jnp.maximum(y1[:, 0:84], y1[:, 84:168])
    rb = jnp.maximum(y1[:, 168:252], y1[:, 252:336])
    pa = jnp.dot(jnp.maximum(ra[:, 0:81], ra[:, 3:84]), cs1,
                 preferred_element_type=f32)                             # (N1, 64)
    pb = jnp.dot(jnp.maximum(rb[:, 0:81], rb[:, 3:84]), cs1,
                 preferred_element_type=f32)                             # (N1, 64)
    p1 = jnp.concatenate([pa, pb], axis=-1)                              # (N1, 128)

    # conv2 + bias + ReLU: single K=384 matmul; output cols = r2*160 + q*16 + co
    # (both conv rows of one pooling pair per M-row).
    lhs2 = shift_cat(p1, 3)                                              # (N1, 384)
    y2 = jnp.dot(lhs2, w_ref[_R_G2:_R_G2 + 384, 0:320],
                 preferred_element_type=f32) + w_ref[_R_CB2:_R_CB2 + 1, 0:320]
    y2 = jnp.maximum(y2, 0.0)                                            # (N1, 320)

    # 2x2/2 max-pool #2.
    cs2 = w_ref[_R_CS2:_R_CS2 + 144, 0:128]
    rm = jnp.maximum(y2[:, 0:160], y2[:, 160:320])
    feat = jnp.dot(jnp.maximum(rm[:, 0:144], rm[:, 16:160]), cs2,
                   preferred_element_type=f32)                           # (N1, 128)

    # fc1 + fc2 + fc3: single K=640 dot for fc1.  Only row 0 of each image's
    # 8-row block holds the true flattened features; other rows are finite
    # garbage and are dropped by the wrapper.
    lhsf = shift_cat(feat, 5)                                            # (N1, 640)
    h1 = jnp.maximum(
        jnp.dot(lhsf, w_ref[_R_FC1:_R_FC1 + 640, 0:120],
                preferred_element_type=f32) + w_ref[_R_FB1:_R_FB1 + 1, 0:120],
        0.0)
    h2 = jnp.maximum(
        jnp.dot(h1, w_ref[_R_FC2:_R_FC2 + 120, 0:84],
                preferred_element_type=f32) + w_ref[_R_FB2:_R_FB2 + 1, 0:84],
        0.0)
    out_ref[...] = (jnp.dot(h2, w_ref[_R_FC3:_R_FC3 + 84, 0:10],
                            preferred_element_type=f32)
                    + w_ref[_R_FB3:_R_FB3 + 1, 0:10])


# ----------------------------------------------------------------------------
# Parameter packing (runs once, wrapper side, O(weight-size) numpy work).
# ----------------------------------------------------------------------------
def pack_lenet_params(params):
    f32 = np.float32
    w1 = np.asarray(params["conv1_w"], f32).reshape(3, 5, 5)   # (c, kh, kw)
    b1 = np.asarray(params["conv1_b"], f32)
    w2 = np.asarray(params["conv2_w"], f32)                    # (co, ci, kh, kw)
    b2 = np.asarray(params["conv2_b"], f32)
    fc1w = np.asarray(params["fc1_w"], f32)
    fc2w = np.asarray(params["fc2_w"], f32)
    fc3w = np.asarray(params["fc3_w"], f32)

    # conv1: G1[(r4+kh)*32 + j + kw, r4*84 + j*3 + c] = w1[c, kh, kw]
    G1 = np.zeros((256, 336), f32)
    jj = np.arange(28)
    for r4 in range(4):
        for kh in range(5):
            for kw in range(5):
                for c in range(3):
                    G1[(r4 + kh) * 32 + jj + kw, r4 * 84 + jj * 3 + c] = w1[c, kh, kw]
    CB1 = np.tile(b1, 4 * 28)                                   # (336,)

    # conv2: G2[m*128 + p*64 + (q+kw)*3 + ci, r2*160 + q*16 + co] = w2[co,ci,kh,kw]
    # with kh = 2m + p - r2.
    G2 = np.zeros((384, 320), f32)
    qq = np.arange(10)
    for m in range(3):
        for p in range(2):
            for r2 in range(2):
                kh = 2 * m + p - r2
                if not (0 <= kh <= 4):
                    continue
                for kw in range(5):
                    for ci in range(3):
                        for co in range(16):
                            G2[m * 128 + p * 64 + (qq + kw) * 3 + ci,
                               r2 * 160 + qq * 16 + co] = w2[co, ci, kh, kw]
    CB2 = np.tile(b2, 2 * 10)                                   # (320,)

    # Pooling column selectors (stride-2 width downsample).
    CS1 = np.zeros((81, 64), f32)
    for j2 in range(14):
        for c in range(3):
            CS1[(2 * j2) * 3 + c, j2 * 3 + c] = 1.0
    CS2 = np.zeros((144, 128), f32)
    for q2 in range(5):
        for co in range(16):
            CS2[(2 * q2) * 16 + co, q2 * 16 + co] = 1.0

    # fc1 regrouped: kernel feature column = h*128 + wsp*16 + co, matching the
    # PyTorch NCHW flatten index co*25 + h*5 + wsp.
    FC1W = np.zeros((640, 120), f32)
    for h in range(5):
        for wsp in range(5):
            for co in range(16):
                FC1W[h * 128 + wsp * 16 + co, :] = fc1w[:, co * 25 + h * 5 + wsp]

    slab = np.zeros((_R_TOT, _SLAB_COLS), f32)
    slab[_R_G1:_R_G1 + 256, 0:336] = G1
    slab[_R_G2:_R_G2 + 384, 0:320] = G2
    slab[_R_FC1:_R_FC1 + 640, 0:120] = FC1W
    slab[_R_CS1:_R_CS1 + 81, 0:64] = CS1
    slab[_R_CS2:_R_CS2 + 144, 0:128] = CS2
    slab[_R_FC2:_R_FC2 + 120, 0:84] = fc2w.T
    slab[_R_FC3:_R_FC3 + 84, 0:10] = fc3w.T
    slab[_R_CB1, 0:336] = CB1
    slab[_R_CB2, 0:320] = CB2
    slab[_R_FB1, 0:120] = np.asarray(params["fc1_b"], f32)
    slab[_R_FB2, 0:84] = np.asarray(params["fc2_b"], f32)
    slab[_R_FB3, 0:10] = np.asarray(params["fc3_b"], f32)
    return jnp.asarray(slab)


# ----------------------------------------------------------------------------
# Forward wrapper: single pallas_call over a batch-tiled, parallel grid.
# ----------------------------------------------------------------------------
def _pick_tb(batch):
    # Largest batch tile (<=16) dividing B, preferring >=2 grid steps so both
    # v7x TensorCores get work.
    for tb in (16, 8, 4, 2):
        if batch % tb == 0 and batch // tb >= 2:
            return tb
    for tb in (16, 8, 4, 2):
        if batch % tb == 0:
            return tb
    return 1


def lenet_forward(slab, x):
    """x: NCHW (B, 1, 32, 32) -> logits (B, 10) float32."""
    B = x.shape[0]
    tb = _pick_tb(B)
    n1 = tb * 8
    # Fold groups of 4 image rows into lanes: XQ[b*8+t, r*32+w] = x[b,0,4t+r,w].
    xq = x.astype(jnp.float32).reshape(B * 8, 128)

    macs_per_row = (256 * 336 + 2 * 81 * 64 + 384 * 320 + 144 * 128
                    + 640 * 120 + 120 * 84 + 84 * 10)
    cost = pl.CostEstimate(
        flops=2 * macs_per_row * B * 8,
        transcendentals=0,
        bytes_accessed=(B * 8 * 128 + B * 8 * 10 + _R_TOT * _SLAB_COLS) * 4)

    out = pl.pallas_call(
        _lenet_kernel,
        out_shape=jax.ShapeDtypeStruct((B * 8, 10), jnp.float32),
        grid=(B // tb,),
        in_specs=[pl.BlockSpec((n1, 128), lambda b: (b, 0)),
                  pl.BlockSpec((_R_TOT, _SLAB_COLS), lambda b: (0, 0))],
        out_specs=pl.BlockSpec((n1, 10), lambda b: (b, 0)),
        compiler_params=pltpu.CompilerParams(
            dimension_semantics=("parallel",)),
        cost_estimate=cost,
    )(xq, slab)
    # Row 0 of each image's 8-row block holds the real logits.
    return out.reshape(B, 8, 10)[:, 0, :]


# ----------------------------------------------------------------------------
# Deterministic synthetic parameters + pure-JAX reference for validation.
# ----------------------------------------------------------------------------
def init_lenet_params(key):
    ks = jax.random.split(key, 10)

    def u(k, shape, fan_in):
        bound = 1.0 / jnp.sqrt(fan_in)
        return jax.random.uniform(k, shape, jnp.float32, -bound, bound)

    return {
        "conv1_w": u(ks[0], (3, 1, 5, 5), 1 * 5 * 5),
        "conv1_b": u(ks[1], (3,), 1 * 5 * 5),
        "conv2_w": u(ks[2], (16, 3, 5, 5), 3 * 5 * 5),
        "conv2_b": u(ks[3], (16,), 3 * 5 * 5),
        "fc1_w": u(ks[4], (120, 400), 400),
        "fc1_b": u(ks[5], (120,), 400),
        "fc2_w": u(ks[6], (84, 120), 120),
        "fc2_b": u(ks[7], (84,), 120),
        "fc3_w": u(ks[8], (10, 84), 84),
        "fc3_b": u(ks[9], (10,), 84),
    }


def lenet_reference(params, x):
    def conv2d(h, w, b):
        y = jax.lax.conv_general_dilated(
            h, w, window_strides=(1, 1), padding="VALID",
            dimension_numbers=("NCHW", "OIHW", "NCHW"))
        return y + b[None, :, None, None]

    def maxpool2(h):
        return jax.lax.reduce_window(
            h, -jnp.inf, jax.lax.max,
            window_dimensions=(1, 1, 2, 2), window_strides=(1, 1, 2, 2),
            padding="VALID")

    h = maxpool2(jax.nn.relu(conv2d(x, params["conv1_w"], params["conv1_b"])))
    h = maxpool2(jax.nn.relu(conv2d(h, params["conv2_w"], params["conv2_b"])))
    h = h.reshape(x.shape[0], -1)
    h = jax.nn.relu(h @ params["fc1_w"].T + params["fc1_b"])
    h = jax.nn.relu(h @ params["fc2_w"].T + params["fc2_b"])
    return h @ params["fc3_w"].T + params["fc3_b"]


if __name__ == "__main__":
    key = jax.random.PRNGKey(0)
    k_params, k_x = jax.random.split(key)

    params = init_lenet_params(k_params)
    # LeNet's fc1 (16*5*5 inputs) implies 32x32 inputs; batch 16 -> grid of 2
    # parallel steps of 8 images each.
    x = jax.random.normal(k_x, (16, 1, 32, 32), dtype=jnp.float32)

    slab = pack_lenet_params(params)
    logits = jax.block_until_ready(jax.jit(lenet_forward)(slab, x))

    assert logits.shape == (16, 10), logits.shape
    assert bool(jnp.isfinite(logits).all())

    ref = lenet_reference(params, x)
    max_err = float(jnp.max(jnp.abs(logits - ref)))
    assert jnp.allclose(logits, ref, atol=1e-3, rtol=1e-3), max_err

    print("KERNEL_OK")
</pallas_src>

<mosaic_0001>
module attributes {stable_mosaic.version = 11 : i64} {
  func.func @_lenet_kernel(%arg0: i32, %arg1: memref<64x128xf32, #tpu.memory_space<vmem>>, %arg2: memref<1728x384xf32, #tpu.memory_space<vmem>>, %arg3: memref<64x10xf32, #tpu.memory_space<vmem>>) attributes {dimension_semantics = [#tpu.dimension_semantics<parallel>], iteration_bounds = array<i64: 2>, scalar_prefetch = 0 : i64, scratch_operands = 0 : i64, tpu.core_type = #tpu.core_type<tc>, window_params = [{transform_indices = @transform_0, window_bounds = array<i64: 64, 128>}, {pipeline_mode = #tpu.pipeline_mode<synchronous>, transform_indices = @transform_1, window_bounds = array<i64: 1728, 384>}, {transform_indices = @transform_2, window_bounds = array<i64: 64, 10>}]} {
    %c0 = arith.constant 0 : index
    %c0_0 = arith.constant 0 : index
    %0 = vector.load %arg1[%c0, %c0_0] : memref<64x128xf32, #tpu.memory_space<vmem>>, vector<64x128xf32>
    %cst = arith.constant 0.000000e+00 : f32
    %1 = vector.broadcast %cst : f32 to vector<8x128xf32>
    %2 = tpu.concatenate %0, %1 in 0 : vector<64x128xf32>, vector<8x128xf32> -> vector<72x128xf32>
    %3 = vector.extract_strided_slice %2 {offsets = [0, 0], sizes = [64, 128], strides = [1, 1]} : vector<72x128xf32> to vector<64x128xf32>
    %4 = vector.extract_strided_slice %2 {offsets = [1, 0], sizes = [64, 128], strides = [1, 1]} : vector<72x128xf32> to vector<64x128xf32>
    %5 = tpu.concatenate %3, %4 in 1 : vector<64x128xf32>, vector<64x128xf32> -> vector<64x256xf32>
    %c0_1 = arith.constant 0 : index
    %c0_2 = arith.constant 0 : index
    %6 = vector.load %arg2[%c0_1, %c0_2] : memref<1728x384xf32, #tpu.memory_space<vmem>>, vector<256x336xf32>
    %cst_3 = arith.constant dense<0.000000e+00> : vector<64x336xf32>
    %7 = tpu.matmul %5, %6, %cst_3 {dimension_numbers = #tpu.dot_dimension_numbers<[1], [0], [0], [1], [0, 0, 1, 1], [], []>} : vector<64x256xf32>, vector<256x336xf32>, vector<64x336xf32> -> vector<64x336xf32>
    %c1720 = arith.constant 1720 : index
    %c0_4 = arith.constant 0 : index
    %8 = vector.load %arg2[%c1720, %c0_4] : memref<1728x384xf32, #tpu.memory_space<vmem>>, vector<1x336xf32>
    %9 = vector.broadcast %8 : vector<1x336xf32> to vector<64x336xf32>
    %10 = arith.addf %7, %9 : vector<64x336xf32>
    %cst_5 = arith.constant 0.000000e+00 : f32
    %11 = vector.broadcast %cst_5 : f32 to vector<64x336xf32>
    %12 = arith.maximumf %10, %11 : vector<64x336xf32>
    %c1280 = arith.constant 1280 : index
    %c0_6 = arith.constant 0 : index
    %13 = vector.load %arg2[%c1280, %c0_6] : memref<1728x384xf32, #tpu.memory_space<vmem>>, vector<81x64xf32>
    %14 = vector.extract_strided_slice %12 {offsets = [0, 0], sizes = [64, 84], strides = [1, 1]} : vector<64x336xf32> to vector<64x84xf32>
    %15 = vector.extract_strided_slice %12 {offsets = [0, 84], sizes = [64, 84], strides = [1, 1]} : vector<64x336xf32> to vector<64x84xf32>
    %16 = arith.maximumf %14, %15 : vector<64x84xf32>
    %17 = vector.extract_strided_slice %12 {offsets = [0, 168], sizes = [64, 84], strides = [1, 1]} : vector<64x336xf32> to vector<64x84xf32>
    %18 = vector.extract_strided_slice %12 {offsets = [0, 252], sizes = [64, 84], strides = [1, 1]} : vector<64x336xf32> to vector<64x84xf32>
    %19 = arith.maximumf %17, %18 : vector<64x84xf32>
    %20 = vector.extract_strided_slice %16 {offsets = [0, 0], sizes = [64, 81], strides = [1, 1]} : vector<64x84xf32> to vector<64x81xf32>
    %21 = vector.extract_strided_slice %16 {offsets = [0, 3], sizes = [64, 81], strides = [1, 1]} : vector<64x84xf32> to vector<64x81xf32>
    %22 = arith.maximumf %20, %21 : vector<64x81xf32>
    %cst_7 = arith.constant dense<0.000000e+00> : vector<64x64xf32>
    %23 = tpu.matmul %22, %13, %cst_7 {dimension_numbers = #tpu.dot_dimension_numbers<[1], [0], [0], [1], [0, 0, 1, 1], [], []>} : vector<64x81xf32>, vector<81x64xf32>, vector<64x64xf32> -> vector<64x64xf32>
    %24 = vector.extract_strided_slice %19 {offsets = [0, 0], sizes = [64, 81], strides = [1, 1]} : vector<64x84xf32> to vector<64x81xf32>
    %25 = vector.extract_strided_slice %19 {offsets = [0, 3], sizes = [64, 81], strides = [1, 1]} : vector<64x84xf32> to vector<64x81xf32>
    %26 = arith.maximumf %24, %25 : vector<64x81xf32>
    %cst_8 = arith.constant dense<0.000000e+00> : vector<64x64xf32>
    %27 = tpu.matmul %26, %13, %cst_8 {dimension_numbers = #tpu.dot_dimension_numbers<[1], [0], [0], [1], [0, 0, 1, 1], [], []>} : vector<64x81xf32>, vector<81x64xf32>, vector<64x64xf32> -> vector<64x64xf32>
    %28 = tpu.concatenate %23, %27 in 1 : vector<64x64xf32>, vector<64x64xf32> -> vector<64x128xf32>
    %cst_9 = arith.constant 0.000000e+00 : f32
    %29 = vector.broadcast %cst_9 : f32 to vector<8x128xf32>
    %30 = tpu.concatenate %28, %29 in 0 : vector<64x128xf32>, vector<8x128xf32> -> vector<72x128xf32>
    %31 = vector.extract_strided_slice %30 {offsets = [0, 0], sizes = [64, 128], strides = [1, 1]} : vector<72x128xf32> to vector<64x128xf32>
    %32 = vector.extract_strided_slice %30 {offsets = [1, 0], sizes = [64, 128], strides = [1, 1]} : vector<72x128xf32> to vector<64x128xf32>
    %33 = vector.extract_strided_slice %30 {offsets = [2, 0], sizes = [64, 128], strides = [1, 1]} : vector<72x128xf32> to vector<64x128xf32>
    %34 = tpu.concatenate %31, %32, %33 in 1 : vector<64x128xf32>, vector<64x128xf32>, vector<64x128xf32> -> vector<64x384xf32>
    %c256 = arith.constant 256 : index
    %c0_10 = arith.constant 0 : index
    %35 = vector.load %arg2[%c256, %c0_10] : memref<1728x384xf32, #tpu.memory_space<vmem>>, vector<384x320xf32>
    %cst_11 = arith.constant dense<0.000000e+00> : vector<64x320xf32>
    %36 = tpu.matmul %34, %35, %cst_11 {dimension_numbers = #tpu.dot_dimension_numbers<[1], [0], [0], [1], [0, 0, 1, 1], [], []>} : vector<64x384xf32>, vector<384x320xf32>, vector<64x320xf32> -> vector<64x320xf32>
    %c1721 = arith.constant 1721 : index
    %c0_12 = arith.constant 0 : index
    %37 = vector.load %arg2[%c1721, %c0_12] : memref<1728x384xf32, #tpu.memory_space<vmem>>, vector<1x320xf32>
    %38 = vector.broadcast %37 : vector<1x320xf32> to vector<64x320xf32>
    %39 = arith.addf %36, %38 : vector<64x320xf32>
    %cst_13 = arith.constant 0.000000e+00 : f32
    %40 = vector.broadcast %cst_13 : f32 to vector<64x320xf32>
    %41 = arith.maximumf %39, %40 : vector<64x320xf32>
    %c1368 = arith.constant 1368 : index
    %c0_14 = arith.constant 0 : index
    %42 = vector.load %arg2[%c1368, %c0_14] : memref<1728x384xf32, #tpu.memory_space<vmem>>, vector<144x128xf32>
    %43 = vector.extract_strided_slice %41 {offsets = [0, 0], sizes = [64, 160], strides = [1, 1]} : vector<64x320xf32> to vector<64x160xf32>
    %44 = vector.extract_strided_slice %41 {offsets = [0, 160], sizes = [64, 160], strides = [1, 1]} : vector<64x320xf32> to vector<64x160xf32>
    %45 = arith.maximumf %43, %44 : vector<64x160xf32>
    %46 = vector.extract_strided_slice %45 {offsets = [0, 0], sizes = [64, 144], strides = [1, 1]} : vector<64x160xf32> to vector<64x144xf32>
    %47 = vector.extract_strided_slice %45 {offsets = [0, 16], sizes = [64, 144], strides = [1, 1]} : vector<64x160xf32> to vector<64x144xf32>
    %48 = arith.maximumf %46, %47 : vector<64x144xf32>
    %cst_15 = arith.constant dense<0.000000e+00> : vector<64x128xf32>
    %49 = tpu.matmul %48, %42, %cst_15 {dimension_numbers = #tpu.dot_dimension_numbers<[1], [0], [0], [1], [0, 0, 1, 1], [], []>} : vector<64x144xf32>, vector<144x128xf32>, vector<64x128xf32> -> vector<64x128xf32>
    %cst_16 = arith.constant 0.000000e+00 : f32
    %50 = vector.broadcast %cst_16 : f32 to vector<8x128xf32>
    %51 = tpu.concatenate %49, %50 in 0 : vector<64x128xf32>, vector<8x128xf32> -> vector<72x128xf32>
    %52 = vector.extract_strided_slice %51 {offsets = [0, 0], sizes = [64, 128], strides = [1, 1]} : vector<72x128xf32> to vector<64x128xf32>
    %53 = vector.extract_strided_slice %51 {offsets = [1, 0], sizes = [64, 128], strides = [1, 1]} : vector<72x128xf32> to vector<64x128xf32>
    %54 = vector.extract_strided_slice %51 {offsets = [2, 0], sizes = [64, 128], strides = [1, 1]} : vector<72x128xf32> to vector<64x128xf32>
    %55 = vector.extract_strided_slice %51 {offsets = [3, 0], sizes = [64, 128], strides = [1, 1]} : vector<72x128xf32> to vector<64x128xf32>
    %56 = vector.extract_strided_slice %51 {offsets = [4, 0], sizes = [64, 128], strides = [1, 1]} : vector<72x128xf32> to vector<64x128xf32>
    %57 = tpu.concatenate %52, %53, %54, %55, %56 in 1 : vector<64x128xf32>, vector<64x128xf32>, vector<64x128xf32>, vector<64x128xf32>, vector<64x128xf32> -> vector<64x640xf32>
    %c640 = arith.constant 640 : index
    %c0_17 = arith.constant 0 : index
    %58 = vector.load %arg2[%c640, %c0_17] : memref<1728x384xf32, #tpu.memory_space<vmem>>, vector<640x120xf32>
    %cst_18 = arith.constant dense<0.000000e+00> : vector<64x120xf32>
    %59 = tpu.matmul %57, %58, %cst_18 {dimension_numbers = #tpu.dot_dimension_numbers<[1], [0], [0], [1], [0, 0, 1, 1], [], []>} : vector<64x640xf32>, vector<640x120xf32>, vector<64x120xf32> -> vector<64x120xf32>
    %c1722 = arith.constant 1722 : index
    %c0_19 = arith.constant 0 : index
    %60 = vector.load %arg2[%c1722, %c0_19] : memref<1728x384xf32, #tpu.memory_space<vmem>>, vector<1x120xf32>
    %61 = vector.broadcast %60 : vector<1x120xf32> to vector<64x120xf32>
    %62 = arith.addf %59, %61 : vector<64x120xf32>
    %cst_20 = arith.constant 0.000000e+00 : f32
    %63 = vector.broadcast %cst_20 : f32 to vector<64x120xf32>
    %64 = arith.maximumf %62, %63 : vector<64x120xf32>
    %c1512 = arith.constant 1512 : index
    %c0_21 = arith.constant 0 : index
    %65 = vector.load %arg2[%c1512, %c0_21] : memref<1728x384xf32, #tpu.memory_space<vmem>>, vector<120x84xf32>
    %cst_22 = arith.constant dense<0.000000e+00> : vector<64x84xf32>
    %66 = tpu.matmul %64, %65, %cst_22 {dimension_numbers = #tpu.dot_dimension_numbers<[1], [0], [0], [1], [0, 0, 1, 1], [], []>} : vector<64x120xf32>, vector<120x84xf32>, vector<64x84xf32> -> vector<64x84xf32>
    %c1723 = arith.constant 1723 : index
    %c0_23 = arith.constant 0 : index
    %67 = vector.load %arg2[%c1723, %c0_23] : memref<1728x384xf32, #tpu.memory_space<vmem>>, vector<1x84xf32>
    %68 = vector.broadcast %67 : vector<1x84xf32> to vector<64x84xf32>
    %69 = arith.addf %66, %68 : vector<64x84xf32>
    %cst_24 = arith.constant 0.000000e+00 : f32
    %70 = vector.broadcast %cst_24 : f32 to vector<64x84xf32>
    %71 = arith.maximumf %69, %70 : vector<64x84xf32>
    %c1632 = arith.constant 1632 : index
    %c0_25 = arith.constant 0 : index
    %72 = vector.load %arg2[%c1632, %c0_25] : memref<1728x384xf32, #tpu.memory_space<vmem>>, vector<84x10xf32>
    %cst_26 = arith.constant dense<0.000000e+00> : vector<64x10xf32>
    %73 = tpu.matmul %71, %72, %cst_26 {dimension_numbers = #tpu.dot_dimension_numbers<[1], [0], [0], [1], [0, 0, 1, 1], [], []>} : vector<64x84xf32>, vector<84x10xf32>, vector<64x10xf32> -> vector<64x10xf32>
    %c1724 = arith.constant 1724 : index
    %c0_27 = arith.constant 0 : index
    %74 = vector.load %arg2[%c1724, %c0_27] : memref<1728x384xf32, #tpu.memory_space<vmem>>, vector<1x10xf32>
    %75 = vector.broadcast %74 : vector<1x10xf32> to vector<64x10xf32>
    %76 = arith.addf %73, %75 : vector<64x10xf32>
    %c0_28 = arith.constant 0 : index
    %c0_29 = arith.constant 0 : index
    %77 = vector.load %arg3[%c0_28, %c0_29] : memref<64x10xf32, #tpu.memory_space<vmem>>, vector<64x10xf32>
    tpu.vector_store %arg3[%c0_28, %c0_29], %76 {strides = array<i32>} : memref<64x10xf32, #tpu.memory_space<vmem>>, vector<64x10xf32>,
    return
  }
  func.func @transform_0(%arg0: i32) -> (i32, i32) {
    %c0_i32 = arith.constant 0 : i32
    %c0_i32_0 = arith.constant 0 : i32
    return %arg0, %c0_i32 : i32, i32
  }
  func.func @transform_1(%arg0: i32) -> (i32, i32) {
    %c0_i32 = arith.constant 0 : i32
    %c0_i32_0 = arith.constant 0 : i32
    %c0_i32_1 = arith.constant 0 : i32
    return %c0_i32, %c0_i32_0 : i32, i32
  }
  func.func @transform_2(%arg0: i32) -> (i32, i32) {
    %c0_i32 = arith.constant 0 : i32
    %c0_i32_0 = arith.constant 0 : i32
    return %arg0, %c0_i32 : i32, i32
  }
}

</mosaic_0001>

<bundles_post_ra>
// kernel: lenet_forward.1
= control target key start
LH: loop header
LB: loop body
LE: loop exit
PB: predicated region body
PF: predicated region fallthrough
CT: control target
= control target key end

     0   :  { %7 = vsyncpa [#allocation3], 0  ;;  %s4226_s9 = smov 0   ;;  %s5054_s0 = inlined_call_operand.vmem [shape: f32[128,128], index: 0, kind: input, shape index: {}]   ;;  %s5055_s1 = inlined_call_operand.hbm [shape: f32[1728,384], index: 1, kind: input, shape index: {}]   ;;  %s5056_s2 = inlined_call_operand.vmem [shape: f32[128,10], index: 2, kind: output, shape index: {}]  }
   0x1 LB: > { %s2987_s10 = sadd.s32 4294967295, %s4198_s9   ;;  %p2989_p0 = scmp.ge.s32.totalorder %s4198_s9, 1  ;;  %s4198_s9 = sphi %s4226_s9, %s13_s9  }
   0x2   : > { %p91_p1 = scmp.lt.s32.totalorder %s4198_s9, 3  ;;  %s4200_s11 = smov [#allocation2]  }
   0x3   : > { %s103_s12 = sshll.u32 %s4200_s11, 4  ;;  %p4240_p3 = scmp.eq.s32.totalorder %s2987_s10, 0  ;;  %s104_s12 = int_to_ptr.vmem [resolvable:$true] %s103_s12 }
   0x4   : > { %p4234_p2 = pnand %p2989_p0, %p91_p1  ;;  %s4160_s18 = scalar_lea.hbm %s5055_s1, 82944 }
   0x5   : > { %s5061_s14 = scalar_select %p4240_p3, 1, 0 }
   0x6   : > { %s5060_s13 = scalar_select %p4234_p2, 1, 0 }
   0x7   : > { %p4130_p4 = pneg %p4234_p2  ;;  %p4161_p6 = scmp.ne.s32.totalorder %s5055_s1, %s4160_s18 }
   0x8   : > { %p4167_p10 = scmp.lt.u32.totalorder %s4160_s18, %s5055_s1 }
   0x9   : > { %p4248_p5 = pnand %p4240_p3, %p4130_p4 }
   0xb   : > { %p4162_p7 = pneg %p4248_p5 }
   0xd   : > { %p4163_p8 = pnand %p4162_p7, %p4161_p6 }
   0xf   : > { %p4164_p9 = pneg %p4163_p8 }
  0x11   : > { %p4169_p11 = pnand %p4167_p10, %p4164_p9 }
  0x13   : > { %4172 = shalt.err (!%p4169_p11)
}
  0x14   : > { %s4173_s23 = scalar_lea.vmem %s104_s12, 82944  ;;  %p4181_p1 = scmp.lt.s32.totalorder %s104_s12, %s104_s12 }
  0x15   : > { %p4174_p12 = scmp.ne.s32.totalorder %s104_s12, %s4173_s23  ;;  %p4182_p4 = scmp.lt.s32.totalorder %s4173_s23, %s4173_s23 }
  0x17   : > { %p4176_p13 = pnand %p4174_p12, %p4162_p7  ;;  %p4183_p3 = por %p4182_p4, %p4181_p1 }
  0x19   : > { %p4177_p0 = pneg %p4176_p13 }
  0x1b   : > { %p4184_p2 = pnand %p4183_p3, %p4177_p0 }
  0x1d   : > { %4187 = shalt.err (!%p4184_p2)
}
  0x1e   : > { %s4201_s24 = smov 384   ;;  %s4202_s25 = smov 24  }
  0x1f   : > { %4133 = dma.hbm_to_vmem [thread:$0]  (!%p4248_p5), %s5055_s1, 82944, %s104_s12, [#allocation3], %s4201_s24, %s4201_s24, %s4202_s25  }
  0x20   : > { %p5063_p6 = scmp.ne.s32.totalorder %s5060_s13, 0 }
  0x21   : > { %p5064_p8 = scmp.ne.s32.totalorder (!%p5063_p6), %s5061_s14, 0 }
  0x22   : > { %128 = sbr.rel (%p5063_p6) target bundleno = 2418 (0x972), region = 28 }
  0x29   : > { %4193 = dma.done.wait (%p5064_p8), [#allocation3], 82944  }
  0x2a   : > { %4195 = vsyncadd (%p5064_p8), [#allocation3], 4294884352  ;;  %v206_v0 = vld [vmem:[#allocation2 + $0x8] sm:$0xff]  ;;  %v209_v1 = vld [vmem:[#allocation2 + $0x20] sm:$0xff]  ;;  %s4276_s28 = sshll.u32 %s2987_s10, 3  ;;  %vm179_vm0 = vcmask 1046528  }
  0x2b   : > { %v205_v2 = vld [vmem:[#allocation2] sm:$0xff]  ;;  %v3627_v3 = vpack.c.bf16 %v209_v1, %v206_v0  ;;  %v208_v4 = vld [vmem:[#allocation2 + $0x18] sm:$0xff]  ;;  %v215_v6 = vld [vmem:[#allocation2 + $0x50] sm:$0xff]  ;;  %p151_p2 = scmp.lt.s32.totalorder %s4276_s28, 15  ;;  %s4204_s5 = smov 44   ;;  %vm620_vm1 = vcmask 359424  }
  0x2c   : > { %v212_v5 = vld [vmem:[#allocation2 + $0x38] sm:$0xff]  ;;  %v3629_v7 = vpack.c.bf16 %v208_v4, %v205_v2  ;;  %v211_v9 = vld [vmem:[#allocation2 + $0x30] sm:$0xff]  ;;  %v214_v10 = vld [vmem:[#allocation2 + $0x48] sm:$0xff]  ;;  %s4205_s6 = smov 125   ;;  %vm758_vm2 = vcmask 1040384   ;;  %s4206_s7 = smov 88  }
  0x2d   : > { %v3631_v8 = vpack.c.bf16 %v215_v6, %v212_v5  ;;  %v218_v11 = vld [vmem:[#allocation2 + $0x68] sm:$0xff]  ;;  %3628 = vmatprep.subr.bf16.mxu0 %v3627_v3  ;;  %v221_v12 = vld [vmem:[#allocation2 + $0x80] sm:$0xff]  ;;  %v3633_v13 = vpack.c.bf16 %v214_v10, %v211_v9  ;;  %v220_v16 = vld [vmem:[#allocation2 + $0x78] sm:$0xff]  ;;  %s5066_s28 = smov (!%p151_p2, %s4276_s28), 15  ;;  %vm733_vm3 = vcmask 662528   ;;  %s4207_s8 = smov 64  }
  0x2e   : > { %3630 = vmatpush1.bf16.msra.mxu0 %v3629_v7  ;;  %v3635_v14 = vpack.c.bf16 %v221_v12, %v218_v11  ;;  %v217_v15 = vld [vmem:[#allocation2 + $0x60] sm:$0xff]  ;;  %v224_v17 = vld [vmem:[#allocation2 + $0x98] sm:$0xff]  ;;  %v227_v18 = vld [vmem:[#allocation2 + $0xb0] sm:$0xff]  ;;  %s2995_s29 = sshll.u32 %s5066_s28, 3  ;;  %vm1084_vm4 = vcmask 523264   ;;  %vm1125_vm5 = vcmask 1045504  }
  0x2f   : > { %3632 = vmatprep.subr.bf16.mxu0 %v3631_v8  ;;  %v3637_v19 = vpack.c.bf16 %v220_v16, %v217_v15  ;;  %v255_v20 = vld [vmem:[#allocation2 + $0x190] sm:$0xff]  ;;  %v258_v21 = vld [vmem:[#allocation2 + $0x1a8] sm:$0xff]  ;;  %v3639_v23 = vpack.c.bf16 %v227_v18, %v224_v17  ;;  %v233_v29 = vld [vmem:[#allocation2 + $0xe0] sm:$0xff]  ;;  %s4290_s4 = scalar_lea.vmem %s5054_s0, %s2995_s29  ;;  %s4208_s10 = smov 96   ;;  %vm1839_vm6 = vcmask 785408   ;;  %vm1928_vm7 = vcmask 916480  }
  0x30   : > { %v207_v22 = vld [vmem:[#allocation2 + $0x10] sm:$0xff]  ;;  %v226_v25 = vld [vmem:[#allocation2 + $0xa8] sm:$0xff]  ;;  %v3691_v26 = vpack.c.bf16 %v258_v21, %v255_v20  ;;  %v261_v31 = vld [vmem:[#allocation2 + $0x1c0] sm:$0xff]  ;;  %s4210_s11 = smov 112   ;;  %vm1969_vm8 = vcmask 130048   ;;  %vm2155_vm9 = vcmask 1044480   ;;  %s160_s14 = scalar_lea.vmem %s5056_s2, %s2995_s29 }
  0x31   : > { %v223_v24 = vld [vmem:[#allocation2 + $0x90] sm:$0xff]  ;;  %v210_v27 = vld [vmem:[#allocation2 + $0x28] sm:$0xff]  ;;  %v264_v32 = vld [vmem:[#allocation2 + $0x1d8] sm:$0xff]  ;;  %vm2181_vm10 = vcmask 1043456   ;;  %vm2627_vm11 = vcmask 982016   ;;  %vm2777_vm12 = vcmask 687104  }
  0x32   : > { %3634 = vmatpush1.bf16.msra.mxu0 %v3633_v13  ;;  %v230_v28 = vld [vmem:[#allocation2 + $0xc8] sm:$0xff]  ;;  %v3693_v30 = vpack.c.bf16 %v210_v27, %v207_v22  ;;  %3692 = vmatprep.subr.bf16.mxu1 %v3691_v26  ;;  %v213_v33 = vld [vmem:[#allocation2 + $0x40] sm:$0xff]  ;;  %v216_v34 = vld [vmem:[#allocation2 + $0x58] sm:$0xff]  ;;  %v3641_v35 = vpack.c.bf16 %v226_v25, %v223_v24  ;;  %v3695_v38 = vpack.c.bf16 %v264_v32, %v261_v31  ;;  %vm2910_vm13 = vcmask 80896  }
  0x33   : > { %3636 = vmatprep.subr.bf16.mxu0 %v3635_v14  ;;  %v229_v36 = vld [vmem:[#allocation2 + $0xc0] sm:$0xff]  ;;  %v232_v37 = vld [vmem:[#allocation2 + $0xd8] sm:$0xff]  ;;  %v3697_v39 = vpack.c.bf16 %v216_v34, %v213_v33  ;;  %v3643_v40 = vpack.c.bf16 %v233_v29, %v230_v28  ;;  %v267_v42 = vld [vmem:[#allocation2 + $0x1f0] sm:$0xff] }
  0x34   : > { %3694 = vmatpush3.bf16.msra.mxu1 %v3693_v30  ;;  %v236_v41 = vld [vmem:[#allocation2 + $0xf8] sm:$0xff]  ;;  %v270_v43 = vld [vmem:[#allocation2 + $0x208] sm:$0xff]  ;;  %v239_v44 = vld [vmem:[#allocation2 + $0x110] sm:$0xff]  ;;  %v3645_v48 = vpack.c.bf16 %v232_v37, %v229_v36 }
  0x35   : > { %3696 = vmatprep.subr.bf16.mxu1 %v3695_v38  ;;  %v3699_v45 = vpack.c.bf16 %v270_v43, %v267_v42  ;;  %v219_v46 = vld [vmem:[#allocation2 + $0x70] sm:$0xff]  ;;  %v222_v47 = vld [vmem:[#allocation2 + $0x88] sm:$0xff]  ;;  %v273_v51 = vld [vmem:[#allocation2 + $0x220] sm:$0xff]  ;;  %v3647_v53 = vpack.c.bf16 %v239_v44, %v236_v41 }
  0x36   : > { %3638 = vmatpush1.bf16.msra.mxu0 %v3637_v19  ;;  %v235_v49 = vld [vmem:[#allocation2 + $0xf0] sm:$0xff]  ;;  %v3701_v50 = vpack.c.bf16 %v222_v47, %v219_v46  ;;  %v276_v52 = vld [vmem:[#allocation2 + $0x238] sm:$0xff]  ;;  %v238_v54 = vld [vmem:[#allocation2 + $0x108] sm:$0xff] }
  0x37   : > { %3640 = vmatprep.subr.bf16.mxu0 %v3639_v23  ;;  %v3703_v55 = vpack.c.bf16 %v276_v52, %v273_v51  ;;  %v225_v56 = vld [vmem:[#allocation2 + $0xa0] sm:$0xff]  ;;  %v228_v57 = vld [vmem:[#allocation2 + $0xb8] sm:$0xff]  ;;  %v242_v58 = vld [vmem:[#allocation2 + $0x128] sm:$0xff]  ;;  %v3649_v62 = vpack.c.bf16 %v238_v54, %v235_v49 }
  0x38   : > { %3698 = vmatpush3.bf16.msra.mxu1 %v3697_v39  ;;  %v245_v59 = vld [vmem:[#allocation2 + $0x140] sm:$0xff]  ;;  %v279_v60 = vld [vmem:[#allocation2 + $0x250] sm:$0xff]  ;;  %v282_v61 = vld [vmem:[#allocation2 + $0x268] sm:$0xff]  ;;  %v3705_v1 = vpack.c.bf16 %v228_v57, %v225_v56 }
  0x39   : > { %3700 = vmatprep.subr.bf16.mxu1 %v3699_v45  ;;  %v241_v63 = vld [vmem:[#allocation2 + $0x120] sm:$0xff]  ;;  %v244_v0 = vld [vmem:[#allocation2 + $0x138] sm:$0xff]  ;;  %v3651_v2 = vpack.c.bf16 %v245_v59, %v242_v58  ;;  %v3707_v4 = vpack.c.bf16 %v282_v61, %v279_v60  ;;  %v231_v5 = vld [vmem:[#allocation2 + $0xd0] sm:$0xff] }
  0x3a   : > { %3642 = vmatpush1.bf16.msra.mxu0 %v3641_v35  ;;  %v248_v3 = vld [vmem:[#allocation2 + $0x158] sm:$0xff]  ;;  %v234_v6 = vld [vmem:[#allocation2 + $0xe8] sm:$0xff]  ;;  %v251_v7 = vld [vmem:[#allocation2 + $0x170] sm:$0xff]  ;;  %v3653_v10 = vpack.c.bf16 %v244_v0, %v241_v63 }
  0x3b   : > { %3644 = vmatprep.subr.bf16.mxu0 %v3643_v40  ;;  %v285_v8 = vld [vmem:[#allocation2 + $0x280] sm:$0xff]  ;;  %v288_v9 = vld [vmem:[#allocation2 + $0x298] sm:$0xff]  ;;  %v247_v11 = vld [vmem:[#allocation2 + $0x150] sm:$0xff]  ;;  %v3709_v13 = vpack.c.bf16 %v234_v6, %v231_v5  ;;  %v3655_v14 = vpack.c.bf16 %v251_v7, %v248_v3 }
  0x3c   : > { %3702 = vmatpush3.bf16.msra.mxu1 %v3701_v50  ;;  %v250_v12 = vld [vmem:[#allocation2 + $0x168] sm:$0xff]  ;;  %v3711_v16 = vpack.c.bf16 %v288_v9, %v285_v8  ;;  %v237_v17 = vld [vmem:[#allocation2 + $0x100] sm:$0xff]  ;;  %v240_v18 = vld [vmem:[#allocation2 + $0x118] sm:$0xff] }
  0x3d   : > { %3704 = vmatprep.subr.bf16.mxu1 %v3703_v55  ;;  %v254_v15 = vld [vmem:[#allocation2 + $0x188] sm:$0xff]  ;;  %v257_v19 = vld [vmem:[#allocation2 + $0x1a0] sm:$0xff]  ;;  %v291_v20 = vld [vmem:[#allocation2 + $0x2b0] sm:$0xff]  ;;  %v3657_v23 = vpack.c.bf16 %v250_v12, %v247_v11  ;;  %v3713_v26 = vpack.c.bf16 %v240_v18, %v237_v17 }
  0x3e   : > { %3646 = vmatpush1.bf16.msra.mxu0 %v3645_v48  ;;  %v294_v21 = vld [vmem:[#allocation2 + $0x2c8] sm:$0xff]  ;;  %v253_v22 = vld [vmem:[#allocation2 + $0x180] sm:$0xff]  ;;  %v256_v24 = vld [vmem:[#allocation2 + $0x198] sm:$0xff]  ;;  %v3659_v28 = vpack.c.bf16 %v257_v19, %v254_v15 }
  0x3f   : > { %3648 = vmatprep.subr.bf16.mxu0 %v3647_v53  ;;  %v260_v25 = vld [vmem:[#allocation2 + $0x1b8] sm:$0xff]  ;;  %v4293_v27 = vld [vmem:[%s4290_s4] sm:$0xff]  ;;  %v3715_v29 = vpack.c.bf16 %v294_v21, %v291_v20  ;;  %v243_v30 = vld [vmem:[#allocation2 + $0x130] sm:$0xff]  ;;  %v3661_v38 = vpack.c.bf16 %v256_v24, %v253_v22 }
  0x40   : > { %3706 = vmatpush3.bf16.msra.mxu1 %v3705_v1  ;;  %v246_v31 = vld [vmem:[#allocation2 + $0x148] sm:$0xff]  ;;  %v180_v33 = vrot.slane %v4293_v27, 1  ;;  %v263_v34 = vld [vmem:[#allocation2 + $0x1d0] sm:$0xff]  ;;  %v297_v35 = vld [vmem:[#allocation2 + $0x2e0] sm:$0xff] }
  0x41   : > { %3708 = vmatprep.subr.bf16.mxu1 %v3707_v4  ;;  %v4296_v32 = vld [vmem:[%s4290_s4 + $0x8] sm:$0xff]  ;;  %v300_v36 = vld [vmem:[#allocation2 + $0x2f8] sm:$0xff]  ;;  %v259_v39 = vld [vmem:[#allocation2 + $0x1b0] sm:$0xff]  ;;  %v3717_v40 = vpack.c.bf16 %v246_v31, %v243_v30  ;;  %v3663_v42 = vpack.c.bf16 %v263_v34, %v260_v25 }
  0x42   : > { %3650 = vmatpush1.bf16.msra.mxu0 %v3649_v62  ;;  %v181_v37 = vrot.slane %v4296_v32, 1  ;;  %v262_v43 = vld [vmem:[#allocation2 + $0x1c8] sm:$0xff]  ;;  %v3719_v44 = vpack.c.bf16 %v300_v36, %v297_v35  ;;  %v249_v45 = vld [vmem:[#allocation2 + $0x160] sm:$0xff]  ;;  %v252_v46 = vld [vmem:[#allocation2 + $0x178] sm:$0xff] }
  0x43   : > { %3652 = vmatprep.subr.bf16.mxu0 %v3651_v2  ;;  %v266_v47 = vld [vmem:[#allocation2 + $0x1e8] sm:$0xff]  ;;  %v269_v48 = vld [vmem:[#allocation2 + $0x200] sm:$0xff]  ;;  %v4302_v49 = vld [vmem:[%s4290_s4 + $0x10] sm:$0xff]  ;;  %v3665_v50 = vpack.c.bf16 %v262_v43, %v259_v39  ;;  %v3721_v51 = vpack.c.bf16 %v252_v46, %v249_v45 }
  0x44   : > { %3710 = vmatpush3.bf16.msra.mxu1 %v3709_v13  ;;  %v182_v41 = vsel %vm179_vm0, %v180_v33, %v181_v37  ;;  %v3667_v52 = vpack.c.bf16 %v269_v48, %v266_v47  ;;  %v265_v53 = vld [vmem:[#allocation2 + $0x1e0] sm:$0xff]  ;;  %v268_v54 = vld [vmem:[#allocation2 + $0x1f8] sm:$0xff]  ;;  %v183_v55 = vrot.slane %v4302_v49, 1  ;;  %v275_v57 = vld [vmem:[#allocation2 + $0x230] sm:$0xff] }
  0x45   : > { %3712 = vmatprep.subr.bf16.mxu1 %v3711_v16  ;;  %496 = vmatprep.mubr.f32.mxu1 %v182_v41  ;;  %v272_v56 = vld [vmem:[#allocation2 + $0x218] sm:$0xff]  ;;  %v3669_v59 = vpack.c.bf16 %v268_v54, %v265_v53  ;;  %v271_v61 = vld [vmem:[#allocation2 + $0x210] sm:$0xff]  ;;  %v274_v62 = vld [vmem:[#allocation2 + $0x228] sm:$0xff] }
  0x46   : > { %3654 = vmatpush1.bf16.msra.mxu0 %v3653_v10  ;;  %383 = vmatprep.mubr.f32.mxu0 %v182_v41  ;;  %v4306_v58 = vld [vmem:[%s4290_s4 + $0x18] sm:$0xff]  ;;  %v3671_v60 = vpack.c.bf16 %v275_v57, %v272_v56  ;;  %v4309_v63 = vsel %vm179_vm0, %v181_v37, %v183_v55  ;;  %v278_v1 = vld [vmem:[#allocation2 + $0x248] sm:$0xff]  ;;  %v281_v2 = vld [vmem:[#allocation2 + $0x260] sm:$0xff]  ;;  %v3673_v4 = vpack.c.bf16 %v274_v62, %v271_v61  ;;  %v4203_v41 = vmov 0.0  }
  0x47   : > { %3656 = vmatprep.subr.bf16.mxu0 %v3655_v14  ;;  %v185_v0 = vrot.slane %v4306_v58, 1  ;;  %v4313_v3 = vld [vmem:[%s4290_s4 + $0x20] sm:$0xff]  ;;  %v3675_v5 = vpack.c.bf16 %v281_v2, %v278_v1  ;;  %v280_v7 = vld [vmem:[#allocation2 + $0x258] sm:$0xff]  ;;  %v287_v11 = vld [vmem:[#allocation2 + $0x290] sm:$0xff] }
  0x48   : > { %3714 = vmatpush3.bf16.msra.mxu1 %v3713_v26  ;;  %v277_v6 = vld [vmem:[#allocation2 + $0x240] sm:$0xff]  ;;  %v187_v9 = vrot.slane %v4313_v3, 1  ;;  %v284_v10 = vld [vmem:[#allocation2 + $0x278] sm:$0xff]  ;;  %v167_v12 = vld [vmem:[%s4290_s4 + $0x28] sm:$0xff] }
  0x49   : > { %3716 = vmatprep.subr.bf16.mxu1 %v3715_v29  ;;  %v186_v8 = vsel %vm179_vm0, %v183_v55, %v185_v0  ;;  %v3677_v13 = vpack.c.bf16 %v280_v7, %v277_v6  ;;  %v3679_v14 = vpack.c.bf16 %v287_v11, %v284_v10  ;;  %v283_v15 = vld [vmem:[#allocation2 + $0x270] sm:$0xff]  ;;  %v286_v16 = vld [vmem:[#allocation2 + $0x288] sm:$0xff]  ;;  %v189_v18 = vrot.slane %v167_v12, 1  ;;  %v293_v20 = vld [vmem:[#allocation2 + $0x2c0] sm:$0xff] }
  0x4a   : > { %3658 = vmatpush1.bf16.msra.mxu0 %v3657_v23  ;;  %v188_v17 = vsel %vm179_vm0, %v185_v0, %v187_v9  ;;  %v290_v19 = vld [vmem:[#allocation2 + $0x2a8] sm:$0xff]  ;;  %v168_v21 = vld [vmem:[%s4290_s4 + $0x30] sm:$0xff]  ;;  %v3681_v22 = vpack.c.bf16 %v286_v16, %v283_v15  ;;  %v289_v24 = vld [vmem:[#allocation2 + $0x2a0] sm:$0xff] }
  0x4b   : > { %3660 = vmatprep.subr.bf16.mxu0 %v3659_v28  ;;  %v3683_v23 = vpack.c.bf16 %v293_v20, %v290_v19  ;;  %v292_v25 = vld [vmem:[#allocation2 + $0x2b8] sm:$0xff]  ;;  %v190_v26 = vsel %vm179_vm0, %v187_v9, %v189_v18  ;;  %v191_v28 = vrot.slane %v168_v21, 1  ;;  %v299_v30 = vld [vmem:[#allocation2 + $0x2f0] sm:$0xff]  ;;  %v298_v36 = vld [vmem:[#allocation2 + $0x2e8] sm:$0xff] }
  0x4c   : > { %3718 = vmatpush3.bf16.msra.mxu1 %v3717_v40  ;;  %v296_v29 = vld [vmem:[#allocation2 + $0x2d8] sm:$0xff]  ;;  %v3685_v33 = vpack.c.bf16 %v292_v25, %v289_v24  ;;  %v295_v35 = vld [vmem:[#allocation2 + $0x2d0] sm:$0xff] }
  0x4d   : > { %3720 = vmatprep.subr.bf16.mxu1 %v3719_v44  ;;  %v169_v31 = vld [vmem:[%s4290_s4 + $0x38] sm:$0xff]  ;;  %v3687_v34 = vpack.c.bf16 %v299_v30, %v296_v29  ;;  %v192_v37 = vsel %vm179_vm0, %v189_v18, %v191_v28  ;;  %v3689_v39 = vpack.c.bf16 %v298_v36, %v295_v35 }
  0x4e   : > { %3662 = vmatpush1.bf16.msra.mxu0 %v3661_v38  ;;  %v193_v38 = vrot.slane %v169_v31, 1  ;;  %v4344_v45 = vld [vmem:[#allocation2 + $0x1428] ss:$8 sm:$0x7] }
  0x4f   : > { %3664 = vmatprep.subr.bf16.mxu0 %v3663_v42  ;;  %v4331_v42 = vrot.slane %v4203_v41, 1 }
  0x50   : > { %3722 = vmatpush3.bf16.msra.mxu1 %v3721_v51  ;;  %v194_v40 = vsel %vm179_vm0, %v191_v28, %v193_v38 }
  0x51   : > { %v196_v43 = vsel %vm179_vm0, %v193_v38, %v4331_v42 }
  0x52   : > { %3666 = vmatpush1.bf16.msra.mxu0 %v3665_v50 }
  0x53   : > { %3668 = vmatprep.subr.bf16.mxu0 %v3667_v52  ;;  %497 = vmatmul.mubr.f32.vlgmr.msra.gmra.mrb[0].mxu1 %v4293_v27 }
  0x54   : > { %501 = vmatprep.mubr.f32.mxu1 %v4309_v63 }
  0x56   : > { %3670 = vmatpush1.bf16.msra.mxu0 %v3669_v59 }
  0x57   : > { %3672 = vmatprep.subr.bf16.mxu0 %v3671_v60  ;;  %502 = vmatmul.mubr.f32.gmra.mrb[2].mxu1 %v4296_v32 }
  0x58   : > { %506 = vmatprep.mubr.f32.mxu1 %v186_v8 }
  0x5a   : > { %3674 = vmatpush1.bf16.msra.mxu0 %v3673_v4 }
  0x5b   : > { %3676 = vmatprep.subr.bf16.mxu0 %v3675_v5  ;;  %507 = vmatmul.mubr.f32.gmra.mrb[4].mxu1 %v4302_v49 }
  0x5c   : > { %511 = vmatprep.mubr.f32.mxu1 %v188_v17 }
  0x5e   : > { %3678 = vmatpush1.bf16.msra.mxu0 %v3677_v13 }
  0x5f   : > { %3680 = vmatprep.subr.bf16.mxu0 %v3679_v14  ;;  %512 = vmatmul.mubr.f32.gmra.mrb[6].mxu1 %v4306_v58 }
  0x60   : > { %516 = vmatprep.mubr.f32.mxu1 %v190_v26 }
  0x62   : > { %3682 = vmatpush1.bf16.msra.mxu0 %v3681_v22 }
  0x63   : > { %3684 = vmatprep.subr.bf16.mxu0 %v3683_v23  ;;  %517 = vmatmul.mubr.f32.gmra.mrb[8].mxu1 %v4313_v3 }
  0x64   : > { %521 = vmatprep.mubr.f32.mxu1 %v192_v37 }
  0x66   : > { %3686 = vmatpush1.bf16.msra.mxu0 %v3685_v33 }
  0x67   : > { %3688 = vmatprep.subr.bf16.mxu0 %v3687_v34  ;;  %522 = vmatmul.mubr.f32.gmra.mrb[10].mxu1 %v167_v12 }
  0x68   : > { %526 = vmatprep.mubr.f32.mxu1 %v194_v40 }
  0x6a   : > { %3690 = vmatpush1.bf16.msra.mxu0 %v3689_v39 }
  0x6b   : > { %527 = vmatmul.mubr.f32.gmra.mrb[12].mxu1 %v168_v21 }
  0x6c   : > { %531 = vmatprep.mubr.f32.mxu1 %v196_v43 }
  0x6d   : > { %384 = vmatmul.mubr.f32.vlgmr.msra.gmra.mrb[0].mxu0 %v4293_v27  ;;  %v304_v27 = vlaneseq }
  0x6e   : > { %389 = vmatprep.mubr.f32.mxu0 %v4309_v63 }
  0x6f   : > { %532 = vmatmul.mubr.f32.gmra.mrb[14].mxu1 %v169_v31  ;;  %v4341_v44 = vshrl.u32 %v304_v27, 7 }
  0x71   : > { %390 = vmatmul.mubr.f32.gmra.mrb[2].mxu0 %v4296_v32  ;;  %v314_v32 = vsub.s32 2, %v4341_v44 }
  0x72   : > { %395 = vmatprep.mubr.f32.mxu0 %v186_v8 }
  0x73   : > { %v4349_v47 = vrot.slane %v4344_v45, %v314_v32 }
  0x75   : > { %396 = vmatmul.mubr.f32.gmra.mrb[4].mxu0 %v4302_v49 }
  0x76   : > { %401 = vmatprep.mubr.f32.mxu0 %v188_v17 }
  0x79   : > { %402 = vmatmul.mubr.f32.gmra.mrb[6].mxu0 %v4306_v58 }
  0x7a   : > { %407 = vmatprep.mubr.f32.mxu0 %v190_v26 }
  0x7d   : > { %408 = vmatmul.mubr.f32.gmra.mrb[8].mxu0 %v4313_v3  ;;  %v310_v3 = vsub.s32 1, %v4341_v44 }
  0x7e   : > { %413 = vmatprep.mubr.f32.mxu0 %v192_v37 }
  0x7f   : > { %v311_v7 = vrot.slane %v4344_v45, %v310_v3 }
  0x81   : > { %414 = vmatmul.mubr.f32.gmra.mrb[10].mxu0 %v167_v12 }
  0x82   : > { %419 = vmatprep.mubr.f32.mxu0 %v194_v40 }
  0x85   : > { %420 = vmatmul.mubr.f32.gmra.mrb[12].mxu0 %v168_v21 }
  0x86   : > { %425 = vmatprep.mubr.f32.mxu0 %v196_v43 }
  0x89   : > { %426 = vmatmul.mubr.f32.gmra.mrb[14].mxu0 %v169_v31 }
 0x126   : > { %v3075_v46 = vpop.f32.mrb[0].mxu1 }
 0x127   : > { %v3076_v48 = vpop.f32.mrb[1].mxu1 }
 0x128   : > { %v3077_v49 = vadd.f32 %v3076_v48, %v3075_v46 }
 0x12a   : > { %v3078_v50 = vpop.f32.mrb[2].mxu1  ;;  %v499_v51 = vadd.f32 %v3077_v49, %v4349_v47 }
 0x12b   : > { %v3079_v52 = vpop.f32.mrb[3].mxu1 }
 0x12c   : > { %v3080_v53 = vadd.f32 %v3079_v52, %v3078_v50  ;;  %v539_v54 = vmax.f32 %v499_v51, 0.0  ;;  %v306_v50 = vsub.s32 0, %v4341_v44 }
 0x12e   : > { %v3081_v55 = vpop.f32.mrb[4].mxu1  ;;  %653 = vrot.lane.b32.xlu0 %v539_v54, %s4204_s5  ;;  %v504_v56 = vadd.f32 %v3080_v53, %v4349_v47 }
 0x12f   : > { %v3082_v57 = vpop.f32.mrb[5].mxu1 }
 0x130   : > { %v3083_v58 = vadd.f32 %v3082_v57, %v3081_v55  ;;  %v542_v59 = vmax.f32 %v504_v56, 0.0  ;;  %v307_v57 = vrot.slane %v4344_v45, %v306_v50 }
 0x132   : > { %v509_v60 = vadd.f32 %v3083_v58, %v4349_v47  ;;  %655 = vrot.lane.b32.xlu1 %v542_v59, %s4204_s5  ;;  %v3084_v61 = vpop.f32.mrb[6].mxu1 }
 0x133   : > { %v3085_v62 = vpop.f32.mrb[7].mxu1 }
 0x134   : > { %v545_v63 = vmax.f32 %v509_v60, 0.0  ;;  %v3086_v0 = vadd.f32 %v3085_v62, %v3084_v61 }
 0x136   : > { %657 = vrot.lane.b32.xlu1 %v545_v63, %s4204_s5  ;;  %v3087_v1 = vpop.f32.mrb[8].mxu1  ;;  %v514_v21 = vadd.f32 %v3086_v0, %v4349_v47 }
 0x137   : > { %v3088_v2 = vpop.f32.mrb[9].mxu1 }
 0x138   : > { %v3089_v4 = vadd.f32 %v3088_v2, %v3087_v1  ;;  %v548_v26 = vmax.f32 %v514_v21, 0.0 }
 0x13a   : > { %v3090_v5 = vpop.f32.mrb[10].mxu1  ;;  %v519_v29 = vadd.f32 %v3089_v4, %v4349_v47 }
 0x13b   : > { %v3091_v6 = vpop.f32.mrb[11].mxu1 }
 0x13c   : > { %v3092_v8 = vadd.f32 %v3091_v6, %v3090_v5  ;;  %v551_v34 = vmax.f32 %v519_v29, 0.0 }
 0x13e   : > { %v3093_v10 = vpop.f32.mrb[12].mxu1  ;;  %v524_v36 = vadd.f32 %v3092_v8, %v4349_v47 }
 0x13f   : > { %v3094_v12 = vpop.f32.mrb[13].mxu1 }
 0x140   : > { %v385_v9 = vpop.f32.mrb[0].mxu0  ;;  %v3095_v14 = vadd.f32 %v3094_v12, %v3093_v10  ;;  %v554_v40 = vmax.f32 %v524_v36, 0.0  ;;  %v563_v36 = vld [vmem:[#allocation2 + $0xf30] sm:$0xff] }
 0x141   : > { %v387_v11 = vpop.f32.mrb[1].mxu0  ;;  %v4421_v45 = vadd.f32 %v385_v9, %v307_v57 }
 0x142   : > { %v4361_v13 = vadd.f32 %v387_v11, %v311_v7  ;;  %v3096_v17 = vpop.f32.mrb[14].mxu1  ;;  %v529_v27 = vadd.f32 %v3095_v14, %v4349_v47 }
 0x143   : > { %v3097_v19 = vpop.f32.mrb[15].mxu1  ;;  %v537_v4 = vmax.f32 %v4421_v45, 0.0 }
 0x144   : > { %v538_v15 = vmax.f32 %v4361_v13, 0.0  ;;  %v391_v16 = vpop.f32.mrb[2].mxu0  ;;  %v3098_v22 = vadd.f32 %v3097_v19, %v3096_v17  ;;  %v557_v51 = vmax.f32 %v529_v27, 0.0 }
 0x145   : > { %v393_v18 = vpop.f32.mrb[3].mxu0  ;;  %v4412_v60 = vadd.f32 %v391_v16, %v307_v57 }
 0x146   : > { %v4364_v20 = vadd.f32 %v393_v18, %v311_v7  ;;  %590 = vrot.lane.b32.xlu0 %v538_v15, %s4204_s5  ;;  %v534_v53 = vadd.f32 %v3098_v22, %v4349_v47 }
 0x147   : > { %v540_v0 = vmax.f32 %v4412_v60, 0.0 }
 0x148   : > { %v541_v23 = vmax.f32 %v4364_v20, 0.0  ;;  %v397_v24 = vpop.f32.mrb[4].mxu0  ;;  %v560_v58 = vmax.f32 %v534_v53, 0.0 }
 0x149   : > { %v399_v25 = vpop.f32.mrb[5].mxu0  ;;  %v4434_v5 = vadd.f32 %v397_v24, %v307_v57 }
 0x14a   : > { %v4371_v28 = vadd.f32 %v399_v25, %v311_v7  ;;  %594 = vrot.lane.b32.xlu1 %v541_v23, %s4204_s5  ;;  %v561_v25 = vld [vmem:[#allocation2 + $0xf00] sm:$0xff] }
 0x14b   : > { %v543_v8 = vmax.f32 %v4434_v5, 0.0 }
 0x14c   : > { %v544_v30 = vmax.f32 %v4371_v28, 0.0  ;;  %v403_v31 = vpop.f32.mrb[6].mxu0 }
 0x14d   : > { %v405_v33 = vpop.f32.mrb[7].mxu0  ;;  %v4424_v1 = vadd.f32 %v403_v31, %v307_v57 }
 0x14e   : > { %v4378_v35 = vadd.f32 %v405_v33, %v311_v7  ;;  %659 = vrot.lane.b32.xlu1 %v548_v26, %s4204_s5  ;;  %598 = vrot.lane.b32.xlu0 %v544_v30, %s4204_s5  ;;  %v562_v26 = vld [vmem:[#allocation2 + $0xf18] sm:$0xff] }
 0x14f   : > { %v546_v6 = vmax.f32 %v4424_v1, 0.0  ;;  %v4479_v31 = vpack.c.bf16 %v562_v26, %v561_v25 }
 0x150   : > { %v547_v37 = vmax.f32 %v4378_v35, 0.0  ;;  %v409_v38 = vpop.f32.mrb[8].mxu0 }
 0x151   : > { %v411_v39 = vpop.f32.mrb[9].mxu0  ;;  %v4446_v9 = vadd.f32 %v409_v38, %v307_v57  ;;  %3724 = vmatprep.subr.bf16.mxu1 %v4479_v31  ;;  %v564_v38 = vld [vmem:[#allocation2 + $0xf48] sm:$0xff] }
 0x152   : > { %v4386_v43 = vadd.f32 %v411_v39, %v311_v7  ;;  %661 = vrot.lane.b32.xlu1 %v551_v34, %s4204_s5  ;;  %602 = vrot.lane.b32.xlu0 %v547_v37, %s4204_s5 }
 0x153   : > { %v549_v12 = vmax.f32 %v4446_v9, 0.0  ;;  %3726 = vmatpush3.bf16.msra.mxu1 %v4479_v31 }
 0x154   : > { %v550_v46 = vmax.f32 %v4386_v43, 0.0  ;;  %v415_v48 = vpop.f32.mrb[10].mxu0  ;;  %v4540_v43 = vld [vmem:[#allocation2 + $0xff0] sm:$0x1] }
 0x155   : > { %v417_v49 = vpop.f32.mrb[11].mxu0 }
 0x156   : > { %v4395_v52 = vadd.f32 %v417_v49, %v311_v7  ;;  %663 = vrot.lane.b32.xlu1 %v554_v40, %s4204_s5  ;;  %606 = vrot.lane.b32.xlu0 %v550_v46, %s4204_s5  ;;  %v566_v49 = vld [vmem:[#allocation2 + $0xf78] sm:$0xff] }
 0x158   : > { %v553_v54 = vmax.f32 %v4395_v52, 0.0  ;;  %v421_v55 = vpop.f32.mrb[12].mxu0 }
 0x159   : > { %v423_v56 = vpop.f32.mrb[13].mxu0  ;;  %v4458_v14 = vadd.f32 %v421_v55, %v307_v57 }
 0x15a   : > { %v4406_v59 = vadd.f32 %v423_v56, %v311_v7  ;;  %665 = vrot.lane.b32.xlu1 %v557_v51, %s4204_s5  ;;  %610 = vrot.lane.b32.xlu0 %v553_v54, %s4204_s5  ;;  %v567_v56 = vld [vmem:[#allocation2 + $0xf90] sm:$0xff] }
 0x15b   : > { %v555_v17 = vmax.f32 %v4458_v14, 0.0 }
 0x15c   : > { %v556_v47 = vmax.f32 %v4406_v59, 0.0  ;;  %v427_v61 = vpop.f32.mrb[14].mxu0 }
 0x15d   : > { %v429_v62 = vpop.f32.mrb[15].mxu0  ;;  %v4449_v11 = vadd.f32 %v427_v61, %v307_v57 }
 0x15e   : > { %v4415_v63 = vadd.f32 %v429_v62, %v311_v7  ;;  %667 = vrot.lane.b32.xlu1 %v560_v58, %s4204_s5  ;;  %614 = vrot.lane.b32.xlu0 %v556_v47, %s4204_s5  ;;  %v4437_v7 = vadd.f32 %v415_v48, %v307_v57  ;;  %v565_v48 = vld [vmem:[#allocation2 + $0xf60] sm:$0xff]  ;;  %v568_v57 = vld [vmem:[#allocation2 + $0xfa8] sm:$0xff] }
 0x15f   : > { %v558_v16 = vmax.f32 %v4449_v11, 0.0 }
 0x160   : > { %v559_v2 = vmax.f32 %v4415_v63, 0.0  ;;  %v552_v10 = vmax.f32 %v4437_v7, 0.0 }
 0x162   : > { %592 = vrot.lane.b32.xlu1 %v540_v0, %s4204_s5  ;;  %618 = vrot.lane.b32.xlu0 %v559_v2, %s4204_s5 }
 0x166   : > { %600 = vrot.lane.b32.xlu1 %v546_v6, %s4204_s5  ;;  %588 = vrot.lane.b32.xlu0 %v537_v4, %s4204_s5 }
 0x16a   : > { %608 = vrot.lane.b32.xlu1 %v552_v10, %s4204_s5  ;;  %596 = vrot.lane.b32.xlu0 %v543_v8, %s4204_s5 }
 0x16e   : > { %616 = vrot.lane.b32.xlu1 %v558_v16, %s4204_s5  ;;  %604 = vrot.lane.b32.xlu0 %v549_v12, %s4204_s5 }
 0x172   : > { %612 = vrot.lane.b32.xlu0 %v555_v17, %s4204_s5 }
 0x1a0   : > { %v654_v19 = vpop.permute.xlu0 %653 }
 0x1a4   : > { %v656_v18 = vpop.permute.xlu1 %655 }
 0x1a8   : > { %v658_v21 = vpop.permute.xlu1 %657 }
 0x1b8   : > { %v4471_v22 = vpop.permute.xlu0 %590 }
 0x1b9   : > { %v669_v24 = vsel %vm620_vm1, %v4471_v22, %v654_v19  ;;  %v570_v19 = vld [vmem:[#allocation2 + $0xfd8] sm:$0xff] }
 0x1ba   : > { %v4477_v29 = vmax.f32 %v538_v15, %v669_v24  ;;  %v4493_v15 = vpack.c.bf16 %v564_v38, %v563_v36 }
 0x1bc   : > { %v4481_v33 = vpop.permute.xlu1 %594  ;;  %875 = vrot.lane.b32.xlu0 %v4477_v29, %s4205_s6  ;;  %3728 = vmatprep.subr.bf16.mxu1 %v4493_v15 }
 0x1bd   : > { %v670_v34 = vsel %vm620_vm1, %v4481_v33, %v656_v18  ;;  %3730 = vmatpush3.bf16.msra.mxu1 %v4493_v15  ;;  %v569_v18 = vld [vmem:[#allocation2 + $0xfc0] sm:$0xff] }
 0x1be   : > { %v4491_v13 = vmax.f32 %v541_v23, %v670_v34  ;;  %v4507_v23 = vpack.c.bf16 %v566_v49, %v565_v48 }
 0x1c0   : > { %v660_v39 = vpop.permute.xlu1 %659  ;;  %877 = vrot.lane.b32.xlu1 %v4491_v13, %s4205_s6  ;;  %v4497_v40 = vpop.permute.xlu0 %598  ;;  %3732 = vmatprep.subr.bf16.mxu1 %v4507_v23 }
 0x1c1   : > { %v671_v27 = vsel %vm620_vm1, %v4497_v40, %v658_v21  ;;  %3734 = vmatpush3.bf16.msra.mxu1 %v4507_v23 }
 0x1c2   : > { %v4505_v20 = vmax.f32 %v544_v30, %v671_v27  ;;  %v4518_v30 = vpack.c.bf16 %v568_v57, %v567_v56 }
 0x1c4   : > { %v662_v51 = vpop.permute.xlu1 %661  ;;  %v603_v53 = vpop.permute.xlu0 %602  ;;  %879 = vrot.lane.b32.xlu0 %v4505_v20, %s4205_s6  ;;  %3736 = vmatprep.subr.bf16.mxu1 %v4518_v30 }
 0x1c5   : > { %v672_v55 = vsel %vm620_vm1, %v603_v53, %v660_v39  ;;  %3738 = vmatpush3.bf16.msra.mxu1 %v4518_v30 }
 0x1c6   : > { %v4516_v28 = vmax.f32 %v547_v37, %v672_v55  ;;  %v4529_v37 = vpack.c.bf16 %v570_v19, %v569_v18 }
 0x1c8   : > { %v664_v58 = vpop.permute.xlu1 %663  ;;  %881 = vrot.lane.b32.xlu1 %v4516_v28, %s4205_s6  ;;  %v607_v61 = vpop.permute.xlu0 %606  ;;  %3740 = vmatprep.subr.bf16.mxu1 %v4529_v37 }
 0x1c9   : > { %v673_v62 = vsel %vm620_vm1, %v607_v61, %v662_v51  ;;  %3742 = vmatpush3.bf16.msra.mxu1 %v4529_v37 }
 0x1ca   : > { %v4527_v35 = vmax.f32 %v550_v46, %v673_v62  ;;  %3415 = vmatprep.subr.msk.mxu1 %vm758_vm2, %v4540_v43 }
 0x1cc   : > { %v666_v21 = vpop.permute.xlu1 %665  ;;  %v611_v24 = vpop.permute.xlu0 %610  ;;  %883 = vrot.lane.b32.xlu0 %v4527_v35, %s4205_s6 }
 0x1cd   : > { %v674_v25 = vsel %vm620_vm1, %v611_v24, %v664_v58  ;;  %3416 = vmatpush3.msk.msra.mxu1 %vm758_vm2, %v4540_v43 }
 0x1ce   : > { %v4538_v26 = vmax.f32 %v553_v54, %v674_v25  ;;  %3744 = vmatprep.subr.bf16.mxu1 %v4479_v31 }
 0x1d0   : > { %v668_v46 = vpop.permute.xlu1 %667  ;;  %885 = vrot.lane.b32.xlu1 %v4538_v26, %s4205_s6  ;;  %v615_v34 = vpop.permute.xlu0 %614 }
 0x1d1   : > { %v675_v36 = vsel %vm620_vm1, %v615_v34, %v666_v21 }
 0x1d2   : > { %v691_v52 = vmax.f32 %v556_v47, %v675_v36 }
 0x1d4   : > { %v593_v54 = vpop.permute.xlu1 %592  ;;  %v619_v38 = vpop.permute.xlu0 %618  ;;  %887 = vrot.lane.b32.xlu0 %v691_v52, %s4205_s6 }
 0x1d5   : > { %v676_v39 = vsel %vm620_vm1, %v619_v38, %v668_v46  ;;  %v622_v48 = vsel %vm620_vm1, %v593_v54, %v4481_v33 }
 0x1d6   : > { %v692_v27 = vmax.f32 %v559_v2, %v676_v39  ;;  %v638_v47 = vmax.f32 %v540_v0, %v622_v48 }
 0x1d8   : > { %v601_v49 = vpop.permute.xlu1 %600  ;;  %889 = vrot.lane.b32.xlu1 %v692_v27, %s4205_s6  ;;  %v589_v51 = vpop.permute.xlu0 %588 }
 0x1d9   : > { %v621_v59 = vsel %vm620_vm1, %v589_v51, %v4471_v22  ;;  %v624_v56 = vsel %vm620_vm1, %v601_v49, %v603_v53 }
 0x1da   : > { %v637_v55 = vmax.f32 %v537_v4, %v621_v59  ;;  %v640_v22 = vmax.f32 %v546_v6, %v624_v56  ;;  %v1155_v56 = vld [vmem:[#allocation2 + $0x320] sm:$0xff] }
 0x1dc   : > { %v609_v63 = vpop.permute.xlu1 %608  ;;  %703 = vrot.lane.b32.xlu1 %v638_v47, %s4205_s6  ;;  %701 = vrot.lane.b32.xlu0 %v637_v55, %s4205_s6  ;;  %v597_v2 = vpop.permute.xlu0 %596 }
 0x1dd   : > { %v623_v33 = vsel %vm620_vm1, %v597_v2, %v4497_v40  ;;  %v626_v45 = vsel %vm620_vm1, %v609_v63, %v611_v24  ;;  %v1151_v63 = vld [vmem:[#allocation2 + $0x300] sm:$0xff] }
 0x1de   : > { %v639_v60 = vmax.f32 %v543_v8, %v623_v33  ;;  %v642_v57 = vmax.f32 %v552_v10, %v626_v45  ;;  %v1154_v33 = vld [vmem:[#allocation2 + $0x318] sm:$0xff] }
 0x1df   : > { %v3765_v45 = vpack.c.bf16 %v1154_v33, %v1151_v63  ;;  %v1187_v63 = vld [vmem:[#allocation2 + $0x420] sm:$0xff] }
 0x1e0   : > { %v617_v0 = vpop.permute.xlu1 %616  ;;  %707 = vrot.lane.b32.xlu1 %v640_v22, %s4205_s6  ;;  %705 = vrot.lane.b32.xlu0 %v639_v60, %s4205_s6  ;;  %v605_v4 = vpop.permute.xlu0 %604 }
 0x1e1   : > { %v625_v53 = vsel %vm620_vm1, %v605_v4, %v607_v61  ;;  %v628_v6 = vsel %vm620_vm1, %v617_v0, %v619_v38  ;;  %v1157_v4 = vld [vmem:[#allocation2 + $0x330] sm:$0xff] }
 0x1e2   : > { %v641_v1 = vmax.f32 %v549_v12, %v625_v53  ;;  %v644_v40 = vmax.f32 %v558_v16, %v628_v6  ;;  %v1160_v53 = vld [vmem:[#allocation2 + $0x348] sm:$0xff] }
 0x1e3   : > { %v3769_v6 = vpack.c.bf16 %v1160_v53, %v1157_v4  ;;  %v1171_v4 = vld [vmem:[#allocation2 + $0x3a0] sm:$0xff]  ;;  %v1174_v53 = vld [vmem:[#allocation2 + $0x3b8] sm:$0xff] }
 0x1e4   : > { %711 = vrot.lane.b32.xlu1 %v642_v57, %s4205_s6  ;;  %709 = vrot.lane.b32.xlu0 %v641_v1, %s4205_s6  ;;  %v613_v5 = vpop.permute.xlu0 %612 }
 0x1e5   : > { %v627_v8 = vsel %vm620_vm1, %v613_v5, %v615_v34 }
 0x1e6   : > { %v643_v58 = vmax.f32 %v555_v17, %v627_v8  ;;  %v1163_v8 = vld [vmem:[#allocation2 + $0x360] sm:$0xff] }
 0x1e8   : > { %715 = vrot.lane.b32.xlu1 %v644_v40, %s4205_s6  ;;  %713 = vrot.lane.b32.xlu0 %v643_v58, %s4205_s6 }
 0x22e   : > { %v876_v7 = vpop.permute.xlu0 %875 }
 0x22f   : > { %v899_v9 = vmax.f32 %v4477_v29, %v876_v7  ;;  %v1173_v7 = vld [vmem:[#allocation2 + $0x3b0] sm:$0xff] }
 0x231   : > { %915 = vrot.lane.b32.xlu0 %v899_v9, %s4206_s7 }
 0x232   : > { %v878_v10 = vpop.permute.xlu1 %877 }
 0x233   : > { %v900_v12 = vmax.f32 %v4491_v13, %v878_v10 }
 0x235   : > { %917 = vrot.lane.b32.xlu1 %v900_v12, %s4206_s7  ;;  %v1169_v12 = vld [vmem:[#allocation2 + $0x390] sm:$0xff] }
 0x236   : > { %v880_v61 = vpop.permute.xlu0 %879 }
 0x237   : > { %v901_v11 = vmax.f32 %v4505_v20, %v880_v61  ;;  %v1172_v61 = vld [vmem:[#allocation2 + $0x3a8] sm:$0xff] }
 0x239   : > { %919 = vrot.lane.b32.xlu0 %v901_v11, %s4206_s7  ;;  %v1176_v11 = vld [vmem:[#allocation2 + $0x3c8] sm:$0xff] }
 0x23a   : > { %v882_v16 = vpop.permute.xlu1 %881 }
 0x23b   : > { %v902_v14 = vmax.f32 %v4516_v28, %v882_v16  ;;  %v1179_v16 = vld [vmem:[#allocation2 + $0x3e0] sm:$0xff] }
 0x23d   : > { %921 = vrot.lane.b32.xlu1 %v902_v14, %s4206_s7  ;;  %v1201_v14 = vld [vmem:[#allocation2 + $0x490] sm:$0xff] }
 0x23e   : > { %v884_v17 = vpop.permute.xlu0 %883 }
 0x23f   : > { %v903_v62 = vmax.f32 %v4527_v35, %v884_v17  ;;  %v1204_v17 = vld [vmem:[#allocation2 + $0x4a8] sm:$0xff] }
 0x241   : > { %923 = vrot.lane.b32.xlu0 %v903_v62, %s4206_s7  ;;  %v3777_v62 = vpack.c.bf16 %v1172_v61, %v1169_v12  ;;  %v1200_v12 = vld [vmem:[#allocation2 + $0x488] sm:$0xff] }
 0x242   : > { %v886_v18 = vpop.permute.xlu1 %885 }
 0x243   : > { %v904_v29 = vmax.f32 %v4538_v26, %v886_v18  ;;  %v1175_v18 = vld [vmem:[#allocation2 + $0x3c0] sm:$0xff] }
 0x245   : > { %925 = vrot.lane.b32.xlu1 %v904_v29, %s4206_s7  ;;  %v3859_v29 = vpack.c.bf16 %v1204_v17, %v1201_v14  ;;  %v1203_v14 = vld [vmem:[#allocation2 + $0x4a0] sm:$0xff] }
 0x246   : > { %v888_v19 = vpop.permute.xlu0 %887  ;;  %v1231_v17 = vld [vmem:[#allocation2 + $0x580] sm:$0xff] }
 0x247   : > { %v905_v21 = vmax.f32 %v691_v52, %v888_v19  ;;  %v1153_v19 = vld [vmem:[#allocation2 + $0x310] sm:$0xff] }
 0x249   : > { %927 = vrot.lane.b32.xlu0 %v905_v21, %s4206_s7  ;;  %v3779_v21 = vpack.c.bf16 %v1179_v16, %v1176_v11  ;;  %v1177_v11 = vld [vmem:[#allocation2 + $0x3d0] sm:$0xff]  ;;  %v1180_v16 = vld [vmem:[#allocation2 + $0x3e8] sm:$0xff] }
 0x24a   : > { %v890_v13 = vpop.permute.xlu1 %889 }
 0x24b   : > { %v906_v24 = vmax.f32 %v692_v27, %v890_v13  ;;  %v1178_v13 = vld [vmem:[#allocation2 + $0x3d8] sm:$0xff] }
 0x24d   : > { %929 = vrot.lane.b32.xlu1 %v906_v24, %s4206_s7  ;;  %v1182_v24 = vld [vmem:[#allocation2 + $0x3f8] sm:$0xff] }
 0x24e   : > { %v704_v20 = vpop.permute.xlu1 %703  ;;  %v702_v25 = vpop.permute.xlu0 %701 }
 0x24f   : > { %v726_v46 = vmax.f32 %v638_v47, %v704_v20  ;;  %v725_v28 = vmax.f32 %v637_v55, %v702_v25  ;;  %v1152_v55 = vld [vmem:[#allocation2 + $0x308] sm:$0xff]  ;;  %v1185_v25 = vld [vmem:[#allocation2 + $0x410] sm:$0xff] }
 0x250   : > { %v3763_v2 = vpack.c.bf16 %v1155_v56, %v1152_v55  ;;  %v1156_v20 = vld [vmem:[#allocation2 + $0x328] sm:$0xff] }
 0x251   : > { %3417 = vmatprep.mubr.msk.f32.mxu1 %vm733_vm3, %v725_v28  ;;  %v1207_v28 = vld [vmem:[#allocation2 + $0x4c0] sm:$0xff] }
 0x252   : > { %v708_v34 = vpop.permute.xlu1 %707  ;;  %3418 = vmatmul.mubr.msk.f32.vlgmr.msra.gmra.mrb[16].mxu1 %vm733_vm3, %v726_v46  ;;  %v706_v35 = vpop.permute.xlu0 %705  ;;  %3764 = vmatprep.subr.bf16.mxu0 %v3763_v2  ;;  %v3861_v46 = vpack.c.bf16 %v1156_v20, %v1153_v19  ;;  %v1190_v2 = vld [vmem:[#allocation2 + $0x438] sm:$0xff]  ;;  %v1199_v19 = vld [vmem:[#allocation2 + $0x480] sm:$0xff]  ;;  %v3795_v20 = vpack.c.bf16 %v1203_v14, %v1200_v12  ;;  %v1229_v12 = vld [vmem:[#allocation2 + $0x570] sm:$0xff] }
 0x253   : > { %v728_v36 = vmax.f32 %v640_v22, %v708_v34  ;;  %v727_v26 = vmax.f32 %v639_v60, %v706_v35  ;;  %3746 = vmatpush3.bf16.msra.mxu1 %v4479_v31  ;;  %v1158_v22 = vld [vmem:[#allocation2 + $0x338] sm:$0xff]  ;;  %v1161_v60 = vld [vmem:[#allocation2 + $0x350] sm:$0xff]  ;;  %3766 = vmatpush1.bf16.msra.mxu0 %v3765_v45 }
 0x254   : > { %3748 = vmatprep.subr.bf16.mxu1 %v4493_v15  ;;  %v3767_v0 = vpack.c.bf16 %v1161_v60, %v1158_v22  ;;  %v1210_v34 = vld [vmem:[#allocation2 + $0x4d8] sm:$0xff] }
 0x255   : > { %3420 = vmatprep.mubr.msk.f32.mxu1 %vm733_vm3, %v727_v26  ;;  %v3863_v35 = vpack.c.bf16 %v1210_v34, %v1207_v28  ;;  %v1162_v26 = vld [vmem:[#allocation2 + $0x358] sm:$0xff]  ;;  %v1183_v28 = vld [vmem:[#allocation2 + $0x400] sm:$0xff] }
 0x256   : > { %v712_v52 = vpop.permute.xlu1 %711  ;;  %3421 = vmatmul.mubr.msk.f32.gmra.mrb[18].mxu1 %vm733_vm3, %v728_v36  ;;  %v710_v54 = vpop.permute.xlu0 %709  ;;  %3768 = vmatprep.subr.bf16.mxu0 %v3767_v0  ;;  %v1159_v36 = vld [vmem:[#allocation2 + $0x340] sm:$0xff]  ;;  %v1194_v45 = vld [vmem:[#allocation2 + $0x458] sm:$0xff] }
 0x257   : > { %v730_v38 = vmax.f32 %v642_v57, %v712_v52  ;;  %v729_v39 = vmax.f32 %v641_v1, %v710_v54  ;;  %3750 = vmatpush3.bf16.msra.mxu1 %v4493_v15  ;;  %v1164_v57 = vld [vmem:[#allocation2 + $0x368] sm:$0xff]  ;;  %v1167_v1 = vld [vmem:[#allocation2 + $0x380] sm:$0xff]  ;;  %3770 = vmatpush1.bf16.msra.mxu0 %v3769_v6  ;;  %v3781_v54 = vpack.c.bf16 %v1178_v13, %v1175_v18  ;;  %v1186_v34 = vld [vmem:[#allocation2 + $0x418] sm:$0xff] }
 0x258   : > { %3752 = vmatprep.subr.bf16.mxu1 %v4507_v23  ;;  %v3771_v5 = vpack.c.bf16 %v1167_v1, %v1164_v57  ;;  %v1197_v57 = vld [vmem:[#allocation2 + $0x470] sm:$0xff]  ;;  %v1228_v6 = vld [vmem:[#allocation2 + $0x568] sm:$0xff]  ;;  %v3877_v13 = vpack.c.bf16 %v1180_v16, %v1177_v11  ;;  %v1239_v16 = vld [vmem:[#allocation2 + $0x5c0] sm:$0xff] }
 0x259   : > { %3423 = vmatprep.mubr.msk.f32.mxu1 %vm733_vm3, %v729_v39  ;;  %v3865_v39 = vpack.c.bf16 %v1162_v26, %v1159_v36  ;;  %v1225_v1 = vld [vmem:[#allocation2 + $0x550] sm:$0xff]  ;;  %v1240_v26 = vld [vmem:[#allocation2 + $0x5c8] sm:$0xff] }
 0x25a   : > { %v716_v27 = vpop.permute.xlu1 %715  ;;  %3424 = vmatmul.mubr.msk.f32.gmra.mrb[20].mxu1 %vm733_vm3, %v730_v38  ;;  %v714_v31 = vpop.permute.xlu0 %713  ;;  %3772 = vmatprep.subr.bf16.mxu0 %v3771_v5  ;;  %v1181_v38 = vld [vmem:[#allocation2 + $0x3f0] sm:$0xff]  ;;  %v3875_v61 = vpack.c.bf16 %v1228_v6, %v1225_v1  ;;  %v1223_v6 = vld [vmem:[#allocation2 + $0x540] sm:$0xff]  ;;  %v1236_v11 = vld [vmem:[#allocation2 + $0x5a8] sm:$0xff] }
 0x25b   : > { %v732_v48 = vmax.f32 %v644_v40, %v716_v27  ;;  %v731_v49 = vmax.f32 %v643_v58, %v714_v31  ;;  %3754 = vmatpush3.bf16.msra.mxu1 %v4507_v23  ;;  %v1166_v40 = vld [vmem:[#allocation2 + $0x378] sm:$0xff]  ;;  %v1213_v27 = vld [vmem:[#allocation2 + $0x4f0] sm:$0xff] }
 0x25c   : > { %3756 = vmatprep.subr.bf16.mxu1 %v4518_v30  ;;  %v1170_v58 = vld [vmem:[#allocation2 + $0x398] sm:$0xff]  ;;  %v3773_v9 = vpack.c.bf16 %v1166_v40, %v1163_v8  ;;  %v3789_v8 = vpack.c.bf16 %v1190_v2, %v1187_v63  ;;  %v1193_v40 = vld [vmem:[#allocation2 + $0x450] sm:$0xff] }
 0x25d   : > { %3426 = vmatprep.mubr.msk.f32.mxu1 %vm733_vm3, %v731_v49  ;;  %v3775_v10 = vpack.c.bf16 %v1173_v7, %v1170_v58  ;;  %v1184_v49 = vld [vmem:[#allocation2 + $0x408] sm:$0xff]  ;;  %v3873_v7 = vpack.c.bf16 %v1174_v53, %v1171_v4  ;;  %v1237_v36 = vld [vmem:[#allocation2 + $0x5b0] sm:$0xff]  ;;  %v1218_v63 = vld [vmem:[#allocation2 + $0x518] sm:$0xff] }
 0x25e   : > { %3427 = vmatmul.mubr.msk.f32.gmra.mrb[22].mxu1 %vm733_vm3, %v732_v48  ;;  %3774 = vmatpush1.bf16.msra.mxu0 %v3773_v9  ;;  %v3783_v48 = vpack.c.bf16 %v1185_v25, %v1182_v24  ;;  %v3785_v56 = vpack.c.bf16 %v1184_v49, %v1181_v38  ;;  %v1196_v58 = vld [vmem:[#allocation2 + $0x468] sm:$0xff]  ;;  %v1206_v25 = vld [vmem:[#allocation2 + $0x4b8] sm:$0xff]  ;;  %v1205_v38 = vld [vmem:[#allocation2 + $0x4b0] sm:$0xff]  ;;  %v3883_v49 = vpack.c.bf16 %v1240_v26, %v1237_v36 }
 0x25f   : > { %3758 = vmatpush3.bf16.msra.mxu1 %v4518_v30  ;;  %3776 = vmatprep.subr.bf16.mxu0 %v3775_v10  ;;  %v3791_v10 = vpack.c.bf16 %v1197_v57, %v1194_v45  ;;  %v1221_v2 = vld [vmem:[#allocation2 + $0x530] sm:$0xff]  ;;  %v1224_v4 = vld [vmem:[#allocation2 + $0x548] sm:$0xff]  ;;  %v1227_v53 = vld [vmem:[#allocation2 + $0x560] sm:$0xff] }
 0x260   : > { %3760 = vmatprep.subr.bf16.mxu1 %v4529_v37  ;;  %v1217_v45 = vld [vmem:[#allocation2 + $0x510] sm:$0xff]  ;;  %v3811_v1 = vpack.c.bf16 %v1227_v53, %v1224_v4  ;;  %v1195_v26 = vld [vmem:[#allocation2 + $0x460] sm:$0xff]  ;;  %v1250_v4 = vld [vmem:[#allocation2 + $0x618] sm:$0xff] }
 0x261   : > { %v1254_v53 = vld [vmem:[#allocation2 + $0x638] sm:$0xff] }
 0x262   : > { %3778 = vmatpush1.bf16.msra.mxu0 %v3777_v62  ;;  %v1234_v62 = vld [vmem:[#allocation2 + $0x598] sm:$0xff] }
 0x263   : > { %3762 = vmatpush3.bf16.msra.mxu1 %v4529_v37  ;;  %3780 = vmatprep.subr.bf16.mxu0 %v3779_v21  ;;  %v1202_v21 = vld [vmem:[#allocation2 + $0x498] sm:$0xff] }
 0x264   : > { %3449 = vmatprep.subr.msk.mxu1 %vm758_vm2, %v4540_v43 }
 0x266   : > { %3782 = vmatpush1.bf16.msra.mxu0 %v3781_v54  ;;  %v3797_v54 = vpack.c.bf16 %v1202_v21, %v1199_v19  ;;  %v1242_v21 = vld [vmem:[#allocation2 + $0x5d8] sm:$0xff] }
 0x267   : > { %3450 = vmatpush3.msk.msra.mxu1 %vm758_vm2, %v4540_v43  ;;  %3784 = vmatprep.subr.bf16.mxu0 %v3783_v48  ;;  %v1208_v48 = vld [vmem:[#allocation2 + $0x4c8] sm:$0xff] }
 0x268   : > { %3860 = vmatprep.subr.bf16.mxu1 %v3859_v29  ;;  %v3793_v29 = vpack.c.bf16 %v1196_v58, %v1193_v40  ;;  %v1230_v40 = vld [vmem:[#allocation2 + $0x578] sm:$0xff]  ;;  %v1233_v58 = vld [vmem:[#allocation2 + $0x590] sm:$0xff] }
 0x26a   : > { %3786 = vmatpush1.bf16.msra.mxu0 %v3785_v56  ;;  %v1214_v56 = vld [vmem:[#allocation2 + $0x4f8] sm:$0xff] }
 0x2a3   : > { %v916_v15 = vpop.permute.xlu0 %915 }
 0x2a4   : > { %3451 = vmatprep.mubr.msk.f32.mxu1 %vm733_vm3, %v916_v15  ;;  %v1188_v15 = vld [vmem:[#allocation2 + $0x428] sm:$0xff] }
 0x2a7   : > { %v918_v23 = vpop.permute.xlu1 %917 }
 0x2a8   : > { %3452 = vmatmul.mubr.msk.f32.vlgmr.msra.gmra.mrb[24].mxu1 %vm733_vm3, %v918_v23  ;;  %v1216_v23 = vld [vmem:[#allocation2 + $0x508] sm:$0xff] }
 0x2a9   : > { %3862 = vmatpush3.bf16.msra.mxu1 %v3861_v46  ;;  %v3879_v46 = vpack.c.bf16 %v1234_v62, %v1231_v17  ;;  %v3819_v17 = vpack.c.bf16 %v1239_v16, %v1236_v11  ;;  %v1235_v62 = vld [vmem:[#allocation2 + $0x5a0] sm:$0xff] }
 0x2aa   : > { %3864 = vmatprep.subr.bf16.mxu1 %v3863_v35  ;;  %v1209_v35 = vld [vmem:[#allocation2 + $0x4d0] sm:$0xff] }
 0x2ab   : > { %v920_v51 = vpop.permute.xlu0 %919 }
 0x2ac   : > { %3454 = vmatprep.mubr.msk.f32.mxu1 %vm733_vm3, %v920_v51  ;;  %v1191_v51 = vld [vmem:[#allocation2 + $0x440] sm:$0xff] }
 0x2ad   : > { %3866 = vmatpush3.bf16.msra.mxu1 %v3865_v39  ;;  %v3787_v60 = vpack.c.bf16 %v1191_v51, %v1188_v15  ;;  %v3881_v39 = vpack.c.bf16 %v1186_v34, %v1183_v28  ;;  %v1189_v15 = vld [vmem:[#allocation2 + $0x430] sm:$0xff]  ;;  %v1212_v51 = vld [vmem:[#allocation2 + $0x4e8] sm:$0xff] }
 0x2ae   : > { %v1241_v28 = vld [vmem:[#allocation2 + $0x5d0] sm:$0xff]  ;;  %v1244_v34 = vld [vmem:[#allocation2 + $0x5e8] sm:$0xff] }
 0x2af   : > { %v922_v30 = vpop.permute.xlu1 %921  ;;  %3788 = vmatprep.subr.bf16.mxu0 %v3787_v60  ;;  %v3807_v60 = vpack.c.bf16 %v1221_v2, %v1218_v63  ;;  %v3825_v36 = vpack.c.bf16 %v1244_v34, %v1241_v28  ;;  %v1263_v28 = vld [vmem:[#allocation2 + $0x680] sm:$0xff]  ;;  %v1261_v34 = vld [vmem:[#allocation2 + $0x670] sm:$0xff] }
 0x2b0   : > { %3455 = vmatmul.mubr.msk.f32.gmra.mrb[26].mxu1 %vm733_vm3, %v922_v30  ;;  %v3867_v30 = vpack.c.bf16 %v1216_v23, %v1213_v27  ;;  %3790 = vmatpush1.bf16.msra.mxu0 %v3789_v8  ;;  %v3799_v27 = vpack.c.bf16 %v1209_v35, %v1206_v25  ;;  %v1192_v23 = vld [vmem:[#allocation2 + $0x448] sm:$0xff]  ;;  %v1226_v8 = vld [vmem:[#allocation2 + $0x558] sm:$0xff] }
 0x2b1   : > { %3792 = vmatprep.subr.bf16.mxu0 %v3791_v10  ;;  %v3815_v10 = vpack.c.bf16 %v1233_v58, %v1230_v40  ;;  %v1258_v40 = vld [vmem:[#allocation2 + $0x658] sm:$0xff] }
 0x2b2   : > { %3868 = vmatprep.subr.bf16.mxu1 %v3867_v30  ;;  %v1215_v30 = vld [vmem:[#allocation2 + $0x500] sm:$0xff] }
 0x2b3   : > { %v924_v59 = vpop.permute.xlu0 %923 }
 0x2b4   : > { %3457 = vmatprep.mubr.msk.f32.mxu1 %vm733_vm3, %v924_v59  ;;  %v1165_v59 = vld [vmem:[#allocation2 + $0x370] sm:$0xff]  ;;  %3794 = vmatpush1.bf16.msra.mxu0 %v3793_v29  ;;  %v1238_v29 = vld [vmem:[#allocation2 + $0x5b8] sm:$0xff] }
 0x2b5   : > { %3796 = vmatprep.subr.bf16.mxu0 %v3795_v20  ;;  %v3821_v19 = vpack.c.bf16 %v1238_v29, %v1235_v62  ;;  %v1243_v20 = vld [vmem:[#allocation2 + $0x5e0] sm:$0xff]  ;;  %v1253_v29 = vld [vmem:[#allocation2 + $0x630] sm:$0xff] }
 0x2b7   : > { %v926_v37 = vpop.permute.xlu1 %925 }
 0x2b8   : > { %3458 = vmatmul.mubr.msk.f32.gmra.mrb[28].mxu1 %vm733_vm3, %v926_v37  ;;  %v1168_v37 = vld [vmem:[#allocation2 + $0x388] sm:$0xff]  ;;  %3798 = vmatpush1.bf16.msra.mxu0 %v3797_v54  ;;  %v1198_v54 = vld [vmem:[#allocation2 + $0x478] sm:$0xff] }
 0x2b9   : > { %v3869_v33 = vpack.c.bf16 %v1168_v37, %v1165_v59  ;;  %v3801_v59 = vpack.c.bf16 %v1208_v48, %v1205_v38  ;;  %v3885_v37 = vpack.c.bf16 %v1192_v23, %v1189_v15  ;;  %3800 = vmatprep.subr.bf16.mxu0 %v3799_v27  ;;  %v3889_v38 = vpack.c.bf16 %v1198_v54, %v1195_v26  ;;  %v1251_v27 = vld [vmem:[#allocation2 + $0x620] sm:$0xff]  ;;  %v1249_v48 = vld [vmem:[#allocation2 + $0x610] sm:$0xff]  ;;  %v1252_v15 = vld [vmem:[#allocation2 + $0x628] sm:$0xff] }
 0x2ba   : > { %v3891_v23 = vpack.c.bf16 %v1252_v15, %v1249_v48  ;;  %v1259_v54 = vld [vmem:[#allocation2 + $0x660] sm:$0xff]  ;;  %v1269_v15 = vld [vmem:[#allocation2 + $0x6b0] sm:$0xff] }
 0x2bb   : > { %v928_v47 = vpop.permute.xlu0 %927  ;;  %3870 = vmatpush3.bf16.msra.mxu1 %v3869_v33 }
 0x2bc   : > { %3460 = vmatprep.mubr.msk.f32.mxu1 %vm733_vm3, %v928_v47  ;;  %v1219_v47 = vld [vmem:[#allocation2 + $0x520] sm:$0xff]  ;;  %3802 = vmatpush1.bf16.msra.mxu0 %v3801_v59 }
 0x2bf   : > { %v930_v43 = vpop.permute.xlu1 %929 }
 0x2c0   : > { %3461 = vmatmul.mubr.msk.f32.gmra.mrb[30].mxu1 %vm733_vm3, %v930_v43  ;;  %v1222_v43 = vld [vmem:[#allocation2 + $0x538] sm:$0xff] }
 0x2c1   : > { %v3871_v0 = vpack.c.bf16 %v1222_v43, %v1219_v47  ;;  %v3803_v47 = vpack.c.bf16 %v1215_v30, %v1212_v51  ;;  %v1211_v43 = vld [vmem:[#allocation2 + $0x4e0] sm:$0xff] }
 0x2c2   : > { %v3805_v33 = vpack.c.bf16 %v1214_v56, %v1211_v43 }
 0x2c3   : > { %3872 = vmatprep.subr.bf16.mxu1 %v3871_v0  ;;  %3804 = vmatprep.subr.bf16.mxu0 %v3803_v47  ;;  %v1220_v0 = vld [vmem:[#allocation2 + $0x528] sm:$0xff] }
 0x2c4   : > { %3874 = vmatpush3.bf16.msra.mxu1 %v3873_v7  ;;  %3806 = vmatpush1.bf16.msra.mxu0 %v3805_v33  ;;  %v3809_v57 = vpack.c.bf16 %v1220_v0, %v1217_v45  ;;  %v3813_v7 = vpack.c.bf16 %v1226_v8, %v1223_v6  ;;  %v1247_v0 = vld [vmem:[#allocation2 + $0x600] sm:$0xff] }
 0x2c5   : > { %3876 = vmatprep.subr.bf16.mxu1 %v3875_v61  ;;  %3808 = vmatprep.subr.bf16.mxu0 %v3807_v60  ;;  %v1232_v61 = vld [vmem:[#allocation2 + $0x588] sm:$0xff]  ;;  %v1255_v8 = vld [vmem:[#allocation2 + $0x640] sm:$0xff]  ;;  %v3829_v11 = vpack.c.bf16 %v1250_v4, %v1247_v0 }
 0x2c6   : > { %v3817_v14 = vpack.c.bf16 %v1232_v61, %v1229_v12  ;;  %v3895_v62 = vpack.c.bf16 %v1258_v40, %v1255_v8  ;;  %v1272_v4 = vld [vmem:[#allocation2 + $0x6c8] sm:$0xff] }
 0x2c8   : > { %3878 = vmatpush3.bf16.msra.mxu1 %v3877_v13  ;;  %3810 = vmatpush1.bf16.msra.mxu0 %v3809_v57  ;;  %v1245_v13 = vld [vmem:[#allocation2 + $0x5f0] sm:$0xff] }
 0x2c9   : > { %3880 = vmatprep.subr.bf16.mxu1 %v3879_v46  ;;  %3812 = vmatprep.subr.bf16.mxu0 %v3811_v1  ;;  %v3823_v25 = vpack.c.bf16 %v1245_v13, %v1242_v21  ;;  %v1246_v46 = vld [vmem:[#allocation2 + $0x5f8] sm:$0xff]  ;;  %v1257_v57 = vld [vmem:[#allocation2 + $0x650] sm:$0xff] }
 0x2ca   : > { %v3887_v35 = vpack.c.bf16 %v1246_v46, %v1243_v20  ;;  %v3831_v16 = vpack.c.bf16 %v1257_v57, %v1254_v53  ;;  %v1275_v57 = vld [vmem:[#allocation2 + $0x6e0] sm:$0xff] }
 0x2cc   : > { %3882 = vmatpush3.bf16.msra.mxu1 %v3881_v39  ;;  %3814 = vmatpush1.bf16.msra.mxu0 %v3813_v7  ;;  %v1248_v39 = vld [vmem:[#allocation2 + $0x608] sm:$0xff] }
 0x2cd   : > { %3884 = vmatprep.subr.bf16.mxu1 %v3883_v49  ;;  %3816 = vmatprep.subr.bf16.mxu0 %v3815_v10  ;;  %v3827_v49 = vpack.c.bf16 %v1251_v27, %v1248_v39  ;;  %v1266_v39 = vld [vmem:[#allocation2 + $0x698] sm:$0xff] }
 0x2d0   : > { %3886 = vmatpush3.bf16.msra.mxu1 %v3885_v37  ;;  %3818 = vmatpush1.bf16.msra.mxu0 %v3817_v14 }
 0x2d1   : > { %3820 = vmatprep.subr.bf16.mxu0 %v3819_v17  ;;  %3888 = vmatprep.subr.bf16.mxu1 %v3887_v35  ;;  %v1264_v35 = vld [vmem:[#allocation2 + $0x688] sm:$0xff] }
 0x2d4   : > { %3822 = vmatpush1.bf16.msra.mxu0 %v3821_v19  ;;  %3890 = vmatpush3.bf16.msra.mxu1 %v3889_v38  ;;  %v1262_v38 = vld [vmem:[#allocation2 + $0x678] sm:$0xff] }
 0x2d5   : > { %3824 = vmatprep.subr.bf16.mxu0 %v3823_v25  ;;  %3892 = vmatprep.subr.bf16.mxu1 %v3891_v23 }
 0x2d8   : > { %3826 = vmatpush1.bf16.msra.mxu0 %v3825_v36 }
 0x2d9   : > { %3828 = vmatprep.subr.bf16.mxu0 %v3827_v49  ;;  %v3899_v49 = vpack.c.bf16 %v1264_v35, %v1261_v34  ;;  %v1284_v35 = vld [vmem:[#allocation2 + $0x728] sm:$0xff] }
 0x325   : > { %v4627_v52 = vpop.f32.mrb[16].mxu1 }
 0x326   : > { %v4629_v31 = vpop.f32.mrb[17].mxu1 }
 0x329   : > { %v4631_v55 = vpop.f32.mrb[18].mxu1 }
 0x32a   : > { %v4633_v22 = vpop.f32.mrb[19].mxu1 }
 0x32d   : > { %v4635_v5 = vpop.f32.mrb[20].mxu1 }
 0x32e   : > { %v4637_v9 = vpop.f32.mrb[21].mxu1 }
 0x331   : > { %v4639_v18 = vpop.f32.mrb[22].mxu1 }
 0x332   : > { %v4641_v24 = vpop.f32.mrb[23].mxu1 }
 0x37b   : > { %v3453_v51 = vpop.f32.mrb[24].mxu1 }
 0x37c   : > { %v1013_v30 = vpop.f32.mrb[25].mxu1 }
 0x37d   : > { %v4155_v59 = vpack.i.bf16 %v3453_v51, %v1013_v30  ;;  %v1270_v51 = vld [vmem:[#allocation2 + $0x6b8] sm:$0xff] }
 0x37f   : > { %4156 = vrot.lane.b32.xlu0 %v4155_v59, %s4207_s8 }
 0x383   : > { %v3456_v37 = vpop.f32.mrb[26].mxu1 }
 0x384   : > { %1066 = vrot.lane.b32.xlu0 %v3456_v37, %s4207_s8  ;;  %v1023_v47 = vpop.f32.mrb[27].mxu1  ;;  %v3837_v37 = vpack.c.bf16 %v1262_v38, %v1259_v54  ;;  %v1288_v54 = vld [vmem:[#allocation2 + $0x748] sm:$0xff] }
 0x385   : > { %1064 = vrot.lane.b32.xlu1 %v1023_v47, %s4207_s8 }
 0x38b   : > { %v3459_v43 = vpop.f32.mrb[28].mxu1 }
 0x38c   : > { %1070 = vrot.lane.b32.xlu0 %v3459_v43, %s4207_s8  ;;  %v1033_v56 = vpop.f32.mrb[29].mxu1 }
 0x38d   : > { %1068 = vrot.lane.b32.xlu1 %v1033_v56, %s4207_s8  ;;  %v3839_v56 = vpack.c.bf16 %v1269_v15, %v1266_v39 }
 0x393   : > { %v3462_v63 = vpop.f32.mrb[30].mxu1 }
 0x394   : > { %1074 = vrot.lane.b32.xlu0 %v3462_v63, %s4207_s8  ;;  %v1043_v2 = vpop.f32.mrb[31].mxu1 }
 0x395   : > { %1072 = vrot.lane.b32.xlu1 %v1043_v2, %s4207_s8  ;;  %v1265_v2 = vld [vmem:[#allocation2 + $0x690] sm:$0xff] }
 0x3f1   : > { %v4157_v33 = vpop.permute.xlu0 %4156 }
 0x3f2   : > { %v4159_v60 = vunpack.i.h.bf16 %v4157_v33  ;;  %v4158_v45 = vunpack.i.l.bf16 %v4157_v33  ;;  %v1268_v33 = vld [vmem:[#allocation2 + $0x6a8] sm:$0xff] }
 0x3f3   : > { %v3841_v8 = vpack.c.bf16 %v1268_v33, %v1265_v2  ;;  %v1289_v33 = vld [vmem:[#allocation2 + $0x750] sm:$0xff] }
 0x3f4   : > { %v1086_v1 = vsel %vm1084_vm4, %v4627_v52, %v4159_v60  ;;  %v1085_v6 = vsel %vm1084_vm4, %v4629_v31, %v4158_v45  ;;  %v1256_v31 = vld [vmem:[#allocation2 + $0x648] sm:$0xff] }
 0x3f5   : > { %v1101_v58 = vrot.slane %v1085_v6, 1  ;;  %v1102_v7 = vrot.slane %v1086_v1, 1  ;;  %v1126_v10 = vrot.slane %v1085_v6, 2  ;;  %v1127_v12 = vrot.slane %v1086_v1, 2 }
 0x3f6   : > { %v1067_v61 = vpop.permute.xlu0 %1066  ;;  %v3833_v36 = vpack.c.bf16 %v1256_v31, %v1253_v29 }
 0x3f7   : > { %v4649_v14 = vsel %vm1084_vm4, %v4631_v55, %v1067_v61  ;;  %v1065_v17 = vpop.permute.xlu1 %1064  ;;  %v1103_v52 = vsel %vm179_vm0, %v1101_v58, %v1102_v7  ;;  %v4653_v19 = vsel %vm1125_vm5, %v1126_v10, %v1127_v12  ;;  %v1260_v55 = vld [vmem:[#allocation2 + $0x668] sm:$0xff]  ;;  %v1271_v58 = vld [vmem:[#allocation2 + $0x6c0] sm:$0xff]  ;;  %v1278_v10 = vld [vmem:[#allocation2 + $0x6f8] sm:$0xff]  ;;  %v3843_v61 = vpack.c.bf16 %v1275_v57, %v1272_v4 }
 0x3f8   : > { %v1106_v21 = vrot.slane %v4649_v14, 1  ;;  %v1131_v13 = vrot.slane %v4649_v14, 2  ;;  %v1087_v20 = vsel %vm1084_vm4, %v4633_v22, %v1065_v17  ;;  %1377 = vmatprep.mubr.f32.mxu0 %v1103_v52  ;;  %1603 = vmatprep.mubr.f32.mxu1 %v1103_v52  ;;  %v3835_v48 = vpack.c.bf16 %v1263_v28, %v1260_v55  ;;  %v1279_v17 = vld [vmem:[#allocation2 + $0x700] sm:$0xff]  ;;  %v1282_v52 = vld [vmem:[#allocation2 + $0x718] sm:$0xff] }
 0x3f9   : > { %v1104_v25 = vrot.slane %v1087_v20, 1  ;;  %v1129_v46 = vrot.slane %v1087_v20, 2  ;;  %1378 = vmatmul.mubr.f32.vlgmr.msra.gmra.mrb[16].mxu0 %v1085_v6  ;;  %1604 = vmatmul.mubr.f32.vlgmr.msra.gmra.mrb[32].mxu1 %v1085_v6  ;;  %v1276_v6 = vld [vmem:[#allocation2 + $0x6e8] sm:$0xff]  ;;  %v3911_v55 = vpack.c.bf16 %v1282_v52, %v1279_v17 }
 0x3fa   : > { %3830 = vmatpush1.bf16.msra.mxu0 %v3829_v11  ;;  %3894 = vmatpush3.bf16.msra.mxu1 %v3891_v23  ;;  %v1267_v23 = vld [vmem:[#allocation2 + $0x6a0] sm:$0xff] }
 0x3fb   : > { %v1105_v26 = vsel %vm179_vm0, %v1102_v7, %v1104_v25  ;;  %3832 = vmatprep.subr.bf16.mxu0 %v3831_v16  ;;  %3896 = vmatprep.subr.bf16.mxu1 %v3895_v62  ;;  %v1107_v22 = vsel %vm179_vm0, %v1104_v25, %v1106_v21  ;;  %v4664_v27 = vsel %vm1125_vm5, %v1127_v12, %v1129_v46  ;;  %v1274_v7 = vld [vmem:[#allocation2 + $0x6d8] sm:$0xff]  ;;  %v1281_v16 = vld [vmem:[#allocation2 + $0x710] sm:$0xff] }
 0x3fc   : > { %1383 = vmatprep.mubr.f32.mxu0 %v1105_v26  ;;  %1608 = vmatprep.mubr.f32.mxu1 %v1105_v26  ;;  %v4669_v30 = vsel %vm1125_vm5, %v1129_v46, %v1131_v13  ;;  %v3903_v63 = vpack.c.bf16 %v1270_v51, %v1267_v23  ;;  %v3845_v31 = vpack.c.bf16 %v1274_v7, %v1271_v58  ;;  %v1277_v25 = vld [vmem:[#allocation2 + $0x6f0] sm:$0xff]  ;;  %v1280_v46 = vld [vmem:[#allocation2 + $0x708] sm:$0xff]  ;;  %v1287_v26 = vld [vmem:[#allocation2 + $0x740] sm:$0xff] }
 0x3fd   : > { %1384 = vmatmul.mubr.f32.gmra.mrb[18].mxu0 %v1086_v1  ;;  %1609 = vmatmul.mubr.f32.gmra.mrb[34].mxu1 %v1086_v1  ;;  %v1273_v1 = vld [vmem:[#allocation2 + $0x6d0] sm:$0xff]  ;;  %v3849_v38 = vpack.c.bf16 %v1280_v46, %v1277_v25  ;;  %v3851_v23 = vpack.c.bf16 %v1287_v26, %v1284_v35 }
 0x3fe   : > { %3834 = vmatpush1.bf16.msra.mxu0 %v3833_v36  ;;  %3898 = vmatpush3.bf16.msra.mxu1 %v3895_v62  ;;  %v1071_v59 = vpop.permute.xlu0 %1070  ;;  %v3907_v11 = vpack.c.bf16 %v1276_v6, %v1273_v1 }
 0x3ff   : > { %v4673_v47 = vsel %vm1084_vm4, %v4635_v5, %v1071_v59  ;;  %1389 = vmatprep.mubr.f32.mxu0 %v1107_v22  ;;  %1613 = vmatprep.mubr.f32.mxu1 %v1107_v22  ;;  %v1069_v43 = vpop.permute.xlu1 %1068  ;;  %v1285_v22 = vld [vmem:[#allocation2 + $0x730] sm:$0xff]  ;;  %v1290_v59 = vld [vmem:[#allocation2 + $0x758] sm:$0xff] }
 0x400   : > { %v1110_v60 = vrot.slane %v4673_v47, 1  ;;  %v1135_v45 = vrot.slane %v4673_v47, 2  ;;  %v1089_v0 = vsel %vm1084_vm4, %v4637_v9, %v1069_v43  ;;  %3836 = vmatprep.subr.bf16.mxu0 %v3835_v48  ;;  %3900 = vmatprep.subr.bf16.mxu1 %v3899_v49  ;;  %v1283_v48 = vld [vmem:[#allocation2 + $0x720] sm:$0xff]  ;;  %v3915_v51 = vpack.c.bf16 %v1288_v54, %v1285_v22  ;;  %v1293_v43 = vld [vmem:[#allocation2 + $0x770] sm:$0xff] }
 0x401   : > { %v1108_v53 = vrot.slane %v1089_v0, 1  ;;  %v1133_v5 = vrot.slane %v1089_v0, 2  ;;  %1390 = vmatmul.mubr.f32.gmra.mrb[20].mxu0 %v1087_v20  ;;  %1614 = vmatmul.mubr.f32.gmra.mrb[36].mxu1 %v1087_v20  ;;  %v3847_v20 = vpack.c.bf16 %v1281_v16, %v1278_v10 }
 0x402   : > { %3838 = vmatpush1.bf16.msra.mxu0 %v3837_v37  ;;  %3902 = vmatpush3.bf16.msra.mxu1 %v3899_v49  ;;  %v1286_v49 = vld [vmem:[#allocation2 + $0x738] sm:$0xff] }
 0x403   : > { %v1109_v40 = vsel %vm179_vm0, %v1106_v21, %v1108_v53  ;;  %3840 = vmatprep.subr.bf16.mxu0 %v3839_v56  ;;  %3904 = vmatprep.subr.bf16.mxu1 %v3903_v63  ;;  %v1111_v9 = vsel %vm179_vm0, %v1108_v53, %v1110_v60  ;;  %v4688_v12 = vsel %vm1125_vm5, %v1131_v13, %v1133_v5  ;;  %v1291_v56 = vld [vmem:[#allocation2 + $0x760] sm:$0xff]  ;;  %v4732_v53 = vrot.slane %v4203_v41, 2 }
 0x404   : > { %1395 = vmatprep.mubr.f32.mxu0 %v1109_v40  ;;  %1618 = vmatprep.mubr.f32.mxu1 %v1109_v40  ;;  %v4693_v62 = vsel %vm1125_vm5, %v1133_v5, %v1135_v45  ;;  %v3853_v2 = vpack.c.bf16 %v1286_v49, %v1283_v48 }
 0x405   : > { %1396 = vmatmul.mubr.f32.gmra.mrb[22].mxu0 %v4649_v14  ;;  %1619 = vmatmul.mubr.f32.gmra.mrb[38].mxu1 %v4649_v14 }
 0x406   : > { %3842 = vmatpush1.bf16.msra.mxu0 %v3841_v8  ;;  %3906 = vmatpush3.bf16.msra.mxu1 %v3903_v63  ;;  %v1075_v29 = vpop.permute.xlu0 %1074  ;;  %v1294_v63 = vld [vmem:[#allocation2 + $0x778] sm:$0xff] }
 0x407   : > { %v4699_v21 = vsel %vm1084_vm4, %v4639_v18, %v1075_v29  ;;  %1401 = vmatprep.mubr.f32.mxu0 %v1111_v9  ;;  %1623 = vmatprep.mubr.f32.mxu1 %v1111_v9  ;;  %v1073_v13 = vpop.permute.xlu1 %1072 }
 0x408   : > { %v1114_v28 = vrot.slane %v4699_v21, 1  ;;  %v1139_v34 = vrot.slane %v4699_v21, 2  ;;  %v1091_v14 = vsel %vm1084_vm4, %v4641_v24, %v1073_v13  ;;  %3844 = vmatprep.subr.bf16.mxu0 %v3843_v61  ;;  %3908 = vmatprep.subr.bf16.mxu1 %v3907_v11 }
 0x409   : > { %v1112_v36 = vrot.slane %v1091_v14, 1  ;;  %v1137_v18 = vrot.slane %v1091_v14, 2  ;;  %1402 = vmatmul.mubr.f32.gmra.mrb[24].mxu0 %v1089_v0  ;;  %1624 = vmatmul.mubr.f32.gmra.mrb[40].mxu1 %v1089_v0  ;;  %v3919_v0 = vpack.c.bf16 %v1294_v63, %v1291_v56 }
 0x40a   : > { %3846 = vmatpush1.bf16.msra.mxu0 %v3845_v31  ;;  %3910 = vmatpush3.bf16.msra.mxu1 %v3907_v11  ;;  %v1296_v31 = vld [vmem:[#allocation2 + $0x1429] ss:$8 sm:$0x7] }
 0x40b   : > { %v1113_v39 = vsel %vm179_vm0, %v1110_v60, %v1112_v36  ;;  %3848 = vmatprep.subr.bf16.mxu0 %v3847_v20  ;;  %3912 = vmatprep.subr.bf16.mxu1 %v3911_v55  ;;  %v1115_v24 = vsel %vm179_vm0, %v1112_v36, %v1114_v28  ;;  %v1138_v15 = vsel %vm1125_vm5, %v1135_v45, %v1137_v18  ;;  %v1292_v60 = vld [vmem:[#allocation2 + $0x768] sm:$0xff] }
 0x40c   : > { %1407 = vmatprep.mubr.f32.mxu0 %v1113_v39  ;;  %1628 = vmatprep.mubr.f32.mxu1 %v1113_v39  ;;  %v1140_v37 = vsel %vm1125_vm5, %v1137_v18, %v1139_v34  ;;  %v3855_v45 = vpack.c.bf16 %v1293_v43, %v1290_v59  ;;  %v3857_v4 = vpack.c.bf16 %v1292_v60, %v1289_v33 }
 0x40d   : > { %1408 = vmatmul.mubr.f32.gmra.mrb[26].mxu0 %v4673_v47  ;;  %1629 = vmatmul.mubr.f32.gmra.mrb[42].mxu1 %v4673_v47  ;;  %v1116_v47 = vsel %vm179_vm0, %v1114_v28, %v4331_v42  ;;  %v1309_v20 = vrot.slane %v1296_v31, %v314_v32  ;;  %v4750_v25 = vrot.slane %v1296_v31, %v306_v50 }
 0x40e   : > { %3850 = vmatpush1.bf16.msra.mxu0 %v3849_v38  ;;  %3914 = vmatpush3.bf16.msra.mxu1 %v3911_v55  ;;  %v4754_v28 = vrot.slane %v1296_v31, %v310_v3 }
 0x40f   : > { %1413 = vmatprep.mubr.f32.mxu0 %v1115_v24  ;;  %1633 = vmatprep.mubr.f32.mxu1 %v1115_v24 }
 0x410   : > { %3852 = vmatprep.subr.bf16.mxu0 %v3851_v23  ;;  %3916 = vmatprep.subr.bf16.mxu1 %v3915_v51 }
 0x411   : > { %1414 = vmatmul.mubr.f32.gmra.mrb[28].mxu0 %v1091_v14  ;;  %1634 = vmatmul.mubr.f32.gmra.mrb[44].mxu1 %v1091_v14 }
 0x412   : > { %3854 = vmatpush1.bf16.msra.mxu0 %v3853_v2  ;;  %3918 = vmatpush3.bf16.msra.mxu1 %v3915_v51 }
 0x413   : > { %1419 = vmatprep.mubr.f32.mxu0 %v1116_v47  ;;  %1638 = vmatprep.mubr.f32.mxu1 %v1116_v47 }
 0x414   : > { %3856 = vmatprep.subr.bf16.mxu0 %v3855_v45  ;;  %3920 = vmatprep.subr.bf16.mxu1 %v3919_v0 }
 0x415   : > { %1420 = vmatmul.mubr.f32.gmra.mrb[30].mxu0 %v4699_v21  ;;  %1639 = vmatmul.mubr.f32.gmra.mrb[46].mxu1 %v4699_v21 }
 0x416   : > { %3858 = vmatpush1.bf16.msra.mxu0 %v3857_v4  ;;  %3922 = vmatpush3.bf16.msra.mxu1 %v3919_v0 }
 0x417   : > { %3495 = vmatprep.mubr.f32.mxu1 %v4653_v19  ;;  %1490 = vmatprep.mubr.f32.mxu0 %v4203_v41 }
 0x419   : > { %1491 = vmatmul.mubr.f32.vlgmr.msra.gmra.mrb[16].mxu0 %v4653_v19  ;;  %3496 = vmatmul.mubr.f32.vlgmr.msra.gmra.mrb[48].mxu1 %v4664_v27  ;;  %v1142_v19 = vsel %vm1125_vm5, %v1139_v34, %v4732_v53 }
 0x41a   : > { %3498 = vmatprep.mubr.f32.mxu1 %v4669_v30  ;;  %1496 = vmatprep.mubr.f32.mxu0 %v4203_v41 }
 0x41d   : > { %1497 = vmatmul.mubr.f32.gmra.mrb[18].mxu0 %v4664_v27  ;;  %3499 = vmatmul.mubr.f32.gmra.mrb[50].mxu1 %v4688_v12 }
 0x41e   : > { %3501 = vmatprep.mubr.f32.mxu1 %v4693_v62  ;;  %1502 = vmatprep.mubr.f32.mxu0 %v4203_v41 }
 0x421   : > { %1503 = vmatmul.mubr.f32.gmra.mrb[20].mxu0 %v4669_v30  ;;  %3502 = vmatmul.mubr.f32.gmra.mrb[52].mxu1 %v1138_v15 }
 0x422   : > { %3504 = vmatprep.mubr.f32.mxu1 %v1140_v37  ;;  %1508 = vmatprep.mubr.f32.mxu0 %v4203_v41 }
 0x425   : > { %1509 = vmatmul.mubr.f32.gmra.mrb[22].mxu0 %v4688_v12  ;;  %3505 = vmatmul.mubr.f32.gmra.mrb[54].mxu1 %v1142_v19 }
 0x426   : > { %1514 = vmatprep.mubr.f32.mxu0 %v4203_v41 }
 0x429   : > { %1515 = vmatmul.mubr.f32.gmra.mrb[24].mxu0 %v4693_v62 }
 0x42a   : > { %1520 = vmatprep.mubr.f32.mxu0 %v4203_v41 }
 0x42d   : > { %1521 = vmatmul.mubr.f32.gmra.mrb[26].mxu0 %v1138_v15 }
 0x42e   : > { %1526 = vmatprep.mubr.f32.mxu0 %v4203_v41 }
 0x431   : > { %1527 = vmatmul.mubr.f32.gmra.mrb[28].mxu0 %v1140_v37 }
 0x432   : > { %1532 = vmatprep.mubr.f32.mxu0 %v4203_v41 }
 0x435   : > { %1533 = vmatmul.mubr.f32.gmra.mrb[30].mxu0 %v1142_v19 }
 0x4cc   : > { %v3169_v27 = vpop.f32.mrb[32].mxu1 }
 0x4cd   : > { %v3170_v30 = vpop.f32.mrb[33].mxu1 }
 0x4ce   : > { %v3171_v5 = vadd.f32 %v3170_v30, %v3169_v27 }
 0x4d0   : > { %v3172_v57 = vpop.f32.mrb[34].mxu1  ;;  %v1606_v36 = vadd.f32 %v3171_v5, %v1309_v20 }
 0x4d1   : > { %v3173_v1 = vpop.f32.mrb[35].mxu1 }
 0x4d2   : > { %v3174_v6 = vadd.f32 %v3173_v1, %v3172_v57 }
 0x4d4   : > { %v3175_v8 = vpop.f32.mrb[36].mxu1  ;;  %v1611_v34 = vadd.f32 %v3174_v6, %v1309_v20 }
 0x4d5   : > { %v3176_v40 = vpop.f32.mrb[37].mxu1 }
 0x4d6   : > { %v3177_v9 = vadd.f32 %v3176_v40, %v3175_v8 }
 0x4d8   : > { %v3178_v58 = vpop.f32.mrb[38].mxu1  ;;  %v1616_v48 = vadd.f32 %v3177_v9, %v1309_v20 }
 0x4d9   : > { %v3179_v7 = vpop.f32.mrb[39].mxu1 }
 0x4da   : > { %v3180_v10 = vadd.f32 %v3179_v7, %v3178_v58 }
 0x4dc   : > { %v3181_v12 = vpop.f32.mrb[40].mxu1  ;;  %v1621_v38 = vadd.f32 %v3180_v10, %v1309_v20 }
 0x4dd   : > { %v3182_v61 = vpop.f32.mrb[41].mxu1 }
 0x4de   : > { %v3183_v11 = vadd.f32 %v3182_v61, %v3181_v12 }
 0x4e0   : > { %v3184_v16 = vpop.f32.mrb[42].mxu1  ;;  %v1626_v60 = vadd.f32 %v3183_v11, %v1309_v20 }
 0x4e1   : > { %v3185_v17 = vpop.f32.mrb[43].mxu1 }
 0x4e2   : > { %v3186_v52 = vadd.f32 %v3185_v17, %v3184_v16 }
 0x4e4   : > { %v3187_v62 = vpop.f32.mrb[44].mxu1  ;;  %v1631_v43 = vadd.f32 %v3186_v52, %v1309_v20 }
 0x4e5   : > { %v3188_v29 = vpop.f32.mrb[45].mxu1 }
 0x4e6   : > { %v3189_v21 = vadd.f32 %v3188_v29, %v3187_v62 }
 0x4e8   : > { %v3190_v13 = vpop.f32.mrb[46].mxu1  ;;  %v1636_v8 = vadd.f32 %v3189_v21, %v1309_v20 }
 0x4e9   : > { %v3191_v55 = vpop.f32.mrb[47].mxu1 }
 0x4ea   : > { %v3192_v46 = vadd.f32 %v3191_v55, %v3190_v13 }
 0x4ec   : > { %v1492_v14 = vpop.f32.mrb[16].mxu0  ;;  %v3497_v35 = vpop.f32.mrb[48].mxu1  ;;  %v1641_v30 = vadd.f32 %v3192_v46, %v1309_v20 }
 0x4ed   : > { %v4757_v18 = vadd.f32 %v1492_v14, %v4750_v25  ;;  %v1716_v26 = vadd.f32 %v3497_v35, %v1611_v34  ;;  %v1494_v22 = vpop.f32.mrb[17].mxu0  ;;  %v1710_v32 = vpop.f32.mrb[49].mxu1  ;;  %v1773_v35 = vld [vmem:[#allocation2 + $0x1008] sm:$0xff] }
 0x4ee   : > { %v4760_v54 = vadd.f32 %v1494_v22, %v4754_v28  ;;  %v1711_v50 = vadd.f32 %v1710_v32, %v1606_v36  ;;  %v1774_v36 = vld [vmem:[#allocation2 + $0x1020] sm:$0xff] }
 0x4ef   : > { %v1754_v56 = vmax.f32 %v1716_v26, 0.0  ;;  %v1775_v26 = vld [vmem:[#allocation2 + $0x1038] sm:$0xff] }
 0x4f0   : > { %v1750_v39 = vmax.f32 %v4760_v54, 0.0  ;;  %v1751_v44 = vmax.f32 %v1711_v50, 0.0  ;;  %v1498_v3 = vpop.f32.mrb[18].mxu0  ;;  %v3500_v24 = vpop.f32.mrb[50].mxu1  ;;  %v4209_v50 = vmov 0.0|0.0  }
 0x4f1   : > { %v4764_v49 = vadd.f32 %v1498_v3, %v4750_v25  ;;  %v1726_v15 = vadd.f32 %v3500_v24, %v1621_v38  ;;  %v1500_v23 = vpop.f32.mrb[19].mxu0  ;;  %v1720_v51 = vpop.f32.mrb[51].mxu1  ;;  %3923 = vmatprep.subr.bf16.mxu1 %v4209_v50  ;;  %v3924_v38 = vpack.c.bf16 %v1774_v36, %v1773_v35 }
 0x4f2   : > { %v4767_v59 = vadd.f32 %v1500_v23, %v4754_v28  ;;  %v1721_v37 = vadd.f32 %v1720_v51, %v1616_v48  ;;  %1809 = vrot.lane.b32.xlu0 %v1751_v44, %s4208_s10  ;;  %1807 = vrot.lane.b32.xlu1 %v1750_v39, %s4208_s10  ;;  %v1776_v44 = vld [vmem:[#allocation2 + $0x1050] sm:$0xff]  ;;  %v1777_v51 = vld [vmem:[#allocation2 + $0x1068] sm:$0xff] }
 0x4f3   : > { %v1760_v61 = vmax.f32 %v1726_v15, 0.0  ;;  %3925 = vmatpush1.bf16.msra.mxu1 %v3924_v38  ;;  %v3927_v24 = vpack.c.bf16 %v1776_v44, %v1775_v26  ;;  %v1752_v26 = vmax.f32 %v4764_v49, 0.0 }
 0x4f4   : > { %v1753_v63 = vmax.f32 %v4767_v59, 0.0  ;;  %v1504_v2 = vpop.f32.mrb[20].mxu0  ;;  %v3503_v33 = vpop.f32.mrb[52].mxu1  ;;  %v1757_v5 = vmax.f32 %v1721_v37, 0.0  ;;  %3926 = vmatprep.subr.bf16.mxu1 %v4209_v50  ;;  %v1778_v37 = vld [vmem:[#allocation2 + $0x1080] sm:$0xff] }
 0x4f5   : > { %v4775_v45 = vadd.f32 %v1504_v2, %v4750_v25  ;;  %v1736_v0 = vadd.f32 %v3503_v33, %v1631_v43  ;;  %v1506_v47 = vpop.f32.mrb[21].mxu0  ;;  %v1730_v4 = vpop.f32.mrb[53].mxu1  ;;  %v3930_v33 = vpack.c.bf16 %v1778_v37, %v1777_v51 }
 0x4f6   : > { %v4778_v19 = vadd.f32 %v1506_v47, %v4754_v28  ;;  %v1731_v27 = vadd.f32 %v1730_v4, %v1626_v60  ;;  %1813 = vrot.lane.b32.xlu0 %v1754_v56, %s4208_s10  ;;  %1811 = vrot.lane.b32.xlu1 %v1753_v63, %s4208_s10  ;;  %v1779_v47 = vld [vmem:[#allocation2 + $0x1098] sm:$0xff]  ;;  %v1780_v4 = vld [vmem:[#allocation2 + $0x10b0] sm:$0xff] }
 0x4f7   : > { %v1766_v46 = vmax.f32 %v1736_v0, 0.0  ;;  %3928 = vmatpush1.bf16.msra.mxu1 %v3927_v24  ;;  %v1755_v38 = vmax.f32 %v4775_v45, 0.0 }
 0x4f8   : > { %v1756_v57 = vmax.f32 %v4778_v19, 0.0  ;;  %v1510_v1 = vpop.f32.mrb[22].mxu0  ;;  %v3506_v6 = vpop.f32.mrb[54].mxu1  ;;  %v1763_v29 = vmax.f32 %v1731_v27, 0.0  ;;  %3929 = vmatprep.subr.bf16.mxu1 %v4209_v50  ;;  %v1782_v27 = vld [vmem:[#allocation2 + $0x10e0] sm:$0xff] }
 0x4f9   : > { %v4786_v40 = vadd.f32 %v1510_v1, %v4750_v25  ;;  %v1746_v9 = vadd.f32 %v3506_v6, %v1641_v30  ;;  %v1512_v58 = vpop.f32.mrb[23].mxu0  ;;  %v1740_v7 = vpop.f32.mrb[55].mxu1  ;;  %v1784_v1 = vld [vmem:[#allocation2 + $0x1110] sm:$0xff] }
 0x4fa   : > { %v4789_v10 = vadd.f32 %v1512_v58, %v4754_v28  ;;  %v1741_v12 = vadd.f32 %v1740_v7, %v1636_v8  ;;  %1817 = vrot.lane.b32.xlu0 %v1757_v5, %s4208_s10  ;;  %1815 = vrot.lane.b32.xlu1 %v1756_v57, %s4208_s10  ;;  %v1783_v5 = vld [vmem:[#allocation2 + $0x10f8] sm:$0xff]  ;;  %v1785_v8 = vld [vmem:[#allocation2 + $0x1128] sm:$0xff] }
 0x4fb   : > { %v1772_v60 = vmax.f32 %v1746_v9, 0.0  ;;  %3931 = vmatpush1.bf16.msra.mxu1 %v3930_v33  ;;  %v3939_v6 = vpack.c.bf16 %v1784_v1, %v1783_v5  ;;  %v1786_v9 = vld [vmem:[#allocation2 + $0x1140] sm:$0xff]  ;;  %v1787_v7 = vld [vmem:[#allocation2 + $0x1158] sm:$0xff] }
 0x4fc   : > { %v1759_v11 = vmax.f32 %v4789_v10, 0.0  ;;  %v1516_v16 = vpop.f32.mrb[24].mxu0  ;;  %v1769_v48 = vmax.f32 %v1741_v12, 0.0  ;;  %3932 = vmatprep.subr.bf16.mxu1 %v4209_v50  ;;  %v3942_v58 = vpack.c.bf16 %v1786_v9, %v1785_v8  ;;  %v1788_v12 = vld [vmem:[#allocation2 + $0x1170] sm:$0xff]  ;;  %v2255_v5 = vld [vmem:[#allocation2 + $0xc00] sm:$0xff]  ;;  %v2256_v1 = vld [vmem:[#allocation2 + $0xc18] sm:$0xff] }
 0x4fd   : > { %v4797_v17 = vadd.f32 %v1516_v16, %v4750_v25  ;;  %v1518_v52 = vpop.f32.mrb[25].mxu0  ;;  %v1789_v16 = vld [vmem:[#allocation2 + $0x1188] sm:$0xff]  ;;  %v3982_v9 = vpack.c.bf16 %v2256_v1, %v2255_v5  ;;  %v2257_v5 = vld [vmem:[#allocation2 + $0xc30] sm:$0xff] }
 0x4fe   : > { %v4800_v62 = vadd.f32 %v1518_v52, %v4754_v28  ;;  %1821 = vrot.lane.b32.xlu0 %v1760_v61, %s4208_s10  ;;  %1819 = vrot.lane.b32.xlu1 %v1759_v11, %s4208_s10  ;;  %v3945_v61 = vpack.c.bf16 %v1788_v12, %v1787_v7  ;;  %v1790_v52 = vld [vmem:[#allocation2 + $0x11a0] sm:$0xff]  ;;  %v2258_v1 = vld [vmem:[#allocation2 + $0xc48] sm:$0xff] }
 0x4ff   : > { %v1761_v37 = vmax.f32 %v4797_v17, 0.0 }
 0x500   : > { %v1762_v31 = vmax.f32 %v4800_v62, 0.0  ;;  %v1522_v21 = vpop.f32.mrb[26].mxu0 }
 0x501   : > { %v4808_v13 = vadd.f32 %v1522_v21, %v4750_v25  ;;  %v1524_v20 = vpop.f32.mrb[27].mxu0  ;;  %v1749_v21 = vmax.f32 %v4757_v18, 0.0 }
 0x502   : > { %v4811_v55 = vadd.f32 %v1524_v20, %v4754_v28  ;;  %1825 = vrot.lane.b32.xlu0 %v1763_v29, %s4208_s10  ;;  %1823 = vrot.lane.b32.xlu1 %v1762_v31, %s4208_s10  ;;  %v3948_v29 = vpack.c.bf16 %v1790_v52, %v1789_v16  ;;  %v2209_v16 = vld [vmem:[#allocation2 + $0x7b0] sm:$0xff]  ;;  %v2210_v52 = vld [vmem:[#allocation2 + $0x7c8] sm:$0xff] }
 0x504   : > { %v1765_v34 = vmax.f32 %v4811_v55, 0.0  ;;  %v1528_v14 = vpop.f32.mrb[28].mxu0 }
 0x505   : > { %v4819_v22 = vadd.f32 %v1528_v14, %v4750_v25  ;;  %v1530_v32 = vpop.f32.mrb[29].mxu0 }
 0x506   : > { %v4822_v3 = vadd.f32 %v1530_v32, %v4754_v28  ;;  %1829 = vrot.lane.b32.xlu0 %v1766_v46, %s4208_s10  ;;  %1827 = vrot.lane.b32.xlu1 %v1765_v34, %s4208_s10 }
 0x508   : > { %v1768_v15 = vmax.f32 %v4822_v3, 0.0  ;;  %v1534_v23 = vpop.f32.mrb[30].mxu0 }
 0x509   : > { %v4830_v43 = vadd.f32 %v1534_v23, %v4750_v25  ;;  %v1536_v56 = vpop.f32.mrb[31].mxu0  ;;  %v3933_v25 = vpack.c.bf16 %v1780_v4, %v1779_v47 }
 0x50a   : > { %v4833_v2 = vadd.f32 %v1536_v56, %v4754_v28  ;;  %1833 = vrot.lane.b32.xlu0 %v1769_v48, %s4208_s10  ;;  %1831 = vrot.lane.b32.xlu1 %v1768_v15, %s4208_s10  ;;  %v1781_v28 = vld [vmem:[#allocation2 + $0x10c8] sm:$0xff]  ;;  %v1758_v48 = vmax.f32 %v4786_v40, 0.0 }
 0x50b   : > { %3934 = vmatpush1.bf16.msra.mxu1 %v3933_v25  ;;  %v3936_v30 = vpack.c.bf16 %v1782_v27, %v1781_v28  ;;  %v2223_v25 = vld [vmem:[#allocation2 + $0x900] sm:$0xff]  ;;  %v2224_v28 = vld [vmem:[#allocation2 + $0x918] sm:$0xff]  ;;  %v1770_v3 = vmax.f32 %v4830_v43, 0.0  ;;  %v2229_v43 = vld [vmem:[#allocation2 + $0x990] sm:$0xff] }
 0x50c   : > { %v1771_v0 = vmax.f32 %v4833_v2, 0.0  ;;  %3935 = vmatprep.subr.bf16.mxu1 %v4209_v50  ;;  %v2207_v27 = vld [vmem:[#allocation2 + $0x780] sm:$0xff] }
 0x50d   : > { %v2231_v2 = vld [vmem:[#allocation2 + $0x9c0] sm:$0xff] }
 0x50e   : > { %1837 = vrot.lane.b32.xlu0 %v1772_v60, %s4208_s10  ;;  %1835 = vrot.lane.b32.xlu1 %v1771_v0, %s4208_s10  ;;  %v1764_v60 = vmax.f32 %v4808_v13, 0.0  ;;  %v3950_v13 = vpack.c.bf16 %v2224_v28, %v2223_v25  ;;  %v2218_v25 = vld [vmem:[#allocation2 + $0x888] sm:$0xff] }
 0x50f   : > { %3937 = vmatpush1.bf16.msra.mxu1 %v3936_v30  ;;  %v2208_v30 = vld [vmem:[#allocation2 + $0x798] sm:$0xff] }
 0x510   : > { %3938 = vmatprep.subr.bf16.mxu1 %v4209_v50  ;;  %3951 = vmatprep.subr.bf16.mxu0 %v3950_v13  ;;  %v2240_v13 = vld [vmem:[#allocation2 + $0xa98] sm:$0xff] }
 0x513   : > { %3940 = vmatpush1.bf16.msra.mxu1 %v3939_v6  ;;  %v1767_v6 = vmax.f32 %v4819_v22, 0.0 }
 0x514   : > { %3941 = vmatprep.subr.bf16.mxu1 %v4209_v50 }
 0x517   : > { %3943 = vmatpush1.bf16.msra.mxu1 %v3942_v58  ;;  %v2225_v58 = vld [vmem:[#allocation2 + $0x930] sm:$0xff] }
 0x518   : > { %3944 = vmatprep.subr.bf16.mxu1 %v4209_v50 }
 0x51b   : > { %3946 = vmatpush1.bf16.msra.mxu1 %v3945_v61  ;;  %v2226_v61 = vld [vmem:[#allocation2 + $0x948] sm:$0xff] }
 0x51c   : > { %3947 = vmatprep.subr.bf16.mxu1 %v4209_v50  ;;  %v3954_v22 = vpack.c.bf16 %v2226_v61, %v2225_v58  ;;  %v3986_v58 = vpack.c.bf16 %v2258_v1, %v2257_v5  ;;  %v2242_v61 = vld [vmem:[#allocation2 + $0xac8] sm:$0xff] }
 0x51d   : > { %v2250_v5 = vld [vmem:[#allocation2 + $0xb88] sm:$0xff] }
 0x51f   : > { %3949 = vmatpush1.bf16.msra.mxu1 %v3948_v29 }
 0x520   : > { %3983 = vmatprep.subr.bf16.mxu1 %v3982_v9 }
 0x564   : > { %v1810_v20 = vpop.permute.xlu0 %1809  ;;  %v1808_v46 = vpop.permute.xlu1 %1807 }
 0x565   : > { %v4847_v14 = vmax.f32 %v1750_v39, %v1810_v20  ;;  %v1840_v35 = vsel %vm1839_vm6, %v1808_v46, %v1810_v20  ;;  %v2227_v20 = vld [vmem:[#allocation2 + $0x960] sm:$0xff]  ;;  %v2228_v46 = vld [vmem:[#allocation2 + $0x978] sm:$0xff] }
 0x566   : > { %v4850_v36 = vmax.f32 %v1749_v21, %v1840_v35  ;;  %v3956_v21 = vpack.c.bf16 %v2210_v52, %v2209_v16  ;;  %v2259_v52 = vld [vmem:[#allocation2 + $0xc60] sm:$0xff] }
 0x567   : > { %1898 = vrot.lane.b32.xlu0 %v4847_v14, %s4210_s11 }
 0x568   : > { %v1814_v32 = vpop.permute.xlu0 %1813  ;;  %v1812_v50 = vpop.permute.xlu1 %1811  ;;  %1896 = vrot.lane.b32.xlu1 %v4850_v36, %s4210_s11 }
 0x569   : > { %v4859_v18 = vmax.f32 %v1753_v63, %v1814_v32  ;;  %v1841_v54 = vsel %vm1839_vm6, %v1812_v50, %v1814_v32  ;;  %v2211_v32 = vld [vmem:[#allocation2 + $0x7e0] sm:$0xff]  ;;  %v2212_v50 = vld [vmem:[#allocation2 + $0x7f8] sm:$0xff] }
 0x56a   : > { %v4862_v39 = vmax.f32 %v1752_v26, %v1841_v54  ;;  %v3958_v26 = vpack.c.bf16 %v2228_v46, %v2227_v20 }
 0x56b   : > { %1902 = vrot.lane.b32.xlu0 %v4859_v18, %s4210_s11 }
 0x56c   : > { %v1818_v44 = vpop.permute.xlu0 %1817  ;;  %v1816_v49 = vpop.permute.xlu1 %1815  ;;  %1900 = vrot.lane.b32.xlu1 %v4862_v39, %s4210_s11 }
 0x56d   : > { %v4871_v24 = vmax.f32 %v1756_v57, %v1818_v44  ;;  %v1842_v59 = vsel %vm1839_vm6, %v1816_v49, %v1818_v44  ;;  %v3960_v49 = vpack.c.bf16 %v2212_v50, %v2211_v32  ;;  %v2261_v32 = vld [vmem:[#allocation2 + $0xc90] sm:$0xff]  ;;  %v2262_v50 = vld [vmem:[#allocation2 + $0xca8] sm:$0xff] }
 0x56e   : > { %v4874_v63 = vmax.f32 %v1755_v38, %v1842_v59  ;;  %v2230_v59 = vld [vmem:[#allocation2 + $0x9a8] sm:$0xff] }
 0x56f   : > { %1906 = vrot.lane.b32.xlu0 %v4871_v24, %s4210_s11 }
 0x570   : > { %v1822_v23 = vpop.permute.xlu0 %1821  ;;  %v1820_v45 = vpop.permute.xlu1 %1819  ;;  %1904 = vrot.lane.b32.xlu1 %v4874_v63, %s4210_s11 }
 0x571   : > { %v4883_v51 = vmax.f32 %v1759_v11, %v1822_v23  ;;  %v1843_v19 = vsel %vm1839_vm6, %v1820_v45, %v1822_v23  ;;  %v2213_v23 = vld [vmem:[#allocation2 + $0x810] sm:$0xff]  ;;  %v2214_v45 = vld [vmem:[#allocation2 + $0x828] sm:$0xff] }
 0x572   : > { %v4886_v57 = vmax.f32 %v1758_v48, %v1843_v19  ;;  %v3962_v48 = vpack.c.bf16 %v2230_v59, %v2229_v43  ;;  %v3964_v19 = vpack.c.bf16 %v2214_v45, %v2213_v23  ;;  %v2246_v23 = vld [vmem:[#allocation2 + $0xb28] sm:$0xff] }
 0x573   : > { %1910 = vrot.lane.b32.xlu0 %v4883_v51, %s4210_s11 }
 0x574   : > { %v1826_v56 = vpop.permute.xlu0 %1825  ;;  %v1824_v40 = vpop.permute.xlu1 %1823  ;;  %1908 = vrot.lane.b32.xlu1 %v4886_v57, %s4210_s11 }
 0x575   : > { %v4895_v33 = vmax.f32 %v1762_v31, %v1826_v56  ;;  %v1844_v10 = vsel %vm1839_vm6, %v1824_v40, %v1826_v56  ;;  %v2215_v56 = vld [vmem:[#allocation2 + $0x840] sm:$0xff]  ;;  %v2216_v40 = vld [vmem:[#allocation2 + $0x858] sm:$0xff] }
 0x576   : > { %v4898_v11 = vmax.f32 %v1761_v37, %v1844_v10  ;;  %v2233_v10 = vld [vmem:[#allocation2 + $0x9f0] sm:$0xff] }
 0x577   : > { %1914 = vrot.lane.b32.xlu0 %v4895_v33, %s4210_s11 }
 0x578   : > { %v1830_v47 = vpop.permute.xlu0 %1829  ;;  %v1828_v17 = vpop.permute.xlu1 %1827  ;;  %1912 = vrot.lane.b32.xlu1 %v4898_v11, %s4210_s11 }
 0x579   : > { %v4907_v4 = vmax.f32 %v1765_v34, %v1830_v47  ;;  %v1845_v62 = vsel %vm1839_vm6, %v1828_v17, %v1830_v47  ;;  %v3952_v34 = vpack.c.bf16 %v2208_v30, %v2207_v27  ;;  %v3968_v47 = vpack.c.bf16 %v2216_v40, %v2215_v56  ;;  %v2239_v27 = vld [vmem:[#allocation2 + $0xa80] sm:$0xff] }
 0x57a   : > { %v4910_v31 = vmax.f32 %v1764_v60, %v1845_v62  ;;  %v2234_v60 = vld [vmem:[#allocation2 + $0xa08] sm:$0xff]  ;;  %v2217_v62 = vld [vmem:[#allocation2 + $0x870] sm:$0xff] }
 0x57b   : > { %1918 = vrot.lane.b32.xlu0 %v4907_v4, %s4210_s11  ;;  %3953 = vmatpush3.bf16.msra.mxu0 %v3952_v34  ;;  %v3970_v17 = vpack.c.bf16 %v2234_v60, %v2233_v10  ;;  %v3972_v28 = vpack.c.bf16 %v2218_v25, %v2217_v62  ;;  %v3984_v34 = vpack.c.bf16 %v2240_v13, %v2239_v27  ;;  %v2247_v10 = vld [vmem:[#allocation2 + $0xb40] sm:$0xff]  ;;  %v2248_v60 = vld [vmem:[#allocation2 + $0xb58] sm:$0xff]  ;;  %v2266_v62 = vld [vmem:[#allocation2 + $0xd08] sm:$0xff] }
 0x57c   : > { %v1834_v8 = vpop.permute.xlu0 %1833  ;;  %v1832_v55 = vpop.permute.xlu1 %1831  ;;  %1916 = vrot.lane.b32.xlu1 %v4910_v31, %s4210_s11  ;;  %3955 = vmatprep.subr.bf16.mxu0 %v3954_v22  ;;  %v2260_v22 = vld [vmem:[#allocation2 + $0xc78] sm:$0xff]  ;;  %v4000_v27 = vpack.c.bf16 %v2248_v60, %v2247_v10 }
 0x57d   : > { %v4919_v7 = vmax.f32 %v1768_v15, %v1834_v8  ;;  %v1846_v12 = vsel %vm1839_vm6, %v1832_v55, %v1834_v8 }
 0x57e   : > { %v4922_v29 = vmax.f32 %v1767_v6, %v1846_v12  ;;  %v2241_v12 = vld [vmem:[#allocation2 + $0xab0] sm:$0xff] }
 0x57f   : > { %1922 = vrot.lane.b32.xlu0 %v4919_v7, %s4210_s11  ;;  %3957 = vmatpush3.bf16.msra.mxu0 %v3956_v21  ;;  %v3988_v46 = vpack.c.bf16 %v2242_v61, %v2241_v12 }
 0x580   : > { %v1838_v15 = vpop.permute.xlu0 %1837  ;;  %v1836_v35 = vpop.permute.xlu1 %1835  ;;  %1920 = vrot.lane.b32.xlu1 %v4922_v29, %s4210_s11  ;;  %3959 = vmatprep.subr.bf16.mxu0 %v3958_v26 }
 0x581   : > { %v4931_v54 = vmax.f32 %v1771_v0, %v1838_v15  ;;  %v1847_v38 = vsel %vm1839_vm6, %v1836_v35, %v1838_v15  ;;  %v2232_v0 = vld [vmem:[#allocation2 + $0x9d8] sm:$0xff]  ;;  %v2243_v15 = vld [vmem:[#allocation2 + $0xae0] sm:$0xff] }
 0x582   : > { %v4934_v44 = vmax.f32 %v1770_v3, %v1847_v38  ;;  %v3966_v37 = vpack.c.bf16 %v2232_v0, %v2231_v2  ;;  %v2244_v35 = vld [vmem:[#allocation2 + $0xaf8] sm:$0xff]  ;;  %v2263_v2 = vld [vmem:[#allocation2 + $0xcc0] sm:$0xff] }
 0x583   : > { %1926 = vrot.lane.b32.xlu0 %v4931_v54, %s4210_s11  ;;  %3961 = vmatpush3.bf16.msra.mxu0 %v3960_v49  ;;  %v3992_v43 = vpack.c.bf16 %v2244_v35, %v2243_v15  ;;  %v2264_v0 = vld [vmem:[#allocation2 + $0xcd8] sm:$0xff]  ;;  %v2251_v35 = vld [vmem:[#allocation2 + $0xba0] sm:$0xff] }
 0x584   : > { %1924 = vrot.lane.b32.xlu1 %v4934_v44, %s4210_s11  ;;  %3963 = vmatprep.subr.bf16.mxu0 %v3962_v48  ;;  %v2245_v48 = vld [vmem:[#allocation2 + $0xb10] sm:$0xff] }
 0x585   : > { %v3996_v56 = vpack.c.bf16 %v2246_v23, %v2245_v48  ;;  %v2253_v48 = vld [vmem:[#allocation2 + $0xbd0] sm:$0xff]  ;;  %v2254_v23 = vld [vmem:[#allocation2 + $0xbe8] sm:$0xff] }
 0x587   : > { %3965 = vmatpush3.bf16.msra.mxu0 %v3964_v19 }
 0x588   : > { %3967 = vmatprep.subr.bf16.mxu0 %v3966_v37 }
 0x58b   : > { %3969 = vmatpush3.bf16.msra.mxu0 %v3968_v47 }
 0x58c   : > { %3971 = vmatprep.subr.bf16.mxu0 %v3970_v17  ;;  %v2265_v17 = vld [vmem:[#allocation2 + $0xcf0] sm:$0xff] }
 0x58f   : > { %3973 = vmatpush3.bf16.msra.mxu0 %v3972_v28 }
 0x5d9   : > { %v1899_v30 = vpop.permute.xlu0 %1898 }
 0x5da   : > { %v1954_v6 = vmax.f32 %v4847_v14, %v1899_v30  ;;  %v1897_v8 = vpop.permute.xlu1 %1896 }
 0x5db   : > { %v1929_v55 = vsel %vm1928_vm7, %v1897_v8, %v1899_v30  ;;  %v2249_v30 = vld [vmem:[#allocation2 + $0xb70] sm:$0xff] }
 0x5dc   : > { %v1953_v9 = vmax.f32 %v4850_v36, %v1929_v55  ;;  %3016 = vmatprep.mubr.msk.f32.mxu1 %vm1969_vm8, %v1954_v6  ;;  %v3990_v36 = vpack.c.bf16 %v2260_v22, %v2259_v52  ;;  %v4004_v55 = vpack.c.bf16 %v2250_v5, %v2249_v30 }
 0x5dd   : > { %v1903_v16 = vpop.permute.xlu0 %1902 }
 0x5de   : > { %v1956_v21 = vmax.f32 %v4859_v18, %v1903_v16  ;;  %2059 = vmatmul.mubr.f32.vlgmr.msra.gmra.mrb[56].mxu1 %v1953_v9  ;;  %v1901_v20 = vpop.permute.xlu1 %1900 }
 0x5df   : > { %v1930_v14 = vsel %vm1928_vm7, %v1901_v20, %v1903_v16  ;;  %3985 = vmatpush3.bf16.msra.mxu1 %v3984_v34  ;;  %v2267_v20 = vld [vmem:[#allocation2 + $0xd20] sm:$0xff] }
 0x5e0   : > { %v1955_v3 = vmax.f32 %v4862_v39, %v1930_v14  ;;  %3017 = vmatprep.mubr.msk.f32.mxu1 %vm1969_vm8, %v1956_v21  ;;  %3987 = vmatprep.subr.bf16.mxu1 %v3986_v58  ;;  %v3994_v39 = vpack.c.bf16 %v2262_v50, %v2261_v32  ;;  %v2236_v21 = vld [vmem:[#allocation2 + $0xa38] sm:$0xff]  ;;  %v2237_v32 = vld [vmem:[#allocation2 + $0xa50] sm:$0xff] }
 0x5e1   : > { %v1907_v26 = vpop.permute.xlu0 %1906  ;;  %v2269_v50 = vld [vmem:[#allocation2 + $0xd50] sm:$0xff] }
 0x5e2   : > { %v1958_v38 = vmax.f32 %v4871_v24, %v1907_v26  ;;  %2064 = vmatmul.mubr.f32.gmra.mrb[58].mxu1 %v1955_v3  ;;  %v1905_v18 = vpop.permute.xlu1 %1904  ;;  %v2268_v3 = vld [vmem:[#allocation2 + $0xd38] sm:$0xff] }
 0x5e3   : > { %v1931_v49 = vsel %vm1928_vm7, %v1905_v18, %v1907_v26  ;;  %3989 = vmatpush3.bf16.msra.mxu1 %v3988_v46  ;;  %v2219_v46 = vld [vmem:[#allocation2 + $0x8a0] sm:$0xff]  ;;  %v4006_v15 = vpack.c.bf16 %v2268_v3, %v2267_v20  ;;  %v2221_v18 = vld [vmem:[#allocation2 + $0x8d0] sm:$0xff] }
 0x5e4   : > { %v1957_v59 = vmax.f32 %v4874_v63, %v1931_v49  ;;  %3018 = vmatprep.mubr.msk.f32.mxu1 %vm1969_vm8, %v1958_v38  ;;  %3991 = vmatprep.subr.bf16.mxu1 %v3990_v36  ;;  %v3998_v63 = vpack.c.bf16 %v2264_v0, %v2263_v2  ;;  %v2222_v49 = vld [vmem:[#allocation2 + $0x8e8] sm:$0xff]  ;;  %v2271_v2 = vld [vmem:[#allocation2 + $0xd80] sm:$0xff]  ;;  %v2272_v0 = vld [vmem:[#allocation2 + $0xd98] sm:$0xff] }
 0x5e5   : > { %v1911_v45 = vpop.permute.xlu0 %1910 }
 0x5e6   : > { %v1960_v19 = vmax.f32 %v4883_v51, %v1911_v45  ;;  %2069 = vmatmul.mubr.f32.gmra.mrb[60].mxu1 %v1957_v59  ;;  %v1909_v24 = vpop.permute.xlu1 %1908  ;;  %v3980_v59 = vpack.c.bf16 %v2222_v49, %v2221_v18 }
 0x5e7   : > { %v1932_v37 = vsel %vm1928_vm7, %v1909_v24, %v1911_v45  ;;  %3993 = vmatpush3.bf16.msra.mxu1 %v3992_v43  ;;  %v2270_v43 = vld [vmem:[#allocation2 + $0xd68] sm:$0xff]  ;;  %v4012_v45 = vpack.c.bf16 %v2254_v23, %v2253_v48 }
 0x5e8   : > { %v1959_v40 = vmax.f32 %v4886_v57, %v1932_v37  ;;  %3019 = vmatprep.mubr.msk.f32.mxu1 %vm1969_vm8, %v1960_v19  ;;  %3995 = vmatprep.subr.bf16.mxu1 %v3994_v39  ;;  %v4002_v57 = vpack.c.bf16 %v2266_v62, %v2265_v17  ;;  %v4010_v39 = vpack.c.bf16 %v2270_v43, %v2269_v50 }
 0x5e9   : > { %v1915_v47 = vpop.permute.xlu0 %1914  ;;  %v4014_v19 = vpack.c.bf16 %v2272_v0, %v2271_v2  ;;  %v2282_v2 = vld [vmem:[#allocation2 + $0xe88] sm:$0xff] }
 0x5ea   : > { %v1962_v25 = vmax.f32 %v4895_v33, %v1915_v47  ;;  %2074 = vmatmul.mubr.f32.gmra.mrb[62].mxu1 %v1959_v40  ;;  %v1913_v51 = vpop.permute.xlu1 %1912  ;;  %v2274_v40 = vld [vmem:[#allocation2 + $0xdc8] sm:$0xff] }
 0x5eb   : > { %v1933_v28 = vsel %vm1928_vm7, %v1913_v51, %v1915_v47  ;;  %3997 = vmatpush3.bf16.msra.mxu1 %v3996_v56  ;;  %v2273_v56 = vld [vmem:[#allocation2 + $0xdb0] sm:$0xff] }
 0x5ec   : > { %v1961_v13 = vmax.f32 %v4898_v11, %v1933_v28  ;;  %3020 = vmatprep.mubr.msk.f32.mxu1 %vm1969_vm8, %v1962_v25  ;;  %3999 = vmatprep.subr.bf16.mxu1 %v3998_v63 }
 0x5ed   : > { %v1919_v1 = vpop.permute.xlu0 %1918 }
 0x5ee   : > { %v1964_v6 = vmax.f32 %v4907_v4, %v1919_v1  ;;  %2079 = vmatmul.mubr.f32.gmra.mrb[64].mxu1 %v1961_v13  ;;  %v1917_v8 = vpop.permute.xlu1 %1916  ;;  %v4018_v13 = vpack.c.bf16 %v2274_v40, %v2273_v56 }
 0x5ef   : > { %v1934_v33 = vsel %vm1928_vm7, %v1917_v8, %v1919_v1  ;;  %4001 = vmatpush3.bf16.msra.mxu1 %v4000_v27  ;;  %v2275_v1 = vld [vmem:[#allocation2 + $0xde0] sm:$0xff] }
 0x5f0   : > { %v1963_v34 = vmax.f32 %v4910_v31, %v1934_v33  ;;  %3021 = vmatprep.mubr.msk.f32.mxu1 %vm1969_vm8, %v1964_v6  ;;  %4003 = vmatprep.subr.bf16.mxu1 %v4002_v57  ;;  %v2276_v6 = vld [vmem:[#allocation2 + $0xdf8] sm:$0xff] }
 0x5f1   : > { %v1923_v11 = vpop.permute.xlu0 %1922 }
 0x5f2   : > { %v1966_v9 = vmax.f32 %v4919_v7, %v1923_v11  ;;  %2084 = vmatmul.mubr.f32.gmra.mrb[66].mxu1 %v1963_v34  ;;  %v1921_v58 = vpop.permute.xlu1 %1920  ;;  %v2235_v7 = vld [vmem:[#allocation2 + $0xa20] sm:$0xff] }
 0x5f3   : > { %v1935_v12 = vsel %vm1928_vm7, %v1921_v58, %v1923_v11  ;;  %4005 = vmatpush3.bf16.msra.mxu1 %v4004_v55  ;;  %v3974_v14 = vpack.c.bf16 %v2236_v21, %v2235_v7 }
 0x5f4   : > { %v1965_v4 = vmax.f32 %v4922_v29, %v1935_v12  ;;  %3022 = vmatprep.mubr.msk.f32.mxu1 %vm1969_vm8, %v1966_v9  ;;  %v2220_v29 = vld [vmem:[#allocation2 + $0x8b8] sm:$0xff]  ;;  %4007 = vmatprep.subr.bf16.mxu1 %v4006_v15  ;;  %v4022_v12 = vpack.c.bf16 %v2276_v6, %v2275_v1 }
 0x5f5   : > { %v1927_v61 = vpop.permute.xlu0 %1926  ;;  %v3976_v36 = vpack.c.bf16 %v2220_v29, %v2219_v46  ;;  %3975 = vmatprep.subr.bf16.mxu0 %v3974_v14 }
 0x5f6   : > { %v1968_v16 = vmax.f32 %v4931_v54, %v1927_v61  ;;  %2089 = vmatmul.mubr.f32.gmra.mrb[68].mxu1 %v1965_v4  ;;  %v1925_v31 = vpop.permute.xlu1 %1924  ;;  %v2252_v54 = vld [vmem:[#allocation2 + $0xbb8] sm:$0xff] }
 0x5f7   : > { %v1936_v52 = vsel %vm1928_vm7, %v1925_v31, %v1927_v61  ;;  %v4008_v26 = vpack.c.bf16 %v2252_v54, %v2251_v35  ;;  %3977 = vmatpush3.bf16.msra.mxu0 %v3976_v36  ;;  %v2277_v31 = vld [vmem:[#allocation2 + $0xe10] sm:$0xff]  ;;  %v2279_v54 = vld [vmem:[#allocation2 + $0xe40] sm:$0xff] }
 0x5f8   : > { %v1967_v22 = vmax.f32 %v4934_v44, %v1936_v52  ;;  %3023 = vmatprep.mubr.msk.f32.mxu1 %vm1969_vm8, %v1968_v16  ;;  %v2238_v44 = vld [vmem:[#allocation2 + $0xa68] sm:$0xff] }
 0x5f9   : > { %4009 = vmatpush3.bf16.msra.mxu1 %v4008_v26  ;;  %v3978_v38 = vpack.c.bf16 %v2238_v44, %v2237_v32  ;;  %v2278_v52 = vld [vmem:[#allocation2 + $0xe28] sm:$0xff]  ;;  %v2280_v26 = vld [vmem:[#allocation2 + $0xe58] sm:$0xff] }
 0x5fa   : > { %2094 = vmatmul.mubr.f32.gmra.mrb[70].mxu1 %v1967_v22  ;;  %4011 = vmatprep.subr.bf16.mxu1 %v4010_v39  ;;  %v4026_v3 = vpack.c.bf16 %v2278_v52, %v2277_v31  ;;  %v2171_v52 = vrot.slane %v4203_v41, 3 }
 0x5fb   : > { %3979 = vmatprep.subr.bf16.mxu0 %v3978_v38 }
 0x5fc   : > { %3981 = vmatpush3.bf16.msra.mxu0 %v3980_v59  ;;  %v4030_v59 = vpack.c.bf16 %v2280_v26, %v2279_v54  ;;  %v2614_v26 = vld [vmem:[#allocation2 + $0x1200] sm:$0xff] }
 0x5fd   : > { %4013 = vmatpush3.bf16.msra.mxu1 %v4012_v45  ;;  %4015 = vmatprep.subr.bf16.mxu0 %v4014_v19  ;;  %v2281_v45 = vld [vmem:[#allocation2 + $0xe70] sm:$0xff] }
 0x6b1   : > { %v2060_v24 = vpop.f32.mrb[56].mxu1 }
 0x6b2   : > { %v2062_v37 = vpop.f32.mrb[57].mxu1  ;;  %v2131_v63 = vrot.slane %v2060_v24, 2  ;;  %v2107_v60 = vrot.slane %v2060_v24, 1  ;;  %v2156_v47 = vrot.slane %v2060_v24, 3  ;;  %v2182_v17 = vrot.slane %v2060_v24, 4 }
 0x6b5   : > { %v2065_v10 = vpop.f32.mrb[58].mxu1 }
 0x6b6   : > { %v2132_v62 = vrot.slane %v2065_v10, 2  ;;  %v2067_v25 = vpop.f32.mrb[59].mxu1  ;;  %v2108_v51 = vrot.slane %v2065_v10, 1  ;;  %v2157_v28 = vrot.slane %v2065_v10, 3  ;;  %v2183_v27 = vrot.slane %v2065_v10, 4 }
 0x6b7   : > { %v2284_v25 = vld [vmem:[#allocation2 + $0xeb8] sm:$0xff] }
 0x6b8   : > { %v2109_v57 = vsel %vm179_vm0, %v2107_v60, %v2108_v51  ;;  %v2158_v30 = vsel %vm2155_vm9, %v2156_v47, %v2157_v28  ;;  %v2133_v5 = vsel %vm1125_vm5, %v2131_v63, %v2132_v62  ;;  %v4976_v8 = vsel %vm2181_vm10, %v2182_v17, %v2183_v27 }
 0x6b9   : > { %v2070_v33 = vpop.f32.mrb[60].mxu1  ;;  %2352 = vmatprep.mubr.f32.mxu0 %v2109_v57  ;;  %2457 = vmatprep.mubr.f32.mxu1 %v2158_v30 }
 0x6ba   : > { %v2185_v55 = vrot.slane %v2070_v33, 4  ;;  %v2072_v34 = vpop.f32.mrb[61].mxu1  ;;  %2353 = vmatmul.mubr.f32.vlgmr.msra.gmra.mrb[32].mxu0 %v2060_v24  ;;  %2458 = vmatmul.mubr.f32.vlgmr.msra.gmra.mrb[72].mxu1 %v2133_v5  ;;  %v2110_v11 = vrot.slane %v2070_v33, 1  ;;  %v2159_v9 = vrot.slane %v2070_v33, 3  ;;  %v2134_v58 = vrot.slane %v2070_v33, 2 }
 0x6bb   : > { %4017 = vmatpush3.bf16.msra.mxu0 %v4014_v19 }
 0x6bc   : > { %v2111_v4 = vsel %vm179_vm0, %v2108_v51, %v2110_v11  ;;  %v2160_v61 = vsel %vm2155_vm9, %v2157_v28, %v2159_v9  ;;  %4019 = vmatprep.subr.bf16.mxu0 %v4018_v13  ;;  %v2135_v16 = vsel %vm1125_vm5, %v2132_v62, %v2134_v58  ;;  %v4982_v22 = vsel %vm2181_vm10, %v2183_v27, %v2185_v55  ;;  %v2283_v62 = vld [vmem:[#allocation2 + $0xea0] sm:$0xff] }
 0x6bd   : > { %v2075_v7 = vpop.f32.mrb[62].mxu1  ;;  %2357 = vmatprep.mubr.f32.mxu0 %v2111_v4  ;;  %2462 = vmatprep.mubr.f32.mxu1 %v2160_v61  ;;  %v4038_v1 = vpack.c.bf16 %v2284_v25, %v2283_v62  ;;  %v2771_v62 = vld [vmem:[#allocation2 + $0x13b0] sm:$0xff]  ;;  %v2772_v25 = vld [vmem:[#allocation2 + $0x13c8] sm:$0xff] }
 0x6be   : > { %v2077_v21 = vpop.f32.mrb[63].mxu1  ;;  %2358 = vmatmul.mubr.f32.gmra.mrb[34].mxu0 %v2065_v10  ;;  %2463 = vmatmul.mubr.f32.gmra.mrb[74].mxu1 %v2135_v16  ;;  %v2112_v20 = vrot.slane %v2075_v7, 1  ;;  %v2161_v14 = vrot.slane %v2075_v7, 3  ;;  %v2136_v46 = vrot.slane %v2075_v7, 2  ;;  %v2187_v29 = vrot.slane %v2075_v7, 4 }
 0x6bf   : > { %4021 = vmatpush3.bf16.msra.mxu0 %v4018_v13  ;;  %v4034_v10 = vpack.c.bf16 %v2282_v2, %v2281_v45  ;;  %v2623_v45 = vld [vmem:[#allocation2 + $0x12d8] sm:$0xff]  ;;  %v2624_v2 = vld [vmem:[#allocation2 + $0x12f0] sm:$0xff] }
 0x6c0   : > { %v2113_v36 = vsel %vm179_vm0, %v2110_v11, %v2112_v20  ;;  %v2162_v15 = vsel %vm2155_vm9, %v2159_v9, %v2161_v14  ;;  %4023 = vmatprep.subr.bf16.mxu0 %v4022_v12  ;;  %v2137_v35 = vsel %vm1125_vm5, %v2134_v58, %v2136_v46  ;;  %v4988_v32 = vsel %vm2181_vm10, %v2185_v55, %v2187_v29  ;;  %v2285_v9 = vld [vmem:[#allocation2 + $0xed0] sm:$0xff]  ;;  %v2286_v58 = vld [vmem:[#allocation2 + $0xee8] sm:$0xff] }
 0x6c1   : > { %v2080_v44 = vpop.f32.mrb[64].mxu1  ;;  %2362 = vmatprep.mubr.f32.mxu0 %v2113_v36  ;;  %2467 = vmatprep.mubr.f32.mxu1 %v2162_v15 }
 0x6c2   : > { %v2082_v50 = vpop.f32.mrb[65].mxu1  ;;  %2363 = vmatmul.mubr.f32.gmra.mrb[36].mxu0 %v2070_v33  ;;  %2468 = vmatmul.mubr.f32.gmra.mrb[76].mxu1 %v2137_v35  ;;  %v2114_v38 = vrot.slane %v2080_v44, 1  ;;  %v2163_v18 = vrot.slane %v2080_v44, 3  ;;  %v2138_v49 = vrot.slane %v2080_v44, 2  ;;  %v2189_v43 = vrot.slane %v2080_v44, 4  ;;  %v2612_v35 = vld [vmem:[#allocation2 + $0x11d0] sm:$0xff] }
 0x6c3   : > { %4025 = vmatpush3.bf16.msra.mxu0 %v4022_v12 }
 0x6c4   : > { %v2115_v39 = vsel %vm179_vm0, %v2112_v20, %v2114_v38  ;;  %v2164_v48 = vsel %vm2155_vm9, %v2161_v14, %v2163_v18  ;;  %4027 = vmatprep.subr.bf16.mxu0 %v4026_v3  ;;  %v2139_v23 = vsel %vm1125_vm5, %v2136_v46, %v2138_v49  ;;  %v4994_v0 = vsel %vm2181_vm10, %v2187_v29, %v2189_v43 }
 0x6c5   : > { %v2085_v19 = vpop.f32.mrb[66].mxu1  ;;  %2367 = vmatprep.mubr.f32.mxu0 %v2115_v39  ;;  %2472 = vmatprep.mubr.f32.mxu1 %v2164_v48  ;;  %v4042_v14 = vpack.c.bf16 %v2286_v58, %v2285_v9  ;;  %v2621_v39 = vld [vmem:[#allocation2 + $0x12a8] sm:$0xff]  ;;  %v2622_v48 = vld [vmem:[#allocation2 + $0x12c0] sm:$0xff] }
 0x6c6   : > { %v2087_v24 = vpop.f32.mrb[67].mxu1  ;;  %2368 = vmatmul.mubr.f32.gmra.mrb[38].mxu0 %v2075_v7  ;;  %2473 = vmatmul.mubr.f32.gmra.mrb[78].mxu1 %v2139_v23  ;;  %v2116_v37 = vrot.slane %v2085_v19, 1  ;;  %v2165_v56 = vrot.slane %v2085_v19, 3  ;;  %v2140_v40 = vrot.slane %v2085_v19, 2  ;;  %v2191_v63 = vrot.slane %v2085_v19, 4 }
 0x6c7   : > { %4029 = vmatpush3.bf16.msra.mxu0 %v4026_v3  ;;  %v4066_v23 = vpack.c.bf16 %v2622_v48, %v2621_v39  ;;  %v2765_v24 = vld [vmem:[#allocation2 + $0x1320] sm:$0xff] }
 0x6c8   : > { %v2117_v60 = vsel %vm179_vm0, %v2114_v38, %v2116_v37  ;;  %v2166_v47 = vsel %vm2155_vm9, %v2163_v18, %v2165_v56  ;;  %4031 = vmatprep.subr.bf16.mxu0 %v4030_v59  ;;  %v2141_v17 = vsel %vm1125_vm5, %v2138_v49, %v2140_v40  ;;  %v2192_v51 = vsel %vm2181_vm10, %v2189_v43, %v2191_v63  ;;  %v2618_v38 = vld [vmem:[#allocation2 + $0x1260] sm:$0xff]  ;;  %v2619_v49 = vld [vmem:[#allocation2 + $0x1278] sm:$0xff]  ;;  %v2620_v43 = vld [vmem:[#allocation2 + $0x1290] sm:$0xff] }
 0x6c9   : > { %v2090_v28 = vpop.f32.mrb[68].mxu1  ;;  %2372 = vmatprep.mubr.f32.mxu0 %v2117_v60  ;;  %2477 = vmatprep.mubr.f32.mxu1 %v2166_v47  ;;  %v2769_v60 = vld [vmem:[#allocation2 + $0x1380] sm:$0xff]  ;;  %v2770_v47 = vld [vmem:[#allocation2 + $0x1398] sm:$0xff] }
 0x6ca   : > { %v2092_v27 = vpop.f32.mrb[69].mxu1  ;;  %2373 = vmatmul.mubr.f32.gmra.mrb[40].mxu0 %v2080_v44  ;;  %2478 = vmatmul.mubr.f32.gmra.mrb[80].mxu1 %v2141_v17  ;;  %v2118_v13 = vrot.slane %v2090_v28, 1  ;;  %v2167_v57 = vrot.slane %v2090_v28, 3  ;;  %v2142_v30 = vrot.slane %v2090_v28, 2  ;;  %v2193_v5 = vrot.slane %v2090_v28, 4  ;;  %v2616_v44 = vld [vmem:[#allocation2 + $0x1230] sm:$0xff] }
 0x6cb   : > { %4033 = vmatpush3.bf16.msra.mxu0 %v4030_v59  ;;  %v4062_v59 = vpack.c.bf16 %v2620_v43, %v2619_v49  ;;  %v4082_v17 = vpack.c.bf16 %v2770_v47, %v2769_v60 }
 0x6cc   : > { %v2119_v6 = vsel %vm179_vm0, %v2116_v37, %v2118_v13  ;;  %v2168_v33 = vsel %vm2155_vm9, %v2165_v56, %v2167_v57  ;;  %4035 = vmatprep.subr.bf16.mxu0 %v4034_v10  ;;  %v2143_v55 = vsel %vm1125_vm5, %v2140_v40, %v2142_v30  ;;  %v2194_v34 = vsel %vm2181_vm10, %v2191_v63, %v2193_v5  ;;  %v2766_v37 = vld [vmem:[#allocation2 + $0x1338] sm:$0xff]  ;;  %v2767_v56 = vld [vmem:[#allocation2 + $0x1350] sm:$0xff]  ;;  %v2768_v63 = vld [vmem:[#allocation2 + $0x1368] sm:$0xff] }
 0x6cd   : > { %v2095_v11 = vpop.f32.mrb[70].mxu1  ;;  %2377 = vmatprep.mubr.f32.mxu0 %v2119_v6  ;;  %2482 = vmatprep.mubr.f32.mxu1 %v2168_v33  ;;  %v4074_v40 = vpack.c.bf16 %v2766_v37, %v2765_v24 }
 0x6ce   : > { %v2097_v12 = vpop.f32.mrb[71].mxu1  ;;  %2378 = vmatmul.mubr.f32.gmra.mrb[42].mxu0 %v2085_v19  ;;  %2483 = vmatmul.mubr.f32.gmra.mrb[82].mxu1 %v2143_v55  ;;  %v2120_v4 = vrot.slane %v2095_v11, 1  ;;  %v2169_v61 = vrot.slane %v2095_v11, 3  ;;  %v2144_v16 = vrot.slane %v2095_v11, 2  ;;  %v2195_v31 = vrot.slane %v2095_v11, 4  ;;  %v2625_v19 = vld [vmem:[#allocation2 + $0x1308] sm:$0xff] }
 0x6cf   : > { %4037 = vmatpush3.bf16.msra.mxu0 %v4034_v10  ;;  %v4078_v10 = vpack.c.bf16 %v2768_v63, %v2767_v56 }
 0x6d0   : > { %v2121_v7 = vsel %vm179_vm0, %v2118_v13, %v2120_v4  ;;  %v2170_v21 = vsel %vm2155_vm9, %v2167_v57, %v2169_v61  ;;  %4039 = vmatprep.subr.bf16.mxu0 %v4038_v1  ;;  %v2145_v20 = vsel %vm1125_vm5, %v2142_v30, %v2144_v16  ;;  %v2196_v46 = vsel %vm2181_vm10, %v2193_v5, %v2195_v31  ;;  %v2287_v13 = vld [vmem:[#allocation2 + $0x142a] ss:$0 sm:$0xff] }
 0x6d1   : > { %2382 = vmatprep.mubr.f32.mxu0 %v2121_v7  ;;  %2487 = vmatprep.mubr.f32.mxu1 %v2170_v21  ;;  %v2122_v29 = vsel %vm179_vm0, %v2120_v4, %v4331_v42  ;;  %v2172_v3 = vsel %vm2155_vm9, %v2169_v61, %v2171_v52  ;;  %v2146_v36 = vsel %vm1125_vm5, %v2144_v16, %v4732_v53  ;;  %v2197_v42 = vrot.slane %v4203_v41, 4  ;;  %v2611_v53 = vld [vmem:[#allocation2 + $0x11b8] sm:$0xff]  ;;  %v2617_v41 = vld [vmem:[#allocation2 + $0x1248] sm:$0xff] }
 0x6d2   : > { %2383 = vmatmul.mubr.f32.gmra.mrb[44].mxu0 %v2090_v28  ;;  %2488 = vmatmul.mubr.f32.gmra.mrb[84].mxu1 %v2145_v20  ;;  %v4046_v54 = vpack.c.bf16 %v2612_v35, %v2611_v53  ;;  %v4058_v18 = vpack.c.bf16 %v2618_v38, %v2617_v41 }
 0x6d3   : > { %4041 = vmatpush3.bf16.msra.mxu0 %v4038_v1  ;;  %2387 = vmatprep.mubr.f32.mxu0 %v2122_v29  ;;  %v2198_v15 = vsel %vm2181_vm10, %v2195_v31, %v2197_v42 }
 0x6d4   : > { %2492 = vmatprep.mubr.f32.mxu1 %v2172_v3  ;;  %4043 = vmatprep.subr.bf16.mxu0 %v4042_v14 }
 0x6d5   : > { %4047 = vmatprep.subr.bf16.mxu1 %v4046_v54 }
 0x6d6   : > { %2388 = vmatmul.mubr.f32.gmra.mrb[46].mxu0 %v2095_v11  ;;  %2493 = vmatmul.mubr.f32.gmra.mrb[86].mxu1 %v2146_v36 }
 0x6d7   : > { %4045 = vmatpush3.bf16.msra.mxu0 %v4042_v14  ;;  %3539 = vmatprep.mubr.f32.mxu0 %v4976_v8  ;;  %v2613_v8 = vld [vmem:[#allocation2 + $0x11e8] sm:$0xff] }
 0x6d8   : > { %4049 = vmatpush3.bf16.msra.mxu1 %v4046_v54  ;;  %4075 = vmatprep.subr.bf16.mxu0 %v4074_v40 }
 0x6da   : > { %3540 = vmatmul.mubr.f32.vlgmr.msra.gmra.mrb[48].mxu0 %v4982_v22  ;;  %v4050_v22 = vpack.c.bf16 %v2614_v26, %v2613_v8 }
 0x6db   : > { %3542 = vmatprep.mubr.f32.mxu0 %v4988_v32  ;;  %v2615_v32 = vld [vmem:[#allocation2 + $0x1218] sm:$0xff]  ;;  %4077 = vmatpush3.bf16.msra.mxu0 %v4074_v40 }
 0x6dc   : > { %4051 = vmatprep.subr.bf16.mxu1 %v4050_v22  ;;  %v4054_v50 = vpack.c.bf16 %v2616_v44, %v2615_v32  ;;  %4079 = vmatprep.subr.bf16.mxu0 %v4078_v10 }
 0x6dd   : > { %4053 = vmatpush3.bf16.msra.mxu1 %v4050_v22 }
 0x6de   : > { %3543 = vmatmul.mubr.f32.gmra.mrb[50].mxu0 %v4994_v0  ;;  %4055 = vmatprep.subr.bf16.mxu1 %v4054_v50  ;;  %v4070_v0 = vpack.c.bf16 %v2624_v2, %v2623_v45 }
 0x6df   : > { %3545 = vmatprep.mubr.f32.mxu0 %v2192_v51  ;;  %4081 = vmatpush3.bf16.msra.mxu0 %v4078_v10  ;;  %v4086_v51 = vpack.c.bf16 %v2772_v25, %v2771_v62 }
 0x6e0   : > { %4083 = vmatprep.subr.bf16.mxu0 %v4082_v17 }
 0x6e1   : > { %4057 = vmatpush3.bf16.msra.mxu1 %v4054_v50 }
 0x6e2   : > { %3546 = vmatmul.mubr.f32.gmra.mrb[52].mxu0 %v2194_v34  ;;  %4059 = vmatprep.subr.bf16.mxu1 %v4058_v18 }
 0x6e3   : > { %3548 = vmatprep.mubr.f32.mxu0 %v2196_v46  ;;  %4085 = vmatpush3.bf16.msra.mxu0 %v4082_v17 }
 0x6e4   : > { %4087 = vmatprep.subr.bf16.mxu0 %v4086_v51 }
 0x6e5   : > { %4061 = vmatpush3.bf16.msra.mxu1 %v4058_v18 }
 0x6e6   : > { %3549 = vmatmul.mubr.f32.gmra.mrb[54].mxu0 %v2198_v15  ;;  %4063 = vmatprep.subr.bf16.mxu1 %v4062_v59 }
 0x6e7   : > { %4089 = vmatpush3.bf16.msra.mxu0 %v4086_v51 }
 0x6e9   : > { %4065 = vmatpush3.bf16.msra.mxu1 %v4062_v59 }
 0x6ea   : > { %4067 = vmatprep.subr.bf16.mxu1 %v4066_v23 }
 0x6ed   : > { %4069 = vmatpush3.bf16.msra.mxu1 %v4066_v23 }
 0x6ee   : > { %4071 = vmatprep.subr.bf16.mxu1 %v4070_v0 }
 0x6f1   : > { %4073 = vmatpush3.bf16.msra.mxu1 %v4070_v0 }
 0x6f2   : > { %3579 = vmatprep.subr.mxu1 %v2625_v19 }
 0x6f5   : > { %3580 = vmatpush3.msra.mxu1 %v2625_v19 }
 0x78d   : > { %v3249_v28 = vpop.f32.mrb[32].mxu0  ;;  %v3305_v27 = vpop.f32.mrb[72].mxu1 }
 0x78e   : > { %v3250_v57 = vpop.f32.mrb[33].mxu0  ;;  %v3306_v30 = vpop.f32.mrb[73].mxu1 }
 0x78f   : > { %v3251_v5 = vadd.f32 %v3250_v57, %v3249_v28  ;;  %v3307_v1 = vadd.f32 %v3306_v30, %v3305_v27 }
 0x791   : > { %v2355_v6 = vadd.f32 %v3251_v5, %v2287_v13  ;;  %v3252_v33 = vpop.f32.mrb[34].mxu0  ;;  %v3308_v55 = vpop.f32.mrb[74].mxu1 }
 0x792   : > { %v3253_v34 = vpop.f32.mrb[35].mxu0  ;;  %v3309_v11 = vpop.f32.mrb[75].mxu1 }
 0x793   : > { %v3254_v9 = vadd.f32 %v3253_v34, %v3252_v33  ;;  %v3310_v58 = vadd.f32 %v3309_v11, %v3308_v55  ;;  %v2460_v12 = vadd.f32 %v3307_v1, %v2355_v6 }
 0x795   : > { %v2360_v4 = vadd.f32 %v3254_v9, %v2287_v13  ;;  %v3255_v61 = vpop.f32.mrb[36].mxu0  ;;  %v3311_v16 = vpop.f32.mrb[76].mxu1 }
 0x796   : > { %v3256_v31 = vpop.f32.mrb[37].mxu0  ;;  %v3312_v52 = vpop.f32.mrb[77].mxu1 }
 0x797   : > { %v3257_v7 = vadd.f32 %v3256_v31, %v3255_v61  ;;  %v3313_v21 = vadd.f32 %v3312_v52, %v3311_v16  ;;  %v2465_v20 = vadd.f32 %v3310_v58, %v2360_v4 }
 0x799   : > { %v2365_v14 = vadd.f32 %v3257_v7, %v2287_v13  ;;  %v3258_v46 = vpop.f32.mrb[38].mxu0  ;;  %v3314_v29 = vpop.f32.mrb[78].mxu1 }
 0x79a   : > { %v3259_v3 = vpop.f32.mrb[39].mxu0  ;;  %v3315_v36 = vpop.f32.mrb[79].mxu1 }
 0x79b   : > { %v3260_v42 = vadd.f32 %v3259_v3, %v3258_v46  ;;  %v3316_v15 = vadd.f32 %v3315_v36, %v3314_v29  ;;  %v2470_v53 = vadd.f32 %v3313_v21, %v2365_v14  ;;  %v2773_v29 = vld [vmem:[#allocation2 + $0x13e0] sm:$0xff]  ;;  %v2774_v3 = vld [vmem:[#allocation2 + $0x13f8] sm:$0xff] }
 0x79c   : > { %v4090_v36 = vpack.c.bf16 %v2774_v3, %v2773_v29 }
 0x79d   : > { %v2370_v35 = vadd.f32 %v3260_v42, %v2287_v13  ;;  %v3261_v54 = vpop.f32.mrb[40].mxu0  ;;  %v3317_v8 = vpop.f32.mrb[80].mxu1  ;;  %v2775_v42 = vld [vmem:[#allocation2 + $0x1410] sm:$0xf] }
 0x79e   : > { %v3262_v26 = vpop.f32.mrb[41].mxu0  ;;  %v3318_v22 = vpop.f32.mrb[81].mxu1  ;;  %4091 = vmatprep.subr.bf16.mxu0 %v4090_v36 }
 0x79f   : > { %v3263_v32 = vadd.f32 %v3262_v26, %v3261_v54  ;;  %v3319_v44 = vadd.f32 %v3318_v22, %v3317_v8  ;;  %v2475_v50 = vadd.f32 %v3316_v15, %v2370_v35  ;;  %4093 = vmatpush3.bf16.msra.mxu0 %v4090_v36  ;;  %v2626_v15 = vld [vmem:[#allocation2 + $0x142b] ss:$0 sm:$0xff] }
 0x7a0   : > { %3613 = vmatprep.subr.msk.mxu0 %vm2181_vm10, %v2775_v42 }
 0x7a1   : > { %v2375_v41 = vadd.f32 %v3263_v32, %v2287_v13  ;;  %v3264_v38 = vpop.f32.mrb[42].mxu0  ;;  %v3320_v18 = vpop.f32.mrb[82].mxu1 }
 0x7a2   : > { %v3265_v49 = vpop.f32.mrb[43].mxu0  ;;  %v3321_v43 = vpop.f32.mrb[83].mxu1 }
 0x7a3   : > { %v3266_v59 = vadd.f32 %v3265_v49, %v3264_v38  ;;  %v3322_v39 = vadd.f32 %v3321_v43, %v3320_v18  ;;  %v2480_v48 = vadd.f32 %v3319_v44, %v2375_v41  ;;  %3614 = vmatpush3.msk.msra.mxu0 %vm2181_vm10, %v2775_v42 }
 0x7a5   : > { %v2380_v23 = vadd.f32 %v3266_v59, %v2287_v13  ;;  %v3267_v45 = vpop.f32.mrb[44].mxu0  ;;  %v3323_v2 = vpop.f32.mrb[84].mxu1 }
 0x7a6   : > { %v3268_v0 = vpop.f32.mrb[45].mxu0  ;;  %v3324_v19 = vpop.f32.mrb[85].mxu1 }
 0x7a7   : > { %v3269_v24 = vadd.f32 %v3268_v0, %v3267_v45  ;;  %v3325_v37 = vadd.f32 %v3324_v19, %v3323_v2  ;;  %v2485_v56 = vadd.f32 %v3322_v39, %v2380_v23 }
 0x7a9   : > { %v2385_v40 = vadd.f32 %v3269_v24, %v2287_v13  ;;  %v3270_v63 = vpop.f32.mrb[46].mxu0  ;;  %v3326_v10 = vpop.f32.mrb[86].mxu1 }
 0x7aa   : > { %v3271_v60 = vpop.f32.mrb[47].mxu0  ;;  %v3327_v47 = vpop.f32.mrb[87].mxu1 }
 0x7ab   : > { %v3272_v17 = vadd.f32 %v3271_v60, %v3270_v63  ;;  %v3328_v62 = vadd.f32 %v3327_v47, %v3326_v10  ;;  %v2490_v25 = vadd.f32 %v3325_v37, %v2385_v40 }
 0x7ad   : > { %v2390_v51 = vadd.f32 %v3272_v17, %v2287_v13  ;;  %v3541_v28 = vpop.f32.mrb[48].mxu0 }
 0x7ae   : > { %v2570_v27 = vadd.f32 %v3541_v28, %v2465_v20  ;;  %v2564_v57 = vpop.f32.mrb[49].mxu0 }
 0x7af   : > { %v2565_v30 = vadd.f32 %v2564_v57, %v2460_v12  ;;  %v2495_v5 = vadd.f32 %v3328_v62, %v2390_v51 }
 0x7b0   : > { %v2604_v33 = vmax.f32 %v2570_v27, 0.0 }
 0x7b1   : > { %v2603_v1 = vmax.f32 %v2565_v30, 0.0  ;;  %v3544_v6 = vpop.f32.mrb[50].mxu0 }
 0x7b2   : > { %v2580_v55 = vadd.f32 %v3544_v6, %v2475_v50  ;;  %v2574_v34 = vpop.f32.mrb[51].mxu0 }
 0x7b3   : > { %v2575_v11 = vadd.f32 %v2574_v34, %v2470_v53  ;;  %3581 = vmatprep.mubr.msk.f32.mxu1 %vm2627_vm11, %v2603_v1 }
 0x7b4   : > { %3582 = vmatmul.mubr.msk.f32.vlgmr.msra.gmra.mrb[88].mxu1 %vm2627_vm11, %v2604_v33  ;;  %v2606_v4 = vmax.f32 %v2580_v55, 0.0 }
 0x7b5   : > { %v2605_v9 = vmax.f32 %v2575_v11, 0.0  ;;  %v3547_v58 = vpop.f32.mrb[52].mxu0 }
 0x7b6   : > { %v2590_v13 = vadd.f32 %v3547_v58, %v2485_v56  ;;  %v2584_v61 = vpop.f32.mrb[53].mxu0  ;;  %v2776_v56 = vld [vmem:[#allocation2 + $0x142c] ss:$0 sm:$0xff] }
 0x7b7   : > { %v2585_v16 = vadd.f32 %v2584_v61, %v2480_v48  ;;  %3584 = vmatprep.mubr.msk.f32.mxu1 %vm2627_vm11, %v2605_v9 }
 0x7b8   : > { %3585 = vmatmul.mubr.msk.f32.gmra.mrb[90].mxu1 %vm2627_vm11, %v2606_v4  ;;  %v2608_v52 = vmax.f32 %v2590_v13, 0.0 }
 0x7b9   : > { %v2607_v12 = vmax.f32 %v2585_v16, 0.0  ;;  %v3550_v31 = vpop.f32.mrb[54].mxu0 }
 0x7ba   : > { %v2600_v7 = vadd.f32 %v3550_v31, %v2495_v5  ;;  %v2594_v21 = vpop.f32.mrb[55].mxu0 }
 0x7bb   : > { %v2595_v20 = vadd.f32 %v2594_v21, %v2490_v25  ;;  %3587 = vmatprep.mubr.msk.f32.mxu1 %vm2627_vm11, %v2607_v12 }
 0x7bc   : > { %3588 = vmatmul.mubr.msk.f32.gmra.mrb[92].mxu1 %vm2627_vm11, %v2608_v52  ;;  %v2610_v46 = vmax.f32 %v2600_v7, 0.0 }
 0x7bd   : > { %v2609_v14 = vmax.f32 %v2595_v20, 0.0 }
 0x7bf   : > { %3590 = vmatprep.mubr.msk.f32.mxu1 %vm2627_vm11, %v2609_v14 }
 0x7c0   : > { %3591 = vmatmul.mubr.msk.f32.gmra.mrb[94].mxu1 %vm2627_vm11, %v2610_v46 }
 0x887   : > { %v3583_v53 = vpop.f32.mrb[88].mxu1 }
 0x888   : > { %v2724_v35 = vadd.f32 %v3583_v53, %v2626_v15  ;;  %v2718_v54 = vpop.f32.mrb[89].mxu1 }
 0x889   : > { %v2719_v8 = vadd.f32 %v2718_v54, %v2626_v15 }
 0x88a   : > { %v2758_v32 = vmax.f32 %v2724_v35, 0.0 }
 0x88b   : > { %v2757_v26 = vmax.f32 %v2719_v8, 0.0  ;;  %v3586_v22 = vpop.f32.mrb[90].mxu1 }
 0x88c   : > { %v2734_v44 = vadd.f32 %v3586_v22, %v2626_v15  ;;  %v2728_v50 = vpop.f32.mrb[91].mxu1 }
 0x88d   : > { %v2729_v41 = vadd.f32 %v2728_v50, %v2626_v15  ;;  %3615 = vmatprep.mubr.msk.f32.mxu0 %vm2777_vm12, %v2757_v26 }
 0x88e   : > { %3616 = vmatmul.mubr.msk.f32.vlgmr.msra.gmra.mrb[56].mxu0 %vm2777_vm12, %v2758_v32  ;;  %v2760_v49 = vmax.f32 %v2734_v44, 0.0 }
 0x88f   : > { %v2759_v38 = vmax.f32 %v2729_v41, 0.0  ;;  %v3589_v18 = vpop.f32.mrb[92].mxu1 }
 0x890   : > { %v2744_v43 = vadd.f32 %v3589_v18, %v2626_v15  ;;  %v2738_v59 = vpop.f32.mrb[93].mxu1 }
 0x891   : > { %v2739_v39 = vadd.f32 %v2738_v59, %v2626_v15  ;;  %3618 = vmatprep.mubr.msk.f32.mxu0 %vm2777_vm12, %v2759_v38 }
 0x892   : > { %3619 = vmatmul.mubr.msk.f32.gmra.mrb[58].mxu0 %vm2777_vm12, %v2760_v49  ;;  %v2762_v45 = vmax.f32 %v2744_v43, 0.0 }
 0x893   : > { %v2761_v48 = vmax.f32 %v2739_v39, 0.0  ;;  %v3592_v23 = vpop.f32.mrb[94].mxu1 }
 0x894   : > { %v2754_v2 = vadd.f32 %v3592_v23, %v2626_v15  ;;  %v2748_v0 = vpop.f32.mrb[95].mxu1 }
 0x895   : > { %v2749_v19 = vadd.f32 %v2748_v0, %v2626_v15  ;;  %3621 = vmatprep.mubr.msk.f32.mxu0 %vm2777_vm12, %v2761_v48 }
 0x896   : > { %3622 = vmatmul.mubr.msk.f32.gmra.mrb[60].mxu0 %vm2777_vm12, %v2762_v45  ;;  %v2764_v37 = vmax.f32 %v2754_v2, 0.0 }
 0x897   : > { %v2763_v24 = vmax.f32 %v2749_v19, 0.0 }
 0x899   : > { %3624 = vmatprep.mubr.msk.f32.mxu0 %vm2777_vm12, %v2763_v24 }
 0x89a   : > { %3625 = vmatmul.mubr.msk.f32.gmra.mrb[62].mxu0 %vm2777_vm12, %v2764_v37 }
 0x961   : > { %v3617_v40 = vpop.f32.mrb[56].mxu0 }
 0x962   : > { %v2877_v63 = vadd.f32 %v3617_v40, %v2776_v56  ;;  %v2871_v10 = vpop.f32.mrb[57].mxu0 }
 0x963   : > { %v2872_v60 = vadd.f32 %v2871_v10, %v2776_v56 }
 0x964   : > { %2912 = vst.msk [vmem:[%s160_s14 + $0x8] sm:$0xff] %vm2910_vm13, %v2877_v63 }
 0x965   : > { %2911 = vst.msk [vmem:[%s160_s14] sm:$0xff] %vm2910_vm13, %v2872_v60  ;;  %v3620_v47 = vpop.f32.mrb[58].mxu0 }
 0x966   : > { %v2887_v17 = vadd.f32 %v3620_v47, %v2776_v56  ;;  %v2881_v62 = vpop.f32.mrb[59].mxu0 }
 0x967   : > { %v2882_v25 = vadd.f32 %v2881_v62, %v2776_v56 }
 0x968   : > { %2914 = vst.msk [vmem:[%s160_s14 + $0x18] sm:$0xff] %vm2910_vm13, %v2887_v17 }
 0x969   : > { %2913 = vst.msk [vmem:[%s160_s14 + $0x10] sm:$0xff] %vm2910_vm13, %v2882_v25  ;;  %v3623_v51 = vpop.f32.mrb[60].mxu0 }
 0x96a   : > { %v2897_v28 = vadd.f32 %v3623_v51, %v2776_v56  ;;  %v2891_v27 = vpop.f32.mrb[61].mxu0 }
 0x96b   : > { %v2892_v57 = vadd.f32 %v2891_v27, %v2776_v56 }
 0x96c   : > { %2916 = vst.msk [vmem:[%s160_s14 + $0x28] sm:$0xff] %vm2910_vm13, %v2897_v28 }
 0x96d   : > { %2915 = vst.msk [vmem:[%s160_s14 + $0x20] sm:$0xff] %vm2910_vm13, %v2892_v57  ;;  %v3626_v30 = vpop.f32.mrb[62].mxu0 }
 0x96e   : > { %v2907_v5 = vadd.f32 %v3626_v30, %v2776_v56  ;;  %v2901_v1 = vpop.f32.mrb[63].mxu0 }
 0x96f   : > { %v2902_v6 = vadd.f32 %v2901_v1, %v2776_v56 }
 0x970   : > { %2918 = vst.msk [vmem:[%s160_s14 + $0x38] sm:$0xff] %vm2910_vm13, %v2907_v5 }
 0x971   : > { %2917 = vst.msk [vmem:[%s160_s14 + $0x30] sm:$0xff] %vm2910_vm13, %v2902_v6 }
 0x972 PF: > { %s13_s9 = sadd.s32 1, %s4198_s9  }
 0x973   : > { %p10_p3 = scmp.ge.s32.totalorder %s13_s9, 4  }
 0x975   :  { %12 = sbr.rel (!%p10_p3) target bundleno = 1 (0x1), region = 65 }
 0x97c   :  { %2941 = vsyncpa [#allocation3], 1 }
 0x97d   :  { %2943 = vsyncpa [#allocation3 + $0x1], 1 }

</bundles_post_ra>
